<compile_context>
chip_gen: v5e
topology: v5e:2x2
jax: 0.10.0
libtpu: 0.0.40
codegen_flags: <defaults>
</compile_context>

<pallas_src>
import jax
import jax.numpy as jnp
from jax import lax
from jax.experimental import pallas as pl
from jax.experimental.pallas import tpu as pltpu

EPS = 1e-5
LANE = 128


def _round_up(n, m):
    return (n + m - 1) // m * m


def _pad_to(a, shape):
    pads = [(0, t - s) for s, t in zip(a.shape, shape)]
    if any(p[1] for p in pads):
        a = jnp.pad(a, pads)
    return a


# ----------------------------- Pallas kernel -----------------------------

def _td_bottleneck_kernel(x_ref, xt_ref, xb_ref,
                          w1_ref, b1_ref, w2_ref, b2_ref, w3_ref, b3_ref,
                          o_ref, h1_scr):
    """One (batch, row-tile) step of the fused bottleneck.

    x_ref  : (1, TH, W, NFP) f32   current row tile (channels pre-padded)
    xt_ref : (1, 1,  W, NFP) f32   row above the tile (clamped at image top)
    xb_ref : (1, 1,  W, NFP) f32   row below the tile (clamped at image bottom)
    w1_ref : (NFP, WP)     bf16    conv1 weight, bn1 scale folded in
    b1_ref : (1, WP)       f32     bn1 bias
    w2_ref : (3, WP, 3*WP) bf16    conv2: per ky, the 3 kx taps concat on N
    b2_ref : (1, WP)       f32
    w3_ref : (WP, NFP)     bf16
    b3_ref : (1, NFP)      f32
    o_ref  : (1, TH, W, NFP) f32
    h1_scr : (TH+2, W, WP) bf16    h1 row-halo scratch (fully rewritten per step)
    """
    _, TH, W, nfp = x_ref.shape
    wp = w1_ref.shape[1]
    rows = TH * W
    i = pl.program_id(1)
    nt = pl.num_programs(1)

    w1 = w1_ref[...]
    b1 = b1_ref[...]

    # ---- conv1 (1x1, bn1 folded) + relu on the tile rows ----
    x2d = x_ref[0].reshape(rows, nfp)                       # f32 identity path
    h1 = jnp.dot(x2d.astype(jnp.bfloat16), w1,
                 preferred_element_type=jnp.float32) + b1
    h1 = jnp.maximum(h1, 0.0)
    h1_scr[1:TH + 1, :, :] = h1.reshape(TH, W, wp).astype(jnp.bfloat16)

    # ---- conv1 on the two halo rows; zero them outside the image ----
    ht = jnp.dot(xt_ref[0, 0].astype(jnp.bfloat16), w1,
                 preferred_element_type=jnp.float32) + b1
    ht = jnp.where(i > 0, jnp.maximum(ht, 0.0), 0.0)
    h1_scr[0, :, :] = ht.astype(jnp.bfloat16)

    hb = jnp.dot(xb_ref[0, 0].astype(jnp.bfloat16), w1,
                 preferred_element_type=jnp.float32) + b1
    hb = jnp.where(i < nt - 1, jnp.maximum(hb, 0.0), 0.0)
    h1_scr[TH + 1, :, :] = hb.astype(jnp.bfloat16)

    # ---- maybe_upsample: upsample is None -> no-op ----

    # ---- conv2 (3x3, bn2 folded) + relu ----
    # Per ky, ONE (rows, WP) x (WP, 3*WP) dot computes all three kx taps; the
    # dx = +/-1 taps are shifted into place with sublane rolls (XLU) and
    # image-edge masks instead of misaligned halo slices.
    xcol = lax.broadcasted_iota(jnp.int32, (rows, 1), 0) % W
    not_left_edge = xcol != 0                 # kx=0 contributes nothing at x==0
    not_right_edge = xcol != (W - 1)          # kx=2 contributes nothing at x==W-1

    acc = jnp.zeros((rows, wp), jnp.float32)
    for ky in range(3):
        slab = h1_scr[ky:ky + TH, :, :].reshape(rows, wp)   # aligned row-halo read
        v = jnp.dot(slab, w2_ref[ky], preferred_element_type=jnp.float32)
        acc = acc + v[:, wp:2 * wp]                                        # kx=1
        acc = acc + jnp.where(not_left_edge,
                              pltpu.roll(v[:, :wp], shift=1, axis=0), 0.0)  # kx=0
        acc = acc + jnp.where(not_right_edge,
                              pltpu.roll(v[:, 2 * wp:], shift=rows - 1, axis=0),
                              0.0)                                          # kx=2
    h2 = jnp.maximum(acc + b2_ref[...], 0.0)

    # ---- conv3 (1x1, bn3 folded) + residual add + relu ----
    h3 = jnp.dot(h2.astype(jnp.bfloat16), w3_ref[...],
                 preferred_element_type=jnp.float32) + b3_ref[...]
    o_ref[0] = jnp.maximum(h3 + x2d, 0.0).reshape(TH, W, nfp)


# ----------------------------- wrapper -----------------------------

def _bn_fold(gamma, beta, mean, var):
    scale = gamma / jnp.sqrt(var + EPS)
    bias = beta - mean * scale
    return scale, bias


def _pick_tile_h(H, W, wp, nfp, budget_bytes):
    """Largest divisor of H whose (rough) per-step VMEM footprint fits."""
    for th in sorted((d for d in range(1, H + 1) if H % d == 0), reverse=True):
        rows = th * W
        io_blocks = 2 * (2 * rows * nfp * 4 + 2 * W * nfp * 4)  # double-buffered x/out + halo rows
        weights = 2 * ((nfp * wp + 9 * wp * wp + wp * nfp) * 2 + (2 * wp + nfp) * 4)
        scratch = (th + 2) * W * wp * 2
        temps = rows * 4 * (6 * wp + 3 * nfp)                   # h1/v/acc/h2/h3/identity (rough)
        if io_blocks + weights + scratch + temps <= budget_bytes:
            return th
    return 1


def td_bottleneck_forward(x_nchw, params, tile_h=None):
    """Fused TDBottleNeck forward (upsample=None, eval-mode BN)."""
    N, ni, H, W = x_nchw.shape
    width = params["w2"].shape[0]
    nf = params["w3"].shape[0]
    if nf != ni:
        raise ValueError("upsample=None requires nf == ni for the residual add")

    wp = _round_up(width, LANE)
    nfp = _round_up(nf, LANE)

    # Generation-aware VMEM budget (v7x: 64 MiB physical, v5e/v6e: 128 MiB).
    try:
        vmem_cap = int(pltpu.get_tpu_info().vmem_capacity_bytes)
    except Exception:
        vmem_cap = 64 * 1024 * 1024
    vmem_limit = int(min(0.75 * vmem_cap, 100 * 1024 * 1024))
    vmem_limit = max(vmem_limit, 32 * 1024 * 1024)
    if tile_h is None:
        tile_h = _pick_tile_h(H, W, wp, nfp, int(0.8 * vmem_limit))
    if H % tile_h != 0:
        raise ValueError(f"tile_h={tile_h} must divide H={H}")
    th = tile_h
    nt = H // th

    # NHWC activations, channels pre-padded to nfp so the residual add and the
    # output stores are lane-dense with no per-step concat in the kernel.
    x = jnp.transpose(x_nchw, (0, 2, 3, 1)).astype(jnp.float32)
    x = _pad_to(x, (N, H, W, nfp))

    # Fold the BN scales into the conv weights (per output channel).
    s1, b1 = _bn_fold(params["g1"], params["be1"], params["m1"], params["v1"])
    s2, b2 = _bn_fold(params["g2"], params["be2"], params["m2"], params["v2"])
    s3, b3 = _bn_fold(params["g3"], params["be3"], params["m3"], params["v3"])

    w1m = _pad_to((params["w1"].reshape(width, ni) * s1[:, None]).T,
                  (nfp, wp)).astype(jnp.bfloat16)
    w2f = params["w2"] * s2[:, None, None, None]                   # (o,i,ky,kx)
    w2t = _pad_to(jnp.transpose(w2f, (2, 3, 1, 0)), (3, 3, wp, wp))  # (ky,kx,in,out)
    w2m = jnp.transpose(w2t, (0, 2, 1, 3)).reshape(3, wp, 3 * wp).astype(jnp.bfloat16)
    w3m = _pad_to((params["w3"].reshape(nf, width) * s3[:, None]).T,
                  (wp, nfp)).astype(jnp.bfloat16)
    b1p = _pad_to(b1.reshape(1, -1), (1, wp)).astype(jnp.float32)
    b2p = _pad_to(b2.reshape(1, -1), (1, wp)).astype(jnp.float32)
    b3p = _pad_to(b3.reshape(1, -1), (1, nfp)).astype(jnp.float32)

    def const(*shape):
        return pl.BlockSpec(shape, lambda n, i: (0,) * len(shape))

    out = pl.pallas_call(
        _td_bottleneck_kernel,
        out_shape=jax.ShapeDtypeStruct((N, H, W, nfp), jnp.float32),
        grid_spec=pltpu.PrefetchScalarGridSpec(
            num_scalar_prefetch=0,
            grid=(N, nt),
            in_specs=[
                pl.BlockSpec((1, th, W, nfp), lambda n, i: (n, i, 0, 0)),
                pl.BlockSpec((1, 1, W, nfp),
                             lambda n, i: (n, jnp.maximum(i * th - 1, 0), 0, 0)),
                pl.BlockSpec((1, 1, W, nfp),
                             lambda n, i: (n, jnp.minimum((i + 1) * th, H - 1), 0, 0)),
                const(nfp, wp), const(1, wp),
                const(3, wp, 3 * wp), const(1, wp),
                const(wp, nfp), const(1, nfp),
            ],
            out_specs=pl.BlockSpec((1, th, W, nfp), lambda n, i: (n, i, 0, 0)),
            scratch_shapes=[pltpu.VMEM((th + 2, W, wp), jnp.bfloat16)],
        ),
        compiler_params=pltpu.CompilerParams(
            dimension_semantics=("parallel", "parallel"),
            vmem_limit_bytes=vmem_limit,
        ),
    )(x, x, x, w1m, b1p, w2m, b2p, w3m, b3p)

    if nfp != nf:
        out = out[..., :nf]
    return jnp.transpose(out, (0, 3, 1, 2))                  # back to NCHW


# ----------------------------- parameters -----------------------------

def init_params(key, ni, nf):
    width = ni // 4  # TDBottleNeck.expansion = 4
    ks = jax.random.split(key, 6)
    # fastai fv.conv2d: bias=False, padding=ks//2
    w1 = 0.1 * jax.random.normal(ks[0], (width, ni, 1, 1), jnp.float32)   # OIHW
    w2 = 0.1 * jax.random.normal(ks[1], (width, width, 3, 3), jnp.float32)
    w3 = 0.1 * jax.random.normal(ks[2], (nf, width, 1, 1), jnp.float32)

    def bn_params(k, c):
        k1, k2, k3, k4 = jax.random.split(k, 4)
        g = 1.0 + 0.1 * jax.random.normal(k1, (c,), jnp.float32)
        b = 0.1 * jax.random.normal(k2, (c,), jnp.float32)
        m = 0.1 * jax.random.normal(k3, (c,), jnp.float32)
        v = 1.0 + 0.1 * jax.random.uniform(k4, (c,), jnp.float32)
        return g, b, m, v

    g1, be1, m1, v1 = bn_params(ks[3], width)
    g2, be2, m2, v2 = bn_params(ks[4], width)
    g3, be3, m3, v3 = bn_params(ks[5], nf)
    return dict(w1=w1, w2=w2, w3=w3,
                g1=g1, be1=be1, m1=m1, v1=v1,
                g2=g2, be2=be2, m2=m2, v2=v2,
                g3=g3, be3=be3, m3=m3, v3=v3)


# ----------------------------- pure-JAX reference -----------------------------

def ref_forward(x_nchw, params):
    x = jnp.transpose(x_nchw, (0, 2, 3, 1)).astype(jnp.float32)
    dn = ('NHWC', 'OIHW', 'NHWC')

    def bn(y, g, b, m, v):
        return (y - m) / jnp.sqrt(v + EPS) * g + b

    h = lax.conv_general_dilated(x, params["w1"], (1, 1), 'VALID',
                                 dimension_numbers=dn,
                                 precision=lax.Precision.HIGHEST)
    h = jax.nn.relu(bn(h, params["g1"], params["be1"], params["m1"], params["v1"]))
    h = lax.conv_general_dilated(h, params["w2"], (1, 1), ((1, 1), (1, 1)),
                                 dimension_numbers=dn,
                                 precision=lax.Precision.HIGHEST)
    h = jax.nn.relu(bn(h, params["g2"], params["be2"], params["m2"], params["v2"]))
    h = lax.conv_general_dilated(h, params["w3"], (1, 1), 'VALID',
                                 dimension_numbers=dn,
                                 precision=lax.Precision.HIGHEST)
    h = bn(h, params["g3"], params["be3"], params["m3"], params["v3"])
    h = jax.nn.relu(h + x)
    return jnp.transpose(h, (0, 3, 1, 2))


# ----------------------------- main -----------------------------

if __name__ == "__main__":
    N, ni, H, W = 2, 16, 16, 16
    nf = ni  # residual `out += identity` requires nf == ni when upsample is None

    key = jax.random.PRNGKey(0)
    kx, kp = jax.random.split(key)
    x = jax.random.normal(kx, (N, ni, H, W), jnp.float32)    # NCHW like PyTorch
    params = init_params(kp, ni, nf)

    ref = jax.block_until_ready(ref_forward(x, params))

    # Run twice: auto-picked tile height (whole image fits in VMEM here) and an
    # explicit 2-tile split that exercises the row-halo path across tiles.
    for th in (None, 8):
        out = jax.block_until_ready(td_bottleneck_forward(x, params, tile_h=th))
        assert out.shape == (N, nf, H, W), out.shape
        err = float(jnp.max(jnp.abs(out - ref)))
        assert err < 1e-2, f"tile_h={th}: max abs err {err}"
    print("KERNEL_OK")
</pallas_src>

<mosaic_0001>
module attributes {stable_mosaic.version = 11 : i64} {
  func.func @_td_bottleneck_kernel(%arg0: i32, %arg1: i32, %arg2: memref<1x16x16x128xf32, #tpu.memory_space<vmem>>, %arg3: memref<1x1x16x128xf32, #tpu.memory_space<vmem>>, %arg4: memref<1x1x16x128xf32, #tpu.memory_space<vmem>>, %arg5: memref<128x128xbf16, #tpu.memory_space<vmem>>, %arg6: memref<1x128xf32, #tpu.memory_space<vmem>>, %arg7: memref<3x128x384xbf16, #tpu.memory_space<vmem>>, %arg8: memref<1x128xf32, #tpu.memory_space<vmem>>, %arg9: memref<128x128xbf16, #tpu.memory_space<vmem>>, %arg10: memref<1x128xf32, #tpu.memory_space<vmem>>, %arg11: memref<1x16x16x128xf32, #tpu.memory_space<vmem>>, %arg12: memref<18x16x128xbf16, #tpu.memory_space<vmem>>) attributes {dimension_semantics = [#tpu.dimension_semantics<parallel>, #tpu.dimension_semantics<parallel>], iteration_bounds = array<i64: 2, 1>, scalar_prefetch = 0 : i64, scratch_operands = 1 : i64, tpu.core_type = #tpu.core_type<tc>, window_params = [{transform_indices = @transform_0, window_bounds = array<i64: 1, 16, 16, 128>}, {transform_indices = @transform_1, window_bounds = array<i64: 1, 1, 16, 128>}, {transform_indices = @transform_2, window_bounds = array<i64: 1, 1, 16, 128>}, {pipeline_mode = #tpu.pipeline_mode<synchronous>, transform_indices = @transform_3, window_bounds = array<i64: 128, 128>}, {pipeline_mode = #tpu.pipeline_mode<synchronous>, transform_indices = @transform_4, window_bounds = array<i64: 1, 128>}, {pipeline_mode = #tpu.pipeline_mode<synchronous>, transform_indices = @transform_5, window_bounds = array<i64: 3, 128, 384>}, {pipeline_mode = #tpu.pipeline_mode<synchronous>, transform_indices = @transform_6, window_bounds = array<i64: 1, 128>}, {pipeline_mode = #tpu.pipeline_mode<synchronous>, transform_indices = @transform_7, window_bounds = array<i64: 128, 128>}, {pipeline_mode = #tpu.pipeline_mode<synchronous>, transform_indices = @transform_8, window_bounds = array<i64: 1, 128>}, {transform_indices = @transform_9, window_bounds = array<i64: 1, 16, 16, 128>}]} {
    %c0 = arith.constant 0 : index
    %c0_0 = arith.constant 0 : index
    %0 = vector.load %arg5[%c0, %c0_0] : memref<128x128xbf16, #tpu.memory_space<vmem>>, vector<128x128xbf16>
    %c0_1 = arith.constant 0 : index
    %c0_2 = arith.constant 0 : index
    %1 = vector.load %arg6[%c0_1, %c0_2] : memref<1x128xf32, #tpu.memory_space<vmem>>, vector<1x128xf32>
    %c0_3 = arith.constant 0 : index
    %c0_4 = arith.constant 0 : index
    %c0_5 = arith.constant 0 : index
    %c0_6 = arith.constant 0 : index
    %2 = vector.load %arg2[%c0_3, %c0_4, %c0_5, %c0_6] : memref<1x16x16x128xf32, #tpu.memory_space<vmem>>, vector<1x16x16x128xf32>
    %3 = vector.shape_cast %2 : vector<1x16x16x128xf32> to vector<16x16x128xf32>
    %4 = vector.shape_cast %3 : vector<16x16x128xf32> to vector<256x128xf32>
    %5 = arith.truncf %4 : vector<256x128xf32> to vector<256x128xbf16>
    %cst = arith.constant dense<0.000000e+00> : vector<256x128xf32>
    %6 = tpu.matmul %5, %0, %cst {dimension_numbers = #tpu.dot_dimension_numbers<[1], [0], [0], [1], [0, 0, 1, 1], [], []>} : vector<256x128xbf16>, vector<128x128xbf16>, vector<256x128xf32> -> vector<256x128xf32>
    %7 = vector.broadcast %1 : vector<1x128xf32> to vector<256x128xf32>
    %8 = arith.addf %6, %7 : vector<256x128xf32>
    %cst_7 = arith.constant 0.000000e+00 : f32
    %9 = vector.broadcast %cst_7 : f32 to vector<256x128xf32>
    %10 = arith.maximumf %8, %9 : vector<256x128xf32>
    %11 = vector.shape_cast %10 : vector<256x128xf32> to vector<16x16x128xf32>
    %12 = arith.truncf %11 : vector<16x16x128xf32> to vector<16x16x128xbf16>
    %c1 = arith.constant 1 : index
    %c0_8 = arith.constant 0 : index
    %c0_9 = arith.constant 0 : index
    %13 = vector.load %arg12[%c1, %c0_8, %c0_9] : memref<18x16x128xbf16, #tpu.memory_space<vmem>>, vector<16x16x128xbf16>
    tpu.vector_store %arg12[%c1, %c0_8, %c0_9], %12 {strides = array<i32>} : memref<18x16x128xbf16, #tpu.memory_space<vmem>>, vector<16x16x128xbf16>,
    %c0_10 = arith.constant 0 : index
    %c0_11 = arith.constant 0 : index
    %c0_12 = arith.constant 0 : index
    %c0_13 = arith.constant 0 : index
    %14 = vector.load %arg3[%c0_10, %c0_11, %c0_12, %c0_13] : memref<1x1x16x128xf32, #tpu.memory_space<vmem>>, vector<1x1x16x128xf32>
    %15 = vector.shape_cast %14 : vector<1x1x16x128xf32> to vector<16x128xf32>
    %16 = arith.truncf %15 : vector<16x128xf32> to vector<16x128xbf16>
    %cst_14 = arith.constant dense<0.000000e+00> : vector<16x128xf32>
    %17 = tpu.matmul %16, %0, %cst_14 {dimension_numbers = #tpu.dot_dimension_numbers<[1], [0], [0], [1], [0, 0, 1, 1], [], []>} : vector<16x128xbf16>, vector<128x128xbf16>, vector<16x128xf32> -> vector<16x128xf32>
    %18 = vector.broadcast %1 : vector<1x128xf32> to vector<16x128xf32>
    %19 = arith.addf %17, %18 : vector<16x128xf32>
    %c0_i32 = arith.constant 0 : i32
    %20 = arith.cmpi sgt, %arg1, %c0_i32 : i32
    %cst_15 = arith.constant 0.000000e+00 : f32
    %21 = vector.broadcast %cst_15 : f32 to vector<16x128xf32>
    %22 = arith.maximumf %19, %21 : vector<16x128xf32>
    %cst_16 = arith.constant 0.000000e+00 : f32
    %23 = vector.broadcast %cst_16 : f32 to vector<16x128xf32>
    %24 = arith.select %20, %22, %23 : vector<16x128xf32>
    %25 = arith.truncf %24 : vector<16x128xf32> to vector<16x128xbf16>
    %c0_17 = arith.constant 0 : index
    %c0_18 = arith.constant 0 : index
    %c0_19 = arith.constant 0 : index
    %26 = vector.load %arg12[%c0_17, %c0_18, %c0_19] : memref<18x16x128xbf16, #tpu.memory_space<vmem>>, vector<1x16x128xbf16>
    %27 = vector.shape_cast %26 : vector<1x16x128xbf16> to vector<16x128xbf16>
    %28 = vector.shape_cast %25 : vector<16x128xbf16> to vector<1x16x128xbf16>
    tpu.vector_store %arg12[%c0_17, %c0_18, %c0_19], %28 {strides = array<i32>} : memref<18x16x128xbf16, #tpu.memory_space<vmem>>, vector<1x16x128xbf16>,
    %c0_20 = arith.constant 0 : index
    %c0_21 = arith.constant 0 : index
    %c0_22 = arith.constant 0 : index
    %c0_23 = arith.constant 0 : index
    %29 = vector.load %arg4[%c0_20, %c0_21, %c0_22, %c0_23] : memref<1x1x16x128xf32, #tpu.memory_space<vmem>>, vector<1x1x16x128xf32>
    %30 = vector.shape_cast %29 : vector<1x1x16x128xf32> to vector<16x128xf32>
    %31 = arith.truncf %30 : vector<16x128xf32> to vector<16x128xbf16>
    %cst_24 = arith.constant dense<0.000000e+00> : vector<16x128xf32>
    %32 = tpu.matmul %31, %0, %cst_24 {dimension_numbers = #tpu.dot_dimension_numbers<[1], [0], [0], [1], [0, 0, 1, 1], [], []>} : vector<16x128xbf16>, vector<128x128xbf16>, vector<16x128xf32> -> vector<16x128xf32>
    %33 = vector.broadcast %1 : vector<1x128xf32> to vector<16x128xf32>
    %34 = arith.addf %32, %33 : vector<16x128xf32>
    %c0_i32_25 = arith.constant 0 : i32
    %35 = arith.cmpi slt, %arg1, %c0_i32_25 : i32
    %cst_26 = arith.constant 0.000000e+00 : f32
    %36 = vector.broadcast %cst_26 : f32 to vector<16x128xf32>
    %37 = arith.maximumf %34, %36 : vector<16x128xf32>
    %cst_27 = arith.constant 0.000000e+00 : f32
    %38 = vector.broadcast %cst_27 : f32 to vector<16x128xf32>
    %39 = arith.select %35, %37, %38 : vector<16x128xf32>
    %40 = arith.truncf %39 : vector<16x128xf32> to vector<16x128xbf16>
    %c17 = arith.constant 17 : index
    %c0_28 = arith.constant 0 : index
    %c0_29 = arith.constant 0 : index
    %41 = vector.load %arg12[%c17, %c0_28, %c0_29] : memref<18x16x128xbf16, #tpu.memory_space<vmem>>, vector<1x16x128xbf16>
    %42 = vector.shape_cast %41 : vector<1x16x128xbf16> to vector<16x128xbf16>
    %43 = vector.shape_cast %40 : vector<16x128xbf16> to vector<1x16x128xbf16>
    tpu.vector_store %arg12[%c17, %c0_28, %c0_29], %43 {strides = array<i32>} : memref<18x16x128xbf16, #tpu.memory_space<vmem>>, vector<1x16x128xbf16>,
    %44 = tpu.iota {dimensions = array<i32: 0>} : vector<256x1xi32>
    %c16_i32 = arith.constant 16 : i32
    %c0_i32_30 = arith.constant 0 : i32
    %45 = arith.cmpi eq, %c16_i32, %c0_i32_30 : i32
    %c1_i32 = arith.constant 1 : i32
    %46 = arith.select %45, %c1_i32, %c16_i32 : i32
    %47 = vector.broadcast %46 : i32 to vector<256x1xi32>
    %48 = arith.remsi %44, %47 : vector<256x1xi32>
    %c0_i32_31 = arith.constant 0 : i32
    %49 = vector.broadcast %c0_i32_31 : i32 to vector<256x1xi32>
    %50 = arith.cmpi ne, %48, %49 : vector<256x1xi32>
    %c0_i32_32 = arith.constant 0 : i32
    %51 = vector.broadcast %c0_i32_32 : i32 to vector<256x1xi32>
    %52 = arith.cmpi slt, %48, %51 : vector<256x1xi32>
    %c0_i32_33 = arith.constant 0 : i32
    %53 = arith.cmpi slt, %46, %c0_i32_33 : i32
    %54 = vector.broadcast %53 : i1 to vector<256x1xi1>
    %55 = vector.broadcast %54 : vector<256x1xi1> to vector<256x1xi1>
    %56 = arith.xori %52, %55 : vector<256x1xi1>
    %57 = arith.andi %56, %50 : vector<256x1xi1>
    %58 = vector.broadcast %46 : i32 to vector<256x1xi32>
    %59 = arith.addi %48, %58 : vector<256x1xi32>
    %60 = arith.select %57, %59, %48 : vector<256x1xi1>, vector<256x1xi32>
    %c0_i32_34 = arith.constant 0 : i32
    %61 = vector.broadcast %c0_i32_34 : i32 to vector<256x1xi32>
    %62 = arith.cmpi ne, %60, %61 : vector<256x1xi32>
    %c15_i32 = arith.constant 15 : i32
    %63 = vector.broadcast %c15_i32 : i32 to vector<256x1xi32>
    %64 = arith.cmpi ne, %60, %63 : vector<256x1xi32>
    %cst_35 = arith.constant 0.000000e+00 : f32
    %65 = vector.broadcast %cst_35 : f32 to vector<256x128xf32>
    %c0_36 = arith.constant 0 : index
    %c0_37 = arith.constant 0 : index
    %c0_38 = arith.constant 0 : index
    %66 = vector.load %arg12[%c0_36, %c0_37, %c0_38] : memref<18x16x128xbf16, #tpu.memory_space<vmem>>, vector<16x16x128xbf16>
    %67 = vector.shape_cast %66 : vector<16x16x128xbf16> to vector<256x128xbf16>
    %c0_39 = arith.constant 0 : index
    %c0_40 = arith.constant 0 : index
    %c0_41 = arith.constant 0 : index
    %68 = vector.load %arg7[%c0_39, %c0_40, %c0_41] : memref<3x128x384xbf16, #tpu.memory_space<vmem>>, vector<1x128x384xbf16>
    %69 = vector.shape_cast %68 : vector<1x128x384xbf16> to vector<128x384xbf16>
    %cst_42 = arith.constant dense<0.000000e+00> : vector<256x384xf32>
    %70 = tpu.matmul %67, %69, %cst_42 {dimension_numbers = #tpu.dot_dimension_numbers<[1], [0], [0], [1], [0, 0, 1, 1], [], []>} : vector<256x128xbf16>, vector<128x384xbf16>, vector<256x384xf32> -> vector<256x384xf32>
    %71 = vector.extract_strided_slice %70 {offsets = [0, 128], sizes = [256, 128], strides = [1, 1]} : vector<256x384xf32> to vector<256x128xf32>
    %72 = arith.addf %65, %71 : vector<256x128xf32>
    %73 = vector.extract_strided_slice %70 {offsets = [0, 0], sizes = [256, 128], strides = [1, 1]} : vector<256x384xf32> to vector<256x128xf32>
    %c1_i32_43 = arith.constant 1 : i32
    %74 = tpu.dynamic_rotate %73 by %c1_i32_43 dim 0 : vector<256x128xf32>, i32 -> vector<256x128xf32>
    %cst_44 = arith.constant 0.000000e+00 : f32
    %75 = vector.shape_cast %62 : vector<256x1xi1> to vector<256x1xi1>
    %76 = vector.broadcast %75 : vector<256x1xi1> to vector<256x128xi1>
    %77 = vector.broadcast %cst_44 : f32 to vector<256x128xf32>
    %78 = arith.select %76, %74, %77 : vector<256x128xi1>, vector<256x128xf32>
    %79 = arith.addf %72, %78 : vector<256x128xf32>
    %80 = vector.extract_strided_slice %70 {offsets = [0, 256], sizes = [256, 128], strides = [1, 1]} : vector<256x384xf32> to vector<256x128xf32>
    %c255_i32 = arith.constant 255 : i32
    %81 = tpu.dynamic_rotate %80 by %c255_i32 dim 0 : vector<256x128xf32>, i32 -> vector<256x128xf32>
    %cst_45 = arith.constant 0.000000e+00 : f32
    %82 = vector.shape_cast %64 : vector<256x1xi1> to vector<256x1xi1>
    %83 = vector.broadcast %82 : vector<256x1xi1> to vector<256x128xi1>
    %84 = vector.broadcast %cst_45 : f32 to vector<256x128xf32>
    %85 = arith.select %83, %81, %84 : vector<256x128xi1>, vector<256x128xf32>
    %86 = arith.addf %79, %85 : vector<256x128xf32>
    %c1_46 = arith.constant 1 : index
    %c0_47 = arith.constant 0 : index
    %c0_48 = arith.constant 0 : index
    %87 = vector.load %arg12[%c1_46, %c0_47, %c0_48] : memref<18x16x128xbf16, #tpu.memory_space<vmem>>, vector<16x16x128xbf16>
    %88 = vector.shape_cast %87 : vector<16x16x128xbf16> to vector<256x128xbf16>
    %c1_49 = arith.constant 1 : index
    %c0_50 = arith.constant 0 : index
    %c0_51 = arith.constant 0 : index
    %89 = vector.load %arg7[%c1_49, %c0_50, %c0_51] : memref<3x128x384xbf16, #tpu.memory_space<vmem>>, vector<1x128x384xbf16>
    %90 = vector.shape_cast %89 : vector<1x128x384xbf16> to vector<128x384xbf16>
    %cst_52 = arith.constant dense<0.000000e+00> : vector<256x384xf32>
    %91 = tpu.matmul %88, %90, %cst_52 {dimension_numbers = #tpu.dot_dimension_numbers<[1], [0], [0], [1], [0, 0, 1, 1], [], []>} : vector<256x128xbf16>, vector<128x384xbf16>, vector<256x384xf32> -> vector<256x384xf32>
    %92 = vector.extract_strided_slice %91 {offsets = [0, 128], sizes = [256, 128], strides = [1, 1]} : vector<256x384xf32> to vector<256x128xf32>
    %93 = arith.addf %86, %92 : vector<256x128xf32>
    %94 = vector.extract_strided_slice %91 {offsets = [0, 0], sizes = [256, 128], strides = [1, 1]} : vector<256x384xf32> to vector<256x128xf32>
    %c1_i32_53 = arith.constant 1 : i32
    %95 = tpu.dynamic_rotate %94 by %c1_i32_53 dim 0 : vector<256x128xf32>, i32 -> vector<256x128xf32>
    %cst_54 = arith.constant 0.000000e+00 : f32
    %96 = vector.shape_cast %62 : vector<256x1xi1> to vector<256x1xi1>
    %97 = vector.broadcast %96 : vector<256x1xi1> to vector<256x128xi1>
    %98 = vector.broadcast %cst_54 : f32 to vector<256x128xf32>
    %99 = arith.select %97, %95, %98 : vector<256x128xi1>, vector<256x128xf32>
    %100 = arith.addf %93, %99 : vector<256x128xf32>
    %101 = vector.extract_strided_slice %91 {offsets = [0, 256], sizes = [256, 128], strides = [1, 1]} : vector<256x384xf32> to vector<256x128xf32>
    %c255_i32_55 = arith.constant 255 : i32
    %102 = tpu.dynamic_rotate %101 by %c255_i32_55 dim 0 : vector<256x128xf32>, i32 -> vector<256x128xf32>
    %cst_56 = arith.constant 0.000000e+00 : f32
    %103 = vector.shape_cast %64 : vector<256x1xi1> to vector<256x1xi1>
    %104 = vector.broadcast %103 : vector<256x1xi1> to vector<256x128xi1>
    %105 = vector.broadcast %cst_56 : f32 to vector<256x128xf32>
    %106 = arith.select %104, %102, %105 : vector<256x128xi1>, vector<256x128xf32>
    %107 = arith.addf %100, %106 : vector<256x128xf32>
    %c2 = arith.constant 2 : index
    %c0_57 = arith.constant 0 : index
    %c0_58 = arith.constant 0 : index
    %108 = vector.load %arg12[%c2, %c0_57, %c0_58] : memref<18x16x128xbf16, #tpu.memory_space<vmem>>, vector<16x16x128xbf16>
    %109 = vector.shape_cast %108 : vector<16x16x128xbf16> to vector<256x128xbf16>
    %c2_59 = arith.constant 2 : index
    %c0_60 = arith.constant 0 : index
    %c0_61 = arith.constant 0 : index
    %110 = vector.load %arg7[%c2_59, %c0_60, %c0_61] : memref<3x128x384xbf16, #tpu.memory_space<vmem>>, vector<1x128x384xbf16>
    %111 = vector.shape_cast %110 : vector<1x128x384xbf16> to vector<128x384xbf16>
    %cst_62 = arith.constant dense<0.000000e+00> : vector<256x384xf32>
    %112 = tpu.matmul %109, %111, %cst_62 {dimension_numbers = #tpu.dot_dimension_numbers<[1], [0], [0], [1], [0, 0, 1, 1], [], []>} : vector<256x128xbf16>, vector<128x384xbf16>, vector<256x384xf32> -> vector<256x384xf32>
    %113 = vector.extract_strided_slice %112 {offsets = [0, 128], sizes = [256, 128], strides = [1, 1]} : vector<256x384xf32> to vector<256x128xf32>
    %114 = arith.addf %107, %113 : vector<256x128xf32>
    %115 = vector.extract_strided_slice %112 {offsets = [0, 0], sizes = [256, 128], strides = [1, 1]} : vector<256x384xf32> to vector<256x128xf32>
    %c1_i32_63 = arith.constant 1 : i32
    %116 = tpu.dynamic_rotate %115 by %c1_i32_63 dim 0 : vector<256x128xf32>, i32 -> vector<256x128xf32>
    %cst_64 = arith.constant 0.000000e+00 : f32
    %117 = vector.shape_cast %62 : vector<256x1xi1> to vector<256x1xi1>
    %118 = vector.broadcast %117 : vector<256x1xi1> to vector<256x128xi1>
    %119 = vector.broadcast %cst_64 : f32 to vector<256x128xf32>
    %120 = arith.select %118, %116, %119 : vector<256x128xi1>, vector<256x128xf32>
    %121 = arith.addf %114, %120 : vector<256x128xf32>
    %122 = vector.extract_strided_slice %112 {offsets = [0, 256], sizes = [256, 128], strides = [1, 1]} : vector<256x384xf32> to vector<256x128xf32>
    %c255_i32_65 = arith.constant 255 : i32
    %123 = tpu.dynamic_rotate %122 by %c255_i32_65 dim 0 : vector<256x128xf32>, i32 -> vector<256x128xf32>
    %cst_66 = arith.constant 0.000000e+00 : f32
    %124 = vector.shape_cast %64 : vector<256x1xi1> to vector<256x1xi1>
    %125 = vector.broadcast %124 : vector<256x1xi1> to vector<256x128xi1>
    %126 = vector.broadcast %cst_66 : f32 to vector<256x128xf32>
    %127 = arith.select %125, %123, %126 : vector<256x128xi1>, vector<256x128xf32>
    %128 = arith.addf %121, %127 : vector<256x128xf32>
    %c0_67 = arith.constant 0 : index
    %c0_68 = arith.constant 0 : index
    %129 = vector.load %arg8[%c0_67, %c0_68] : memref<1x128xf32, #tpu.memory_space<vmem>>, vector<1x128xf32>
    %130 = vector.broadcast %129 : vector<1x128xf32> to vector<256x128xf32>
    %131 = arith.addf %128, %130 : vector<256x128xf32>
    %cst_69 = arith.constant 0.000000e+00 : f32
    %132 = vector.broadcast %cst_69 : f32 to vector<256x128xf32>
    %133 = arith.maximumf %131, %132 : vector<256x128xf32>
    %134 = arith.truncf %133 : vector<256x128xf32> to vector<256x128xbf16>
    %c0_70 = arith.constant 0 : index
    %c0_71 = arith.constant 0 : index
    %135 = vector.load %arg9[%c0_70, %c0_71] : memref<128x128xbf16, #tpu.memory_space<vmem>>, vector<128x128xbf16>
    %cst_72 = arith.constant dense<0.000000e+00> : vector<256x128xf32>
    %136 = tpu.matmul %134, %135, %cst_72 {dimension_numbers = #tpu.dot_dimension_numbers<[1], [0], [0], [1], [0, 0, 1, 1], [], []>} : vector<256x128xbf16>, vector<128x128xbf16>, vector<256x128xf32> -> vector<256x128xf32>
    %c0_73 = arith.constant 0 : index
    %c0_74 = arith.constant 0 : index
    %137 = vector.load %arg10[%c0_73, %c0_74] : memref<1x128xf32, #tpu.memory_space<vmem>>, vector<1x128xf32>
    %138 = vector.broadcast %137 : vector<1x128xf32> to vector<256x128xf32>
    %139 = arith.addf %136, %138 : vector<256x128xf32>
    %140 = arith.addf %139, %4 : vector<256x128xf32>
    %cst_75 = arith.constant 0.000000e+00 : f32
    %141 = vector.broadcast %cst_75 : f32 to vector<256x128xf32>
    %142 = arith.maximumf %140, %141 : vector<256x128xf32>
    %143 = vector.shape_cast %142 : vector<256x128xf32> to vector<16x16x128xf32>
    %c0_76 = arith.constant 0 : index
    %c0_77 = arith.constant 0 : index
    %c0_78 = arith.constant 0 : index
    %c0_79 = arith.constant 0 : index
    %144 = vector.load %arg11[%c0_76, %c0_77, %c0_78, %c0_79] : memref<1x16x16x128xf32, #tpu.memory_space<vmem>>, vector<1x16x16x128xf32>
    %145 = vector.shape_cast %144 : vector<1x16x16x128xf32> to vector<16x16x128xf32>
    %146 = vector.shape_cast %143 : vector<16x16x128xf32> to vector<1x16x16x128xf32>
    tpu.vector_store %arg11[%c0_76, %c0_77, %c0_78, %c0_79], %146 {strides = array<i32>} : memref<1x16x16x128xf32, #tpu.memory_space<vmem>>, vector<1x16x16x128xf32>,
    return
  }
  func.func @transform_0(%arg0: i32, %arg1: i32) -> (i32, i32, i32, i32) {
    %c0_i32 = arith.constant 0 : i32
    %c0_i32_0 = arith.constant 0 : i32
    %c0_i32_1 = arith.constant 0 : i32
    return %arg0, %arg1, %c0_i32, %c0_i32_0 : i32, i32, i32, i32
  }
  func.func @transform_1(%arg0: i32, %arg1: i32) -> (i32, i32, i32, i32) {
    %c16_i32 = arith.constant 16 : i32
    %0 = arith.muli %arg1, %c16_i32 : i32
    %c1_i32 = arith.constant 1 : i32
    %1 = arith.subi %0, %c1_i32 : i32
    %c0_i32 = arith.constant 0 : i32
    %2 = arith.maxsi %1, %c0_i32 : i32
    %c0_i32_0 = arith.constant 0 : i32
    %c0_i32_1 = arith.constant 0 : i32
    %c0_i32_2 = arith.constant 0 : i32
    return %arg0, %2, %c0_i32_0, %c0_i32_1 : i32, i32, i32, i32
  }
  func.func @transform_2(%arg0: i32, %arg1: i32) -> (i32, i32, i32, i32) {
    %c1_i32 = arith.constant 1 : i32
    %0 = arith.addi %arg1, %c1_i32 : i32
    %c16_i32 = arith.constant 16 : i32
    %1 = arith.muli %0, %c16_i32 : i32
    %c15_i32 = arith.constant 15 : i32
    %2 = arith.minsi %1, %c15_i32 : i32
    %c0_i32 = arith.constant 0 : i32
    %c0_i32_0 = arith.constant 0 : i32
    %c0_i32_1 = arith.constant 0 : i32
    return %arg0, %2, %c0_i32, %c0_i32_0 : i32, i32, i32, i32
  }
  func.func @transform_3(%arg0: i32, %arg1: i32) -> (i32, i32) {
    %c0_i32 = arith.constant 0 : i32
    %c0_i32_0 = arith.constant 0 : i32
    %c0_i32_1 = arith.constant 0 : i32
    return %c0_i32, %c0_i32_0 : i32, i32
  }
  func.func @transform_4(%arg0: i32, %arg1: i32) -> (i32, i32) {
    %c0_i32 = arith.constant 0 : i32
    %c0_i32_0 = arith.constant 0 : i32
    %c0_i32_1 = arith.constant 0 : i32
    return %c0_i32, %c0_i32_0 : i32, i32
  }
  func.func @transform_5(%arg0: i32, %arg1: i32) -> (i32, i32, i32) {
    %c0_i32 = arith.constant 0 : i32
    %c0_i32_0 = arith.constant 0 : i32
    %c0_i32_1 = arith.constant 0 : i32
    %c0_i32_2 = arith.constant 0 : i32
    return %c0_i32, %c0_i32_0, %c0_i32_1 : i32, i32, i32
  }
  func.func @transform_6(%arg0: i32, %arg1: i32) -> (i32, i32) {
    %c0_i32 = arith.constant 0 : i32
    %c0_i32_0 = arith.constant 0 : i32
    %c0_i32_1 = arith.constant 0 : i32
    return %c0_i32, %c0_i32_0 : i32, i32
  }
  func.func @transform_7(%arg0: i32, %arg1: i32) -> (i32, i32) {
    %c0_i32 = arith.constant 0 : i32
    %c0_i32_0 = arith.constant 0 : i32
    %c0_i32_1 = arith.constant 0 : i32
    return %c0_i32, %c0_i32_0 : i32, i32
  }
  func.func @transform_8(%arg0: i32, %arg1: i32) -> (i32, i32) {
    %c0_i32 = arith.constant 0 : i32
    %c0_i32_0 = arith.constant 0 : i32
    %c0_i32_1 = arith.constant 0 : i32
    return %c0_i32, %c0_i32_0 : i32, i32
  }
  func.func @transform_9(%arg0: i32, %arg1: i32) -> (i32, i32, i32, i32) {
    %c0_i32 = arith.constant 0 : i32
    %c0_i32_0 = arith.constant 0 : i32
    %c0_i32_1 = arith.constant 0 : i32
    return %arg0, %arg1, %c0_i32, %c0_i32_0 : i32, i32, i32, i32
  }
}

</mosaic_0001>

<bundles_post_ra>
// kernel: tpu_custom_call.1
= control target key start
LH: loop header
LB: loop body
LE: loop exit
PB: predicated region body
PF: predicated region fallthrough
CT: control target
= control target key end

     0   :  { %s7794_s0 = inlined_call_operand.hbm [shape: f32[2,16,16,128], index: 0, kind: input, shape index: {}]   ;;  %s7795_s1 = inlined_call_operand.hbm [shape: f32[2,16,16,128], index: 1, kind: input, shape index: {}]   ;;  %s7796_s2 = inlined_call_operand.hbm [shape: f32[2,16,16,128], index: 2, kind: input, shape index: {}]   ;;  %s7797_s3 = inlined_call_operand.hbm [shape: bf16[128,128], index: 3, kind: input, shape index: {}]   ;;  %s7798_s4 = inlined_call_operand.vmem [shape: f32[1,128], index: 4, kind: input, shape index: {}]   ;;  %s7799_s5 = inlined_call_operand.hbm [shape: bf16[3,128,384], index: 5, kind: input, shape index: {}]   ;;  %s7800_s6 = inlined_call_operand.vmem [shape: f32[1,128], index: 6, kind: input, shape index: {}]   ;;  %s7801_s7 = inlined_call_operand.hbm [shape: bf16[128,128], index: 7, kind: input, shape index: {}]   ;;  %s7802_s8 = inlined_call_operand.vmem [shape: f32[1,128], index: 8, kind: input, shape index: {}]   ;;  %s7803_s9 = inlined_call_operand.hbm [shape: f32[2,16,16,128], index: 9, kind: output, shape index: {}]  }
   0x1   :  { %7901 = sst [smem:[#allocation87_spill]] %s7795_s1 }
   0x2   :  { %7902 = sst [smem:[#allocation88_spill]] %s7797_s3 }
   0x3   :  { %7903 = sst [smem:[#allocation89_spill]] %s7799_s5 }
   0x4   :  { %7904 = sst [smem:[#allocation90_spill]] %s7801_s7 }
   0x5   :  { %7905 = sst [smem:[#allocation91_spill]] %s7803_s9 }
   0x6   :  { %14 = vsyncpa [#allocation4], 0 }
   0x7   :  { %16 = vsyncpa [#allocation4 + $0x1], 0 }
   0x8   :  { %17 = vsyncpa [#allocation7], 0 }
   0x9   :  { %19 = vsyncpa [#allocation7 + $0x1], 0 }
   0xa   :  { %20 = vsyncpa [#allocation10], 0 }
   0xb   :  { %21 = vsyncpa [#allocation13], 0 }
   0xc   :  { %22 = vsyncpa [#allocation5], 0 }
   0xd   :  { %24 = vsyncpa [#allocation5 + $0x1], 0  ;;  %s5912_s30 = smov 0   ;;  %s5914_s10 = smov 0  }
   0xe   :  { %s5916_s11 = smov 0   ;;  %s5918_s12 = smov 0  }
   0xf   :  { %s5920_s13 = smov 0   ;;  %s5922_s14 = smov 0  }
  0x10 LB: > { %7906 = sst [smem:[#allocation20_spill]] %s5828_s30  ;;  %s5943_s15 = sadd.s32 4294967295, %s5848_s14   ;;  %s5848_s14 = sphi %s5922_s14, %s30_s14   ;;  %s5844_s13 = sphi %s5920_s13, %s8281_s13   ;;  %s5840_s12 = sphi %s5918_s12, %s8280_s12   ;;  %s5836_s11 = sphi %s5916_s11, %s8279_s11   ;;  %s5832_s10 = sphi %s5914_s10, %s8283_s10   ;;  %s5828_s30 = sphi %s5912_s30, %s8282_s30  }
  0x11   : > { %7907 = sst [smem:[#allocation21_spill]] %s5836_s11  ;;  %s4571_s16 = sadd.s32 4294967294, %s5848_s14  }
  0x12   : > { %7908 = sst [smem:[#allocation22_spill]] %s5840_s12  ;;  %p64_p0 = scmp.ne.s32.totalorder %s5832_s10, %s5828_s30 }
  0x13   : > { %7909 = sst [smem:[#allocation23_spill]] %s5844_s13  ;;  %p65_p1 = scmp.eq.s32.totalorder %s5943_s15, 0 }
  0x14   : > { %p288_p2 = scmp.eq.s32.totalorder %s5943_s15, 1  ;;  %p294_p3 = scmp.eq.s32.totalorder %s4571_s16, 1 }
  0x15   : > { %p5952_p4 = por %p65_p1, %p64_p0  ;;  %p4572_p5 = scmp.ge.s32.totalorder %s5848_s14, 1 }
  0x16   : > { %p5957_p6 = por %p294_p3, %p64_p0  ;;  %p301_p7 = scmp.lt.s32.totalorder %s5848_s14, 3 }
  0x17   : > { %s7913_s3 = sld [smem:[#allocation88_spill]]  ;;  %s5850_s23 = smov [#allocation9]  }
  0x18   : > { %s7911_s18 = scalar_select %p5957_p6, 1, 0 }
  0x19   : > { %p5965_p8 = pnand %p4572_p5, %p301_p7  ;;  %s314_s24 = sshll.u32 %s5850_s23, 4  ;;  %s315_s24 = int_to_ptr.vmem [resolvable:$true] %s314_s24 }
  0x1a   : > { %7912 = sst [smem:[#allocation24_spill]] %s7911_s18  ;;  %s7804_s26 = smov 64  }
  0x1b   : > { %p5434_p9 = pneg %p5965_p8  ;;  %s7805_s27 = smov 4  }
  0x1c   : > { %s42_s28 = sadd.s32 1, %s5844_s13  ;;  %s51_s29 = sadd.s32 1, %s5836_s11 }
  0x1d   : > { %s312_s21 = sshll.u32 %s7913_s3, 4  ;;  %p5973_p10 = pnand %p5434_p9, %p65_p1  ;;  %s313_s21 = int_to_ptr.hbm [resolvable:$true] %s312_s21 }
  0x1e   : > { %p44_p12 = scmp.ge.s32.totalorder %s42_s28, 2  ;;  %p58_p13 = scmp.ne.s32.totalorder %s5836_s11, %s5832_s10 }
  0x1f   : > { %5437 = dma.hbm_to_vmem [thread:$0]  (!%p5973_p10), %s313_s21, 1024, %s315_s24, [#allocation10], %s7804_s26, %s7804_s26, %s7805_s27  }
  0x20   : > { %p59_p0 = scmp.eq.s32.totalorder %s5848_s14, 0  ;;  %s8285_s28 = smov (%p44_p12, %s42_s28), 0 }
  0x21   : > { %7916 = sst [smem:[#allocation25_spill]] %s8285_s28  ;;  %p5992_p5 = por %p288_p2, %p58_p13 }
  0x22   : > { %p60_p3 = por %p59_p0, %p58_p13  ;;  %s46_s19 = ssub.s32 %s5844_s13, %s8285_s28 }
  0x23   : > { %s7917_s16 = scalar_select %p5992_p5, 1, 0 }
  0x24   : > { %p5461_p7 = scmp.lt.s32.totalorder %s5848_s14, 2  ;;  %p49_p9 = scmp.eq.s32.totalorder %s46_s19, 0 }
  0x25   : > { %7918 = sst [smem:[#allocation26_spill]] %s7917_s16  ;;  %s6000_s20 = sand.u32 1, %s5836_s11  }
  0x26   : > { %s6003_s21 = sshll.u32 %s5844_s13, 8  ;;  %p6005_p11 = pnand %p5461_p7, %p60_p3 }
  0x27   : > { %s6010_s24 = scalar_select %p49_p9, %s5836_s11, %s51_s29  }
  0x28   : > { %s390_s26 = sand.u32 1, %s5848_s14   ;;  %s4580_s27 = sshll.u32 %s6000_s20, 4 }
  0x29   : > { %7920 = sst [smem:[#allocation27_spill]] %s6010_s24  ;;  %s394_s30 = scalar_lea.vmem [#allocation6], %s4580_s27 }
  0x2a   : > { %s7921_s1 = sld [smem:[#allocation87_spill]]  ;;  %s408_s16 = sshll.u32 %s394_s30, 4  ;;  %s409_s16 = int_to_ptr.vmem [resolvable:$true] %s408_s16 }
  0x2b   : > { %s6018_s13 = scalar_lea.sflag [#allocation7], %s390_s26  ;;  %s7814_s9 = smov 128  }
  0x2c   : > { %s7816_s12 = smov 8   ;;  %s7922_s5 = sld [smem:[#allocation89_spill]] }
  0x2d   : > { %s6029_s30 = scalar_lea.vmem [#allocation8], %s4580_s27  ;;  %s5855_s26 = smov [#allocation11]  }
  0x2e   : > { %s436_s18 = sshll.u32 %s6029_s30, 4  ;;  %s5857_s11 = smov 12   ;;  %s437_s18 = int_to_ptr.vmem [resolvable:$true] %s436_s18 }
  0x2f   : > { %s7923_s7 = sld [smem:[#allocation90_spill]]  ;;  %s5858_s27 = smov [#allocation12]  }
  0x30   : > { %s405_s28 = scalar_lea.hbm %s7921_s1, %s6003_s21  ;;  %s5856_s1 = smov 192  }
  0x31   : > { %s406_s19 = sshll.u32 %s405_s28, 4  ;;  %s331_s28 = sshll.u32 %s5855_s26, 4  ;;  %s407_s19 = int_to_ptr.hbm [resolvable:$true] %s406_s19  ;;  %s332_s28 = int_to_ptr.vmem [resolvable:$true] %s331_s28 }
  0x32   : > { %5450 = dma.hbm_to_vmem [thread:$0]  (!%p6005_p11), %s407_s19, 256, %s409_s16, %s6018_s13, %s7814_s9, %s7814_s9, %s7816_s12  }
  0x33   : > { %s329_s3 = sshll.u32 %s7922_s5, 4  ;;  %s348_s29 = sshll.u32 %s5858_s27, 4  ;;  %s330_s3 = int_to_ptr.hbm [resolvable:$true] %s329_s3  ;;  %s349_s29 = int_to_ptr.vmem [resolvable:$true] %s348_s29 }
  0x34   : > { %5440 = dma.hbm_to_vmem [thread:$0]  (!%p5973_p10), %s330_s3, 9216, %s332_s28, [#allocation10], %s5856_s1, %s5856_s1, %s5857_s11  }
  0x35   : > { %s346_s19 = sshll.u32 %s7923_s7, 4  ;;  %s7924_s30 = smov 4   ;;  %s347_s19 = int_to_ptr.hbm [resolvable:$true] %s346_s19 }
  0x36   : > { %s7925_s9 = smov 64   ;;  %s4577_s26 = sshll.u32 %s6000_s20, 8 }
  0x37   : > { %5443 = dma.hbm_to_vmem [thread:$0]  (!%p5973_p10), %s347_s19, 1024, %s349_s29, [#allocation13], %s7925_s9, %s7925_s9, %s7924_s30  }
  0x38   : > { %s377_s1 = scalar_lea.hbm %s7794_s0, %s6003_s21  ;;  %s369_s3 = scalar_lea.vmem [#allocation3], %s4577_s26 }
  0x39   : > { %s378_s11 = sshll.u32 %s377_s1, 4  ;;  %s380_s28 = sshll.u32 %s369_s3, 4  ;;  %s379_s11 = int_to_ptr.hbm [resolvable:$true] %s378_s11  ;;  %s381_s28 = int_to_ptr.vmem [resolvable:$true] %s380_s28 }
  0x3a   : > { %s5146_s16 = sadd.s32 240, %s6003_s21  ;;  %s366_s24 = scalar_lea.sflag [#allocation4], %s6000_s20 }
  0x3b   : > { %s7926_s25 = smov 8   ;;  %s7927_s27 = smov 128  }
  0x3c   : > { %5447 = dma.hbm_to_vmem [thread:$0]  (!%p6005_p11), %s379_s11, 4096, %s381_s28, %s366_s24, %s7927_s27, %s7927_s27, %s7926_s25  }
  0x3d   : > { %s433_s19 = scalar_lea.hbm %s7796_s2, %s5146_s16  ;;  %448 = sbr.rel (%p5965_p8) target bundleno = 1531 (0x5fb), region = 56 }
  0x3e   : > { %s434_s29 = sshll.u32 %s433_s19, 4  ;;  %s435_s29 = int_to_ptr.hbm [resolvable:$true] %s434_s29 }
  0x3f   : > { %5453 = dma.hbm_to_vmem [thread:$0]  (!%p6005_p11), %s435_s29, 256, %s437_s18, %s6018_s13, %s7927_s27, %s7927_s27, %s7926_s25  }
  0x42   : > { %s6066_s5 = sand.u32 1, %s5832_s10  }
  0x43   : > { %s4587_s12 = sshll.u32 %s6066_s5, 8  ;;  %s451_s7 = scalar_lea.sflag [#allocation4], %s6066_s5 }
  0x44   : > { %s6072_s20 = scalar_lea.vmem [#allocation3], %s4587_s12 }
  0x45   : > { %5807 = dma.done.wait (%p5952_p4), %s451_s7, 4096  }
  0x46   : > { %5809 = vsyncadd (%p5952_p4), %s451_s7, 4294963200  ;;  %s460_s13 = sand.u32 1, %s5943_s15   ;;  %s4588_s22 = sshll.u32 %s6066_s5, 4 }
  0x47   : > { %s461_s21 = scalar_lea.sflag [#allocation7], %s460_s13  ;;  %s6080_s23 = scalar_lea.vmem [#allocation6], %s4588_s22 }
  0x48   : > { %5811 = dma.done.wait (%p5952_p4), %s461_s21, 512  }
  0x49   : > { %5813 = vsyncadd (%p5952_p4), %s461_s21, 4294966784  ;;  %s6086_s18 = scalar_lea.vmem [#allocation8], %s4588_s22 }
  0x4a   : > { %5815 = dma.done.wait (%p65_p1), [#allocation10], 10240  }
  0x4b   : > { %5817 = vsyncadd (%p65_p1), [#allocation10], 4294957056 }
  0x4c   : > { %5819 = dma.done.wait (%p65_p1), [#allocation13], 1024  }
  0x4d   : > { %5821 = vsyncadd (%p65_p1), [#allocation13], 4294966272  ;;  %v5154_v0 = vld [vmem:[#allocation9 + $0x38] sm:$0xff]  ;;  %v5153_v1 = vld [vmem:[#allocation9 + $0x30] sm:$0xff]  ;;  %s7652_s3 = scalar_lea.vmem [#allocation14], %s4587_s12  ;;  %s8272_s28 = sld [smem:[#allocation22_spill]] }
  0x4e   : > { %661 = vmatpush.bf16.msra.mxu0 %v5154_v0  ;;  %5390 = vmatpush.bf16.msra.mxu2 %v5154_v0  ;;  %v5152_v2 = vld [vmem:[#allocation9 + $0x28] sm:$0xff]  ;;  %v5151_v3 = vld [vmem:[#allocation9 + $0x20] sm:$0xff]  ;;  %v5150_v4 = vld [vmem:[#allocation9 + $0x18] sm:$0xff]  ;;  %s8273_s27 = sld [smem:[#allocation91_spill]]  ;;  %s4402_s29 = sshll.u32 %s7652_s3, 4  ;;  %s4403_s29 = int_to_ptr.vmem [resolvable:$true] %s4402_s29 }
  0x4f   : > { %850 = vmatpush.bf16.msra.mxu1 %v5154_v0  ;;  %v5149_v5 = vld [vmem:[#allocation9 + $0x10] sm:$0xff]  ;;  %v5148_v6 = vld [vmem:[#allocation9 + $0x8] sm:$0xff]  ;;  %v5147_v7 = vld [vmem:[#allocation9] sm:$0xff]  ;;  %s4387_s7 = scalar_lea.sflag [#allocation5], %s6066_s5 }
  0x50   : > { %v562_v8 = vld [vmem:[%s6072_s20] sm:$0xff]  ;;  %v563_v9 = vld [vmem:[%s6072_s20 + $0x8] sm:$0xff]  ;;  %v564_v11 = vld [vmem:[%s6072_s20 + $0x10] sm:$0xff] }
  0x51   : > { %v594_v10 = vpack.c.bf16 %v563_v9, %v562_v8  ;;  %v565_v12 = vld [vmem:[%s6072_s20 + $0x18] sm:$0xff]  ;;  %v566_v14 = vld [vmem:[%s6072_s20 + $0x20] sm:$0xff]  ;;  %v567_v15 = vld [vmem:[%s6072_s20 + $0x28] sm:$0xff] }
  0x52   : > { %662 = vmatpush.bf16.msra.mxu0 %v5153_v1  ;;  %5391 = vmatpush.bf16.msra.mxu2 %v5153_v1  ;;  %v595_v13 = vpack.c.bf16 %v565_v12, %v564_v11  ;;  %v596_v16 = vpack.c.bf16 %v567_v15, %v566_v14  ;;  %v588_v17 = vld [vmem:[%s6072_s20 + $0xd0] sm:$0xff]  ;;  %v589_v18 = vld [vmem:[%s6072_s20 + $0xd8] sm:$0xff]  ;;  %v590_v23 = vld [vmem:[%s6072_s20 + $0xe0] sm:$0xff] }
  0x53   : > { %851 = vmatpush.bf16.msra.mxu1 %v5153_v1  ;;  %v607_v19 = vpack.c.bf16 %v589_v18, %v588_v17  ;;  %v568_v20 = vld [vmem:[%s6072_s20 + $0x30] sm:$0xff]  ;;  %v569_v21 = vld [vmem:[%s6072_s20 + $0x38] sm:$0xff]  ;;  %v591_v24 = vld [vmem:[%s6072_s20 + $0xe8] sm:$0xff]  ;;  %s5283_s16 = sshll.u32 %s8272_s28, 8 }
  0x54   : > { %v597_v22 = vpack.c.bf16 %v569_v21, %v568_v20  ;;  %v608_v25 = vpack.c.bf16 %v591_v24, %v590_v23  ;;  %v570_v26 = vld [vmem:[%s6072_s20 + $0x40] sm:$0xff]  ;;  %v571_v27 = vld [vmem:[%s6072_s20 + $0x48] sm:$0xff]  ;;  %v592_v29 = vld [vmem:[%s6072_s20 + $0xf0] sm:$0xff]  ;;  %s4401_s9 = scalar_lea.hbm %s8273_s27, %s5283_s16 }
  0x55   : > { %v598_v28 = vpack.c.bf16 %v571_v27, %v570_v26  ;;  %v593_v30 = vld [vmem:[%s6072_s20 + $0xf8] sm:$0xff]  ;;  %v4776_v31 = vld [vmem:[#allocation11 + $0xa8] sm:$0xf]  ;;  %v5193_v33 = vld [vmem:[#allocation11 + $0xb0] sm:$0xf0]  ;;  %s4404_s12 = sshll.u32 %s4401_s9, 4  ;;  %s4405_s12 = int_to_ptr.hbm [resolvable:$true] %s4404_s12 }
  0x56   : > { %663 = vmatpush.bf16.msra.mxu0 %v5152_v2  ;;  %5392 = vmatpush.bf16.msra.mxu2 %v5152_v2  ;;  %v609_v32 = vpack.c.bf16 %v593_v30, %v592_v29  ;;  %v5192_v34 = vld [vmem:[#allocation11 + $0xac] sm:$0xf]  ;;  %v4778_v35 = vld [vmem:[#allocation11 + $0xb4] sm:$0xf0]  ;;  %v4777_v36 = vor.u32 %v5193_v33, %v4776_v31  ;;  %v4764_v38 = vld [vmem:[#allocation11 + $0x90] sm:$0xf] }
  0x57   : > { %852 = vmatpush.bf16.msra.mxu1 %v5152_v2  ;;  %v6112_v37 = vor.u32 %v5192_v34, %v4778_v35  ;;  %v5190_v39 = vld [vmem:[#allocation11 + $0x98] sm:$0xf0]  ;;  %v5189_v40 = vld [vmem:[#allocation11 + $0x94] sm:$0xf]  ;;  %v4766_v41 = vld [vmem:[#allocation11 + $0x9c] sm:$0xf0] }
  0x58   : > { %v4765_v42 = vor.u32 %v5190_v39, %v4764_v38  ;;  %v6115_v43 = vor.u32 %v5189_v40, %v4766_v41  ;;  %v4752_v44 = vld [vmem:[#allocation11 + $0x78] sm:$0xf]  ;;  %v5187_v45 = vld [vmem:[#allocation11 + $0x80] sm:$0xf0]  ;;  %v5186_v46 = vld [vmem:[#allocation11 + $0x7c] sm:$0xf]  ;;  %5398 = vmatpush.bf16.msra.mxu3 %v4777_v36 }
  0x59   : > { %v4754_v47 = vld [vmem:[#allocation11 + $0x84] sm:$0xf0]  ;;  %v4753_v48 = vor.u32 %v5187_v45, %v4752_v44  ;;  %v572_v50 = vld [vmem:[%s6072_s20 + $0x50] sm:$0xff]  ;;  %v573_v51 = vld [vmem:[%s6072_s20 + $0x58] sm:$0xff]  ;;  %s5768_s13 = sshra.s32 %s4405_s12, 4  ;;  %s5769_s13 = int_to_ptr.hbm [resolvable:$true] %s5768_s13 }
  0x5a   : > { %664 = vmatpush.bf16.msra.mxu0 %v5151_v3  ;;  %5393 = vmatpush.bf16.msra.mxu2 %v5151_v3  ;;  %v6118_v49 = vor.u32 %v5186_v46, %v4754_v47  ;;  %v599_v52 = vpack.c.bf16 %v573_v51, %v572_v50  ;;  %v4740_v53 = vld [vmem:[#allocation11 + $0x60] sm:$0xf]  ;;  %v5184_v54 = vld [vmem:[#allocation11 + $0x68] sm:$0xf0]  ;;  %v5183_v55 = vld [vmem:[#allocation11 + $0x64] sm:$0xf]  ;;  %p5775_p8 = scmp.lt.s32.totalorder %s5769_s13, %s8273_s27 }
  0x5b   : > { %853 = vmatpush.bf16.msra.mxu1 %v5151_v3  ;;  %v4741_v56 = vor.u32 %v5184_v54, %v4740_v53  ;;  %v4742_v57 = vld [vmem:[#allocation11 + $0x6c] sm:$0xf0]  ;;  %v848_v59 = vld [vmem:[%s6080_s23 + $0x8] sm:$0xff]  ;;  %v5177_v9 = vld [vmem:[#allocation11 + $0x34] sm:$0xf]  ;;  %s5770_s22 = scalar_lea.hbm %s5769_s13, 256 }
  0x5c   : > { %5399 = vmatpush.bf16.msra.mxu3 %v4765_v42  ;;  %v847_v58 = vld [vmem:[%s6080_s23] sm:$0xff]  ;;  %v6125_v60 = vor.u32 %v5183_v55, %v4742_v57  ;;  %v877_v63 = vld [vmem:[%s6086_s18 + $0x8] sm:$0xff]  ;;  %p5771_p1 = scmp.ne.s32.totalorder %s5769_s13, %s5770_s22 }
  0x5d   : > { %v849_v61 = vpack.c.bf16 %v848_v59, %v847_v58  ;;  %v876_v62 = vld [vmem:[%s6086_s18] sm:$0xff]  ;;  %v5178_v8 = vld [vmem:[#allocation11 + $0x38] sm:$0xf0]  ;;  %v4704_v18 = vld [vmem:[#allocation11 + $0x18] sm:$0xf]  ;;  %s5774_s18 = scalar_lea.hbm %s8273_s27, 512 }
  0x5e   : > { %665 = vmatpush.bf16.msra.mxu0 %v5150_v4  ;;  %5394 = vmatpush.bf16.msra.mxu2 %v5150_v4  ;;  %v574_v15 = vld [vmem:[%s6072_s20 + $0x60] sm:$0xff]  ;;  %v5174_v20 = vld [vmem:[#allocation11 + $0x1c] sm:$0xf]  ;;  %v4706_v23 = vld [vmem:[#allocation11 + $0x24] sm:$0xf0]  ;;  %p5772_p2 = pnand %p5771_p1, %p5992_p5  ;;  %p5776_p10 = scmp.lt.s32.totalorder %s5774_s18, %s5770_s22 }
  0x5f   : > { %854 = vmatpush.bf16.msra.mxu1 %v5150_v4  ;;  %v4709_v24 = vor.u32 %v5174_v20, %v4706_v23  ;;  %v5172_v26 = vld [vmem:[#allocation11 + $0x8] sm:$0xf0]  ;;  %v5171_v27 = vld [vmem:[#allocation11 + $0x4] sm:$0xf]  ;;  %v4694_v29 = vld [vmem:[#allocation11 + $0xc] sm:$0xf0] }
  0x60   : > { %5400 = vmatpush.bf16.msra.mxu3 %v4753_v48  ;;  %v4697_v30 = vor.u32 %v5171_v27, %v4694_v29  ;;  %v577_v33 = vld [vmem:[%s6072_s20 + $0x78] sm:$0xff]  ;;  %v578_v35 = vld [vmem:[%s6072_s20 + $0x80] sm:$0xff]  ;;  %v6147_v39 = vld [vmem:[%s7798_s4] ss:$0 sm:$0xff]  ;;  %p5773_p4 = pneg %p5772_p2  ;;  %p5777_p11 = por %p5776_p10, %p5775_p8 }
  0x61   : > { %v580_v45 = vld [vmem:[%s6072_s20 + $0x90] sm:$0xff]  ;;  %v581_v46 = vld [vmem:[%s6072_s20 + $0x98] sm:$0xff]  ;;  %v4936_v50 = vld [vmem:[#allocation11 + $0x168] sm:$0xf] }
  0x62   : > { %666 = vmatpush.bf16.msra.mxu0 %v5149_v5  ;;  %5395 = vmatpush.bf16.msra.mxu2 %v5149_v5  ;;  %v5233_v51 = vld [vmem:[#allocation11 + $0x170] sm:$0xf0]  ;;  %v4924_v53 = vld [vmem:[#allocation11 + $0x150] sm:$0xf]  ;;  %v5230_v54 = vld [vmem:[#allocation11 + $0x158] sm:$0xf0]  ;;  %p5778_p12 = pnand %p5777_p11, %p5773_p4 }
  0x63   : > { %855 = vmatpush.bf16.msra.mxu1 %v5149_v5  ;;  %v5215_v20 = vld [vmem:[#allocation11 + $0xe0] sm:$0xf0]  ;;  %v5212_v29 = vld [vmem:[#allocation11 + $0xc8] sm:$0xf0] }
  0x64   : > { %5401 = vmatpush.bf16.msra.mxu3 %v4741_v56 }
  0x66   : > { %667 = vmatpush.bf16.msra.mxu0 %v5148_v6  ;;  %5396 = vmatpush.bf16.msra.mxu2 %v5148_v6 }
  0x67   : > { %856 = vmatpush.bf16.msra.mxu1 %v5148_v6 }
  0x6a   : > { %668 = vmatpush.bf16.msra.mxu0 %v5147_v7  ;;  %5397 = vmatpush.bf16.msra.mxu2 %v5147_v7 }
  0x6b   : > { %857 = vmatpush.bf16.msra.mxu1 %v5147_v7 }
  0x6d   : > { %669 = vmatmul.bf16.vlgmr.msra.gmra.mxu0 %v594_v10  ;;  %734 = vmatmul.bf16.vlgmr.msra.gmra.mxu2 %v607_v19  ;;  %v4718_v10 = vld [vmem:[#allocation11 + $0x3c] sm:$0xf0]  ;;  %v5175_v19 = vld [vmem:[#allocation11 + $0x20] sm:$0xf0] }
  0x6e   : > { %879 = vmatpush.bf16.msrb.mxu2 %v5154_v0  ;;  %v4728_v0 = vld [vmem:[#allocation11 + $0x48] sm:$0xf]  ;;  %858 = vmatmul.bf16.vlgmr.msra.gmra.mxu1 %v849_v61  ;;  %v4721_v12 = vor.u32 %v5177_v9, %v4718_v10  ;;  %v5227_v61 = vld [vmem:[#allocation11 + $0x140] sm:$0xf0]  ;;  %v5221_v10 = vld [vmem:[#allocation11 + $0x110] sm:$0xf0] }
  0x6f   : > { %1764 = vmatpush.bf16.msrb.mxu1 %v6112_v37  ;;  %v4888_v9 = vld [vmem:[#allocation11 + $0x108] sm:$0xf] }
  0x72   : > { %880 = vmatpush.bf16.msrb.mxu2 %v5153_v1  ;;  %v878_v1 = vpack.c.bf16 %v877_v63, %v876_v62 }
  0x73   : > { %1765 = vmatpush.bf16.msrb.mxu1 %v6115_v43 }
  0x76   : > { %881 = vmatpush.bf16.msrb.mxu2 %v5152_v2  ;;  %v5181_v2 = vld [vmem:[#allocation11 + $0x50] sm:$0xf0] }
  0x77   : > { %1766 = vmatpush.bf16.msrb.mxu1 %v6118_v49 }
  0x7a   : > { %882 = vmatpush.bf16.msrb.mxu2 %v5151_v3  ;;  %v5180_v3 = vld [vmem:[#allocation11 + $0x4c] sm:$0xf] }
  0x7b   : > { %1767 = vmatpush.bf16.msrb.mxu1 %v6125_v60 }
  0x7d   : > { %674 = vmatmul.bf16.gmra.mxu0 %v595_v13  ;;  %739 = vmatmul.bf16.gmra.mxu2 %v608_v25  ;;  %v5859_v13 = vmov 0.0|0.0   ;;  %v4692_v25 = vld [vmem:[#allocation11] sm:$0xf] }
  0x7e   : > { %883 = vmatpush.bf16.msrb.mxu2 %v5150_v4  ;;  %v4730_v4 = vld [vmem:[#allocation11 + $0x54] sm:$0xf0]  ;;  %v5365_v14 = vunpack.c.l.bf16 %v5859_v13  ;;  %v5218_v13 = vld [vmem:[#allocation11 + $0xf8] sm:$0xf0] }
  0x80   : > { %v5367_v17 = vpack.c.bf16 %v5365_v14, %v5365_v14 }
  0x82   : > { %884 = vmatpush.bf16.msrb.mxu2 %v5149_v5  ;;  %v4729_v5 = vor.u32 %v5181_v2, %v4728_v0  ;;  %5368 = vst [vmem:[#allocation2 + $0x70] sm:$0xff] %v5367_v17   ;;  %v583_v2 = vld [vmem:[%s6072_s20 + $0xa8] sm:$0xff] }
  0x83   : > { %5373 = vst [vmem:[#allocation2 + $0x68] sm:$0xff] %v5367_v17  }
  0x84   : > { %5402 = vmatpush.bf16.msra.mxu3 %v4729_v5 }
  0x86   : > { %885 = vmatpush.bf16.msrb.mxu2 %v5148_v6  ;;  %v4733_v6 = vor.u32 %v5180_v3, %v4730_v4  ;;  %v4900_v4 = vld [vmem:[#allocation11 + $0x120] sm:$0xf] }
  0x88   : > { %1768 = vmatpush.bf16.msrb.mxu1 %v4733_v6 }
  0x89   : > { %v6132_v31 = vld [vmem:[#allocation2 + $0x70] sm:$0xff] }
  0x8a   : > { %886 = vmatpush.bf16.msrb.mxu2 %v5147_v7  ;;  %v4716_v7 = vld [vmem:[#allocation11 + $0x30] sm:$0xf] }
  0x8b   : > { %v4717_v11 = vor.u32 %v5178_v8, %v4716_v7 }
  0x8c   : > { %1769 = vmatpush.bf16.msrb.mxu1 %v4721_v12 }
  0x8d   : > { %679 = vmatmul.bf16.gmra.mxu0 %v596_v16  ;;  %744 = vmatmul.bf16.gmra.mxu2 %v609_v32  ;;  %v575_v16 = vld [vmem:[%s6072_s20 + $0x68] sm:$0xff]  ;;  %v576_v32 = vld [vmem:[%s6072_s20 + $0x70] sm:$0xff] }
  0x8e   : > { %1675 = vmatpush.bf16.msra.mxu2 %v4777_v36  ;;  %5403 = vmatpush.bf16.msra.mxu3 %v4717_v11  ;;  %v600_v21 = vpack.c.bf16 %v575_v16, %v574_v15  ;;  %v601_v34 = vpack.c.bf16 %v577_v33, %v576_v32  ;;  %v579_v36 = vld [vmem:[%s6072_s20 + $0x88] sm:$0xff] }
  0x90   : > { %1770 = vmatpush.bf16.msrb.mxu1 %v4709_v24 }
  0x92   : > { %1676 = vmatpush.bf16.msra.mxu2 %v4765_v42 }
  0x94   : > { %1771 = vmatpush.bf16.msrb.mxu1 %v4697_v30 }
  0x96   : > { %1677 = vmatpush.bf16.msra.mxu2 %v4753_v48  ;;  %v603_v48 = vpack.c.bf16 %v581_v46, %v580_v45 }
  0x97   : > { %1772 = vmatmul.bf16.vlgmr.msrb.gmra.mxu1 %v6132_v31 }
  0x9a   : > { %1678 = vmatpush.bf16.msra.mxu2 %v4741_v56  ;;  %v4925_v56 = vor.u32 %v5230_v54, %v4924_v53 }
  0x9d   : > { %684 = vmatmul.bf16.gmra.mxu0 %v597_v22  ;;  %887 = vmatmul.bf16.vlgmr.msrb.gmra.mxu2 %v878_v1  ;;  %v4705_v22 = vor.u32 %v5175_v19, %v4704_v18  ;;  %v582_v1 = vld [vmem:[%s6072_s20 + $0xa0] sm:$0xff]  ;;  %v4864_v19 = vld [vmem:[#allocation11 + $0xd8] sm:$0xf] }
  0x9e   : > { %1679 = vmatpush.bf16.msra.mxu2 %v4729_v5  ;;  %v5224_v5 = vld [vmem:[#allocation11 + $0x128] sm:$0xf0]  ;;  %v604_v7 = vpack.c.bf16 %v583_v2, %v582_v1 }
  0x9f   : > { %5404 = vmatpush.bf16.msra.mxu3 %v4705_v22 }
  0xa2   : > { %1680 = vmatpush.bf16.msra.mxu2 %v4717_v11  ;;  %v4889_v11 = vor.u32 %v5221_v10, %v4888_v9 }
  0xa6   : > { %1681 = vmatpush.bf16.msra.mxu2 %v4705_v22 }
  0xad   : > { %689 = vmatmul.bf16.gmra.mxu0 %v598_v28  ;;  %v4693_v28 = vor.u32 %v5172_v26, %v4692_v25  ;;  %v584_v25 = vld [vmem:[%s6072_s20 + $0xb0] sm:$0xff]  ;;  %v585_v26 = vld [vmem:[%s6072_s20 + $0xb8] sm:$0xff] }
  0xae   : > { %v605_v32 = vpack.c.bf16 %v585_v26, %v584_v25 }
  0xaf   : > { %1682 = vmatpush.bf16.msra.mxu2 %v4693_v28  ;;  %5405 = vmatpush.bf16.msra.mxu3 %v4693_v28  ;;  %v4852_v28 = vld [vmem:[#allocation11 + $0xc0] sm:$0xf] }
  0xb2   : > { %1683 = vmatmul.bf16.vlgmr.msra.gmra.mxu2 %v6132_v31 }
  0xb3   : > { %5406 = vmatpush.bf16.msrb.mxu2 %v6112_v37  ;;  %v602_v37 = vpack.c.bf16 %v579_v36, %v578_v35 }
  0xb7   : > { %5407 = vmatpush.bf16.msrb.mxu2 %v6115_v43 }
  0xbb   : > { %5408 = vmatpush.bf16.msrb.mxu2 %v6118_v49 }
  0xbd   : > { %694 = vmatmul.bf16.gmra.mxu0 %v599_v52  ;;  %v4937_v52 = vor.u32 %v5233_v51, %v4936_v50 }
  0xbf   : > { %5409 = vmatpush.bf16.msrb.mxu2 %v6125_v60  ;;  %2649 = vmatpush.bf16.msrb.mxu0 %v4937_v52  ;;  %v4912_v60 = vld [vmem:[#allocation11 + $0x138] sm:$0xf] }
  0xc0   : > { %v4913_v62 = vor.u32 %v5227_v61, %v4912_v60 }
  0xc3   : > { %5410 = vmatpush.bf16.msrb.mxu2 %v4733_v6  ;;  %2650 = vmatpush.bf16.msrb.mxu0 %v4925_v56  ;;  %v4901_v6 = vor.u32 %v5224_v5, %v4900_v4 }
  0xc7   : > { %5411 = vmatpush.bf16.msrb.mxu2 %v4721_v12  ;;  %2651 = vmatpush.bf16.msrb.mxu0 %v4913_v62  ;;  %v4876_v12 = vld [vmem:[#allocation11 + $0xf0] sm:$0xf] }
  0xc8   : > { %v4877_v15 = vor.u32 %v5218_v13, %v4876_v12 }
  0xcb   : > { %5412 = vmatpush.bf16.msrb.mxu2 %v4709_v24  ;;  %2652 = vmatpush.bf16.msrb.mxu0 %v4901_v6 }
  0xcd   : > { %699 = vmatmul.bf16.gmra.mxu0 %v600_v21  ;;  %v4865_v21 = vor.u32 %v5215_v20, %v4864_v19 }
  0xcf   : > { %5413 = vmatpush.bf16.msrb.mxu2 %v4697_v30  ;;  %2653 = vmatpush.bf16.msrb.mxu0 %v4889_v11  ;;  %v4853_v30 = vor.u32 %v5212_v29, %v4852_v28 }
  0xd3   : > { %2654 = vmatpush.bf16.msrb.mxu0 %v4877_v15 }
  0xd7   : > { %2655 = vmatpush.bf16.msrb.mxu0 %v4865_v21 }
  0xdb   : > { %2656 = vmatpush.bf16.msrb.mxu0 %v4853_v30 }
  0xdd   : > { %704 = vmatmul.bf16.gmra.mxu0 %v601_v34 }
  0xea   : > { %v670_v38 = vpop.f32.mrf.mxu0 }
  0xeb   : > { %v671_v40 = vadd.f32 %v6147_v39, %v670_v38  ;;  %v859_v10 = vpop.f32.mrf.mxu1 }
  0xed   : > { %709 = vmatmul.bf16.gmra.mxu0 %v602_v37  ;;  %v750_v43 = vmax.f32 %v671_v40, 0.0 }
  0xf0   : > { %v735_v24 = vpop.f32.mrf.mxu2 }
  0xf1   : > { %v736_v34 = vadd.f32 %v6147_v39, %v735_v24 }
  0xf2   : > { %v672_v41 = vpop.f32.mrf.mxu0 }
  0xf3   : > { %v673_v42 = vadd.f32 %v6147_v39, %v672_v41  ;;  %v776_v36 = vmax.f32 %v736_v34, 0.0  ;;  %v861_v21 = vpop.f32.mrf.mxu1 }
  0xf4   : > { %v4860_v21 = vld [vmem:[#allocation11 + $0xc8] sm:$0xf] }
  0xf5   : > { %v751_v44 = vmax.f32 %v673_v42, 0.0 }
  0xf7   : > { %v5287_v47 = vpack.c.bf16 %v751_v44, %v750_v43 }
  0xf8   : > { %v737_v35 = vpop.f32.mrf.mxu2 }
  0xf9   : > { %5288 = vst [vmem:[#allocation2 + $0x8] sm:$0xff] %v5287_v47   ;;  %v738_v37 = vadd.f32 %v6147_v39, %v737_v35 }
  0xfa   : > { %v675_v49 = vpop.f32.mrf.mxu0 }
  0xfb   : > { %v676_v57 = vadd.f32 %v6147_v39, %v675_v49  ;;  %v777_v40 = vmax.f32 %v738_v37, 0.0  ;;  %v587_v49 = vld [vmem:[%s6072_s20 + $0xc8] sm:$0xff]  ;;  %v4944_v37 = vld [vmem:[#allocation11 + $0x170] sm:$0xf] }
  0xfd   : > { %714 = vmatmul.bf16.gmra.mxu0 %v603_v48  ;;  %v752_v63 = vmax.f32 %v676_v57, 0.0  ;;  %v5352_v43 = vpack.c.bf16 %v777_v40, %v776_v36  ;;  %v586_v48 = vld [vmem:[%s6072_s20 + $0xc0] sm:$0xff] }
  0xfe   : > { %v606_v51 = vpack.c.bf16 %v587_v49, %v586_v48 }
  0xff   : > { %5387 = vst [vmem:[#allocation2 + $0x50] sm:$0xff] %v5352_v43  }
 0x100   : > { %v6153_v55 = vld [vmem:[#allocation2 + $0x8] sm:$0xff]  ;;  %v740_v47 = vpop.f32.mrf.mxu2 }
 0x101   : > { %1688 = vmatmul.bf16.gmra.mxu2 %v6153_v55  ;;  %1777 = vmatmul.bf16.gmra.mxu1 %v6153_v55  ;;  %v741_v53 = vadd.f32 %v6147_v39, %v740_v47  ;;  %v6180_v6 = vld [vmem:[#allocation2 + $0x8] sm:$0xff] }
 0x102   : > { %v677_v58 = vpop.f32.mrf.mxu0 }
 0x103   : > { %v678_v59 = vadd.f32 %v6147_v39, %v677_v58  ;;  %v778_v56 = vmax.f32 %v741_v53, 0.0 }
 0x105   : > { %v753_v0 = vmax.f32 %v678_v59, 0.0 }
 0x107   : > { %v5292_v3 = vpack.c.bf16 %v753_v0, %v752_v63 }
 0x108   : > { %v742_v54 = vpop.f32.mrf.mxu2 }
 0x109   : > { %5375 = vst [vmem:[#allocation2 + $0x40] sm:$0xff] %v5292_v3   ;;  %v743_v57 = vadd.f32 %v6147_v39, %v742_v54 }
 0x10a   : > { %v680_v8 = vpop.f32.mrf.mxu0 }
 0x10b   : > { %v681_v16 = vadd.f32 %v6147_v39, %v680_v8  ;;  %v779_v59 = vmax.f32 %v743_v57, 0.0  ;;  %v4908_v57 = vld [vmem:[#allocation11 + $0x128] sm:$0xf] }
 0x10d   : > { %719 = vmatmul.bf16.gmra.mxu0 %v604_v7  ;;  %v754_v22 = vmax.f32 %v681_v16, 0.0  ;;  %v5357_v62 = vpack.c.bf16 %v779_v59, %v778_v56 }
 0x10f   : > { %5388 = vst [vmem:[#allocation2 + $0x38] sm:$0xff] %v5357_v62   ;;  %v5222_v62 = vld [vmem:[#allocation11 + $0x118] sm:$0xf0] }
 0x110   : > { %v6161_v14 = vld [vmem:[#allocation2 + $0x40] sm:$0xff]  ;;  %v745_v2 = vpop.f32.mrf.mxu2 }
 0x111   : > { %1693 = vmatmul.bf16.gmra.mxu2 %v6161_v14  ;;  %1782 = vmatmul.bf16.gmra.mxu1 %v6161_v14  ;;  %v746_v5 = vadd.f32 %v6147_v39, %v745_v2  ;;  %v6186_v24 = vld [vmem:[#allocation2 + $0x40] sm:$0xff] }
 0x112   : > { %v682_v17 = vpop.f32.mrf.mxu0 }
 0x113   : > { %v683_v18 = vadd.f32 %v6147_v39, %v682_v17  ;;  %v780_v8 = vmax.f32 %v746_v5, 0.0  ;;  %v5219_v5 = vld [vmem:[#allocation11 + $0x100] sm:$0xf0] }
 0x114   : > { %v6198_v56 = vpop.f32.mrf.mxu1 }
 0x115   : > { %v755_v23 = vmax.f32 %v683_v18, 0.0 }
 0x117   : > { %v5297_v27 = vpack.c.bf16 %v755_v23, %v754_v22 }
 0x118   : > { %v747_v7 = vpop.f32.mrf.mxu2 }
 0x119   : > { %5376 = vst [vmem:[#allocation2 + $0x80] sm:$0xff] %v5297_v27   ;;  %v748_v9 = vadd.f32 %v6147_v39, %v747_v7 }
 0x11a   : > { %v685_v33 = vpop.f32.mrf.mxu0 }
 0x11b   : > { %v686_v41 = vadd.f32 %v6147_v39, %v685_v33  ;;  %v781_v12 = vmax.f32 %v748_v9, 0.0 }
 0x11c   : > { %v6205_v9 = vpop.f32.mrf.mxu1 }
 0x11d   : > { %724 = vmatmul.bf16.gmra.mxu0 %v605_v32  ;;  %v756_v45 = vmax.f32 %v686_v41, 0.0  ;;  %v5362_v16 = vpack.c.bf16 %v781_v12, %v780_v8 }
 0x11f   : > { %5389 = vst [vmem:[#allocation2 + $0x20] sm:$0xff] %v5362_v16  }
 0x120   : > { %v5158_v38 = vld [vmem:[#allocation2 + $0x80] sm:$0xff]  ;;  %v888_v20 = vpop.f32.mrf.mxu2 }
 0x121   : > { %1698 = vmatmul.bf16.vlgmr.msra.gmra.mxu3 %v5158_v38  ;;  %1787 = vmatmul.bf16.gmra.mxu1 %v5158_v38  ;;  %v6191_v35 = vld [vmem:[#allocation2 + $0x80] sm:$0xff]  ;;  %v5234_v38 = vld [vmem:[#allocation11 + $0x178] sm:$0xf0] }
 0x122   : > { %v687_v42 = vpop.f32.mrf.mxu0  ;;  %v4945_v41 = vor.u32 %v5234_v38, %v4944_v37  ;;  %v7928_v38 = vmov 0 }
 0x123   : > { %v688_v44 = vadd.f32 %v6147_v39, %v687_v42 }
 0x124   : > { %2827 = vmatpush.bf16.msra.mxu1 %v4945_v41 }
 0x125   : > { %v757_v46 = vmax.f32 %v688_v44, 0.0  ;;  %v4932_v44 = vld [vmem:[#allocation11 + $0x158] sm:$0xf] }
 0x127   : > { %v5302_v50 = vpack.c.bf16 %v757_v46, %v756_v45  ;;  %v5231_v45 = vld [vmem:[#allocation11 + $0x160] sm:$0xf0] }
 0x128   : > { %v890_v25 = vpop.f32.mrf.mxu2  ;;  %v4933_v48 = vor.u32 %v5231_v45, %v4932_v44  ;;  %v4784_v45 = vld [vmem:[#allocation11 + $0xb0] sm:$0xf] }
 0x129   : > { %5377 = vst [vmem:[#allocation2 + $0x60] sm:$0xff] %v5302_v50   ;;  %v4920_v50 = vld [vmem:[#allocation11 + $0x140] sm:$0xf] }
 0x12a   : > { %v690_v52 = vpop.f32.mrf.mxu0  ;;  %2828 = vmatpush.bf16.msra.mxu1 %v4933_v48 }
 0x12b   : > { %v691_v60 = vadd.f32 %v6147_v39, %v690_v52 }
 0x12d   : > { %729 = vmatmul.bf16.gmra.mxu0 %v606_v51  ;;  %v758_v0 = vmax.f32 %v691_v60, 0.0  ;;  %v5228_v51 = vld [vmem:[#allocation11 + $0x148] sm:$0xf0] }
 0x12e   : > { %v4921_v52 = vor.u32 %v5228_v51, %v4920_v50 }
 0x130   : > { %v5159_v58 = vld [vmem:[#allocation2 + $0x60] sm:$0xff]  ;;  %2829 = vmatpush.bf16.msra.mxu1 %v4921_v52  ;;  %v4772_v52 = vld [vmem:[#allocation11 + $0x98] sm:$0xf] }
 0x131   : > { %1703 = vmatmul.bf16.gmra.mxu3 %v5159_v58  ;;  %1792 = vmatmul.bf16.gmra.mxu1 %v5159_v58  ;;  %v6196_v54 = vld [vmem:[#allocation2 + $0x60] sm:$0xff] }
 0x132   : > { %v692_v61 = vpop.f32.mrf.mxu0  ;;  %v5225_v58 = vld [vmem:[#allocation11 + $0x130] sm:$0xf0] }
 0x133   : > { %v693_v63 = vadd.f32 %v6147_v39, %v692_v61  ;;  %v4909_v59 = vor.u32 %v5225_v58, %v4908_v57  ;;  %v4896_v61 = vld [vmem:[#allocation11 + $0x110] sm:$0xf] }
 0x135   : > { %v759_v1 = vmax.f32 %v693_v63, 0.0  ;;  %2830 = vmatpush.bf16.msra.mxu1 %v4909_v59 }
 0x137   : > { %v5307_v3 = vpack.c.bf16 %v759_v1, %v758_v0  ;;  %v6202_v0 = vpop.f32.mrf.mxu2  ;;  %v4897_v1 = vor.u32 %v5222_v62, %v4896_v61 }
 0x139   : > { %5378 = vst [vmem:[#allocation2 + $0x28] sm:$0xff] %v5307_v3   ;;  %2831 = vmatpush.bf16.msra.mxu1 %v4897_v1 }
 0x13a   : > { %v695_v4 = vpop.f32.mrf.mxu0 }
 0x13b   : > { %v696_v13 = vadd.f32 %v6147_v39, %v695_v4  ;;  %v4884_v4 = vld [vmem:[#allocation11 + $0xf8] sm:$0xf] }
 0x13c   : > { %v4885_v10 = vor.u32 %v5219_v5, %v4884_v4 }
 0x13d   : > { %2657 = vmatmul.bf16.vlgmr.msrb.gmra.mxu0 %v6180_v6  ;;  %v760_v18 = vmax.f32 %v696_v13, 0.0  ;;  %v4872_v13 = vld [vmem:[#allocation11 + $0xe0] sm:$0xf] }
 0x13e   : > { %2832 = vmatpush.bf16.msra.mxu1 %v4885_v10  ;;  %v7931_v10 = vmov 0 }
 0x13f   : > { %v6211_v20 = vpop.f32.mrf.mxu2 }
 0x140   : > { %v5160_v11 = vld [vmem:[#allocation2 + $0x28] sm:$0xff] }
 0x141   : > { %1708 = vmatmul.bf16.gmra.mxu3 %v5160_v11  ;;  %1797 = vmatmul.bf16.gmra.mxu1 %v5160_v11  ;;  %v906_v11 = vlaneseq }
 0x142   : > { %v697_v15 = vpop.f32.mrf.mxu0 }
 0x143   : > { %v698_v17 = vadd.f32 %v6147_v39, %v697_v15  ;;  %v5216_v15 = vld [vmem:[#allocation11 + $0xe8] sm:$0xf0] }
 0x144   : > { %v4873_v16 = vor.u32 %v5216_v15, %v4872_v13 }
 0x145   : > { %v761_v19 = vmax.f32 %v698_v17, 0.0 }
 0x146   : > { %2833 = vmatpush.bf16.msra.mxu1 %v4873_v16 }
 0x147   : > { %v5312_v22 = vpack.c.bf16 %v761_v19, %v760_v18  ;;  %v6207_v18 = vshrl.u32 %v906_v11, 7  ;;  %v6209_v19 = vld [vmem:[#allocation2 + $0x28] sm:$0xff] }
 0x149   : > { %5379 = vst [vmem:[#allocation2 + $0x10] sm:$0xff] %v5312_v22   ;;  %v5213_v22 = vld [vmem:[#allocation11 + $0xd0] sm:$0xf0]  ;;  %vm7868_vm0 = vcmp.lt.s32.totalorder %v6207_v18, 1  ;;  %v911_v58 = vadd.s32 32, %v6207_v18  ;;  %vm7852_vm12 = vcmp.lt.s32.totalorder %v6207_v18, 7 }
 0x14a   : > { %v700_v23 = vpop.f32.mrf.mxu0  ;;  %v4861_v25 = vor.u32 %v5213_v22, %v4860_v21  ;;  %v4760_v22 = vld [vmem:[#allocation11 + $0x80] sm:$0xf] }
 0x14b   : > { %v701_v27 = vadd.f32 %v6147_v39, %v700_v23  ;;  %v909_v23 = vadd.s32 16, %v6207_v18 }
 0x14c   : > { %2834 = vmatpush.bf16.msra.mxu1 %v4861_v25 }
 0x14d   : > { %2662 = vmatmul.bf16.gmra.mxu0 %v6186_v24  ;;  %v762_v30 = vmax.f32 %v701_v27, 0.0 }
 0x150   : > { %v5161_v26 = vld [vmem:[#allocation2 + $0x10] sm:$0xff] }
 0x151   : > { %1713 = vmatmul.bf16.gmra.mxu3 %v5161_v26  ;;  %1802 = vmatmul.bf16.gmra.mxu1 %v5161_v26  ;;  %v6231_v50 = vld [vmem:[#allocation2 + $0x10] sm:$0xff] }
 0x152   : > { %v702_v28 = vpop.f32.mrf.mxu0 }
 0x153   : > { %v703_v29 = vadd.f32 %v6147_v39, %v702_v28 }
 0x155   : > { %v763_v32 = vmax.f32 %v703_v29, 0.0 }
 0x157   : > { %v5317_v33 = vpack.c.bf16 %v763_v32, %v762_v30  ;;  %v957_v30 = vand.u32 15, %v909_v23  ;;  %v5188_v23 = vld [vmem:[#allocation11 + $0x88] sm:$0xf0] }
 0x159   : > { %5380 = vst [vmem:[#allocation2 + $0x78] sm:$0xff] %v5317_v33   ;;  %v7819_v33 = vrot.slane %v6211_v20, 7  ;;  %vm6219_vm1 = vcmp.ne.s32.totalorder %v957_v30, 0 }
 0x15a   : > { %v705_v34 = vpop.f32.mrf.mxu0  ;;  %v7929_v38 = vsel %vm6219_vm1, 4294967295, %v7928_v38 }
 0x15b   : > { %v706_v40 = vadd.f32 %v6147_v39, %v705_v34  ;;  %7930 = vst [vmem:[#allocation28_spill] sm:$0xff] %v7929_v38 }
 0x15d   : > { %2667 = vmatmul.bf16.gmra.mxu0 %v6191_v35  ;;  %v764_v46 = vmax.f32 %v706_v40, 0.0 }
 0x160   : > { %v5162_v36 = vld [vmem:[#allocation2 + $0x78] sm:$0xff] }
 0x161   : > { %1718 = vmatmul.bf16.gmra.mxu3 %v5162_v36  ;;  %1807 = vmatmul.bf16.gmra.mxu1 %v5162_v36  ;;  %v6251_v25 = vld [vmem:[#allocation2 + $0x78] sm:$0xff] }
 0x162   : > { %v707_v42 = vpop.f32.mrf.mxu0 }
 0x163   : > { %v708_v43 = vadd.f32 %v6147_v39, %v707_v42 }
 0x165   : > { %v765_v47 = vmax.f32 %v708_v43, 0.0 }
 0x167   : > { %v5322_v49 = vpack.c.bf16 %v765_v47, %v764_v46  ;;  %v5194_v46 = vld [vmem:[#allocation11 + $0xb8] sm:$0xf0] }
 0x169   : > { %5381 = vst [vmem:[#allocation2] sm:$0xff] %v5322_v49   ;;  %v4785_v49 = vor.u32 %v5194_v46, %v4784_v45 }
 0x16a   : > { %v710_v53 = vpop.f32.mrf.mxu0 }
 0x16b   : > { %v711_v63 = vadd.f32 %v6147_v39, %v710_v53  ;;  %1853 = vmatpush.bf16.msra.mxu2 %v4785_v49  ;;  %v5191_v53 = vld [vmem:[#allocation11 + $0xa0] sm:$0xf0] }
 0x16c   : > { %v4773_v59 = vor.u32 %v5191_v53, %v4772_v52 }
 0x16d   : > { %2672 = vmatmul.bf16.gmra.mxu0 %v6196_v54  ;;  %v766_v7 = vmax.f32 %v711_v63, 0.0 }
 0x16f   : > { %1854 = vmatpush.bf16.msra.mxu2 %v4773_v59 }
 0x170   : > { %v5163_v60 = vld [vmem:[#allocation2] sm:$0xff] }
 0x171   : > { %1723 = vmatmul.bf16.gmra.mxu3 %v5163_v60  ;;  %1812 = vmatmul.bf16.gmra.mxu1 %v5163_v60 }
 0x172   : > { %v712_v2 = vpop.f32.mrf.mxu0 }
 0x173   : > { %v713_v3 = vadd.f32 %v6147_v39, %v712_v2 }
 0x175   : > { %v767_v8 = vmax.f32 %v713_v3, 0.0  ;;  %v971_v3 = vand.u32 15, %v911_v58 }
 0x177   : > { %v5327_v12 = vpack.c.bf16 %v767_v8, %v766_v7  ;;  %vm6241_vm2 = vcmp.ne.s32.totalorder %v971_v3, 0  ;;  %v5182_v3 = vld [vmem:[#allocation11 + $0x58] sm:$0xf0] }
 0x178   : > { %v7932_v10 = vsel %vm6241_vm2, 4294967295, %v7931_v10 }
 0x179   : > { %5382 = vst [vmem:[#allocation2 + $0x88] sm:$0xff] %v5327_v12  }
 0x17a   : > { %v715_v17 = vpop.f32.mrf.mxu0  ;;  %7933 = vst [vmem:[#allocation29_spill] sm:$0xff] %v7932_v10 }
 0x17b   : > { %v716_v28 = vadd.f32 %v6147_v39, %v715_v17 }
 0x17d   : > { %2677 = vmatmul.bf16.gmra.mxu0 %v6209_v19  ;;  %v768_v34 = vmax.f32 %v716_v28, 0.0 }
 0x17e   : > { %v1778_v26 = vpop.f32.mrf.mxu1 }
 0x180   : > { %v5164_v27 = vld [vmem:[#allocation2 + $0x88] sm:$0xff] }
 0x181   : > { %1728 = vmatmul.bf16.gmra.mxu3 %v5164_v27  ;;  %1817 = vmatmul.bf16.gmra.mxu1 %v5164_v27 }
 0x182   : > { %v717_v29 = vpop.f32.mrf.mxu0 }
 0x183   : > { %v718_v32 = vadd.f32 %v6147_v39, %v717_v29  ;;  %v913_v29 = vadd.s32 48, %v6207_v18 }
 0x184   : > { %v1689_v37 = vpop.f32.mrf.mxu2 }
 0x185   : > { %v769_v36 = vmax.f32 %v718_v32, 0.0  ;;  %v1976_v40 = vrot.slane %v1689_v37, 7 }
 0x186   : > { %v1780_v42 = vpop.f32.mrf.mxu1 }
 0x187   : > { %v5332_v41 = vpack.c.bf16 %v769_v36, %v768_v34  ;;  %v2036_v43 = vsel %vm7868_vm0, %v7819_v33, %v1976_v40 }
 0x188   : > { %v2105_v44 = vsel %vm6219_vm1, %v2036_v43, 0.0  ;;  %v985_v43 = vand.u32 15, %v913_v29 }
 0x189   : > { %5383 = vst [vmem:[#allocation2 + $0x48] sm:$0xff] %v5332_v41   ;;  %v6229_v47 = vadd.f32 %v2105_v44, %v1778_v26  ;;  %v4761_v26 = vor.u32 %v5188_v23, %v4760_v22  ;;  %v5185_v41 = vld [vmem:[#allocation11 + $0x70] sm:$0xf0] }
 0x18a   : > { %v720_v48 = vpop.f32.mrf.mxu0  ;;  %vm6262_vm3 = vcmp.ne.s32.totalorder %v985_v43, 0  ;;  %v4926_v43 = vld [vmem:[#allocation11 + $0x15c] sm:$0xf0] }
 0x18b   : > { %v721_v63 = vadd.f32 %v6147_v39, %v720_v48  ;;  %1855 = vmatpush.bf16.msra.mxu2 %v4761_v26 }
 0x18c   : > { %v1691_v51 = vpop.f32.mrf.mxu2 }
 0x18d   : > { %2682 = vmatmul.bf16.gmra.mxu0 %v6231_v50  ;;  %v1977_v57 = vrot.slane %v1691_v51, 7  ;;  %v770_v5 = vmax.f32 %v721_v63, 0.0 }
 0x18e   : > { %v1783_v60 = vpop.f32.mrf.mxu1 }
 0x18f   : > { %v2035_v61 = vsel %vm7868_vm0, %v1976_v40, %v1977_v57  ;;  %v4748_v40 = vld [vmem:[#allocation11 + $0x68] sm:$0xf] }
 0x190   : > { %v5165_v62 = vld [vmem:[#allocation2 + $0x48] sm:$0xff]  ;;  %v6238_v1 = vadd.f32 %v2035_v61, %v1780_v42  ;;  %v4749_v44 = vor.u32 %v5185_v41, %v4748_v40 }
 0x191   : > { %1733 = vmatmul.bf16.gmra.mxu3 %v5165_v62  ;;  %1822 = vmatmul.bf16.gmra.mxu1 %v5165_v62  ;;  %v6272_v62 = vld [vmem:[#allocation2] sm:$0xff] }
 0x192   : > { %v722_v2 = vpop.f32.mrf.mxu0  ;;  %1856 = vmatpush.bf16.msra.mxu2 %v4749_v44 }
 0x193   : > { %v723_v4 = vadd.f32 %v6147_v39, %v722_v2  ;;  %v4736_v2 = vld [vmem:[#allocation11 + $0x50] sm:$0xf] }
 0x194   : > { %v1694_v8 = vpop.f32.mrf.mxu2 }
 0x195   : > { %v771_v7 = vmax.f32 %v723_v4, 0.0  ;;  %v1978_v11 = vrot.slane %v1694_v8, 7 }
 0x196   : > { %v1785_v13 = vpop.f32.mrf.mxu1 }
 0x197   : > { %v5337_v12 = vpack.c.bf16 %v771_v7, %v770_v5  ;;  %v2034_v15 = vsel %vm7868_vm0, %v1977_v57, %v1978_v11  ;;  %v915_v5 = vadd.s32 64, %v6207_v18  ;;  %v4737_v7 = vor.u32 %v5182_v3, %v4736_v2  ;;  %v4902_v2 = vld [vmem:[#allocation11 + $0x12c] sm:$0xf0] }
 0x198   : > { %v2107_v16 = vsel %vm6241_vm2, %v2034_v15, 0.0 }
 0x199   : > { %5384 = vst [vmem:[#allocation2 + $0x58] sm:$0xff] %v5337_v12   ;;  %v6249_v17 = vadd.f32 %v2107_v16, %v1783_v60  ;;  %1857 = vmatpush.bf16.msra.mxu2 %v4737_v7  ;;  %v5232_v16 = vld [vmem:[#allocation11 + $0x16c] sm:$0xf]  ;;  %v999_v23 = vand.u32 15, %v915_v5 }
 0x19a   : > { %v725_v21 = vpop.f32.mrf.mxu0 }
 0x19b   : > { %v726_v36 = vadd.f32 %v6147_v39, %v725_v21  ;;  %v4938_v21 = vld [vmem:[#allocation11 + $0x174] sm:$0xf0]  ;;  %vm6283_vm4 = vcmp.ne.s32.totalorder %v999_v23, 0 }
 0x19c   : > { %v1696_v27 = vpop.f32.mrf.mxu2  ;;  %v4941_v26 = vor.u32 %v5232_v16, %v4938_v21  ;;  %v5176_v16 = vld [vmem:[#allocation11 + $0x28] sm:$0xf0] }
 0x19d   : > { %2687 = vmatmul.bf16.gmra.mxu0 %v6251_v25  ;;  %v1979_v28 = vrot.slane %v1696_v27, 7  ;;  %v772_v46 = vmax.f32 %v726_v36, 0.0  ;;  %v5220_v21 = vld [vmem:[#allocation11 + $0x10c] sm:$0xf] }
 0x19e   : > { %v1788_v30 = vpop.f32.mrf.mxu1  ;;  %2738 = vmatpush.bf16.msrb.mxu3 %v4941_v26 }
 0x19f   : > { %v2033_v32 = vsel %vm7868_vm0, %v1978_v11, %v1979_v28 }
 0x1a0   : > { %v5166_v34 = vld [vmem:[#allocation2 + $0x58] sm:$0xff]  ;;  %v6258_v37 = vadd.f32 %v2033_v32, %v1785_v13  ;;  %v4724_v32 = vld [vmem:[#allocation11 + $0x38] sm:$0xf] }
 0x1a1   : > { %1738 = vmatmul.bf16.gmra.mxu3 %v5166_v34  ;;  %1827 = vmatmul.bf16.vlgmr.msrb.gmra.mxu2 %v5166_v34  ;;  %v5179_v34 = vld [vmem:[#allocation11 + $0x40] sm:$0xf0] }
 0x1a2   : > { %v727_v42 = vpop.f32.mrf.mxu0  ;;  %2835 = vmatmul.bf16.vlgmr.msra.gmra.mxu1 %v6180_v6  ;;  %v4725_v41 = vor.u32 %v5179_v34, %v4724_v32 }
 0x1a3   : > { %v728_v45 = vadd.f32 %v6147_v39, %v727_v42  ;;  %v5229_v42 = vld [vmem:[#allocation11 + $0x154] sm:$0xf] }
 0x1a4   : > { %v1699_v49 = vpop.f32.mrf.mxu3  ;;  %1858 = vmatpush.bf16.msra.mxu2 %v4725_v41  ;;  %v4878_v41 = vld [vmem:[#allocation11 + $0xfc] sm:$0xf0] }
 0x1a5   : > { %v773_v48 = vmax.f32 %v728_v45, 0.0  ;;  %v1980_v52 = vrot.slane %v1699_v49, 7  ;;  %v5226_v49 = vld [vmem:[#allocation11 + $0x13c] sm:$0xf] }
 0x1a6   : > { %v1790_v57 = vpop.f32.mrf.mxu1 }
 0x1a7   : > { %v5342_v53 = vpack.c.bf16 %v773_v48, %v772_v46  ;;  %v2032_v58 = vsel %vm7868_vm0, %v1979_v28, %v1980_v52  ;;  %v4929_v46 = vor.u32 %v5229_v42, %v4926_v43 }
 0x1a8   : > { %v2109_v59 = vsel %vm6262_vm3, %v2032_v58, 0.0  ;;  %v6295_v58 = vld [vmem:[#allocation2 + $0x88] sm:$0xff] }
 0x1a9   : > { %5385 = vst [vmem:[#allocation2 + $0x30] sm:$0xff] %v5342_v53   ;;  %v6270_v60 = vadd.f32 %v2109_v59, %v1788_v30  ;;  %2739 = vmatpush.bf16.msrb.mxu3 %v4929_v46 }
 0x1aa   : > { %v730_v61 = vpop.f32.mrf.mxu0 }
 0x1ab   : > { %v731_v13 = vadd.f32 %v6147_v39, %v730_v61 }
 0x1ac   : > { %v1701_v63 = vpop.f32.mrf.mxu3 }
 0x1ad   : > { %2692 = vmatmul.bf16.gmra.mxu0 %v6272_v62  ;;  %v1981_v4 = vrot.slane %v1701_v63, 7  ;;  %v774_v28 = vmax.f32 %v731_v13, 0.0  ;;  %v5223_v63 = vld [vmem:[#allocation11 + $0x124] sm:$0xf]  ;;  %v4712_v13 = vld [vmem:[#allocation11 + $0x20] sm:$0xf] }
 0x1ae   : > { %v1793_v8 = vpop.f32.mrf.mxu1  ;;  %v4905_v5 = vor.u32 %v5223_v63, %v4902_v2  ;;  %v4713_v26 = vor.u32 %v5176_v16, %v4712_v13  ;;  %v5173_v63 = vld [vmem:[#allocation11 + $0x10] sm:$0xf0]  ;;  %v5211_v13 = vld [vmem:[#allocation11 + $0xc4] sm:$0xf]  ;;  %v4854_v16 = vld [vmem:[#allocation11 + $0xcc] sm:$0xf0] }
 0x1af   : > { %v2031_v11 = vsel %vm7868_vm0, %v1980_v52, %v1981_v4 }
 0x1b0   : > { %v5167_v12 = vld [vmem:[#allocation2 + $0x30] sm:$0xff]  ;;  %v6279_v15 = vadd.f32 %v2031_v11, %v1790_v57  ;;  %v4914_v57 = vld [vmem:[#allocation11 + $0x144] sm:$0xf0]  ;;  %1859 = vmatpush.bf16.msra.mxu2 %v4713_v26 }
 0x1b1   : > { %1743 = vmatmul.bf16.gmra.mxu3 %v5167_v12  ;;  %1832 = vmatmul.bf16.gmra.mxu2 %v5167_v12  ;;  %v4917_v59 = vor.u32 %v5226_v49, %v4914_v57  ;;  %v4866_v49 = vld [vmem:[#allocation11 + $0xe4] sm:$0xf0] }
 0x1b2   : > { %v732_v22 = vpop.f32.mrf.mxu0  ;;  %2840 = vmatmul.bf16.gmra.mxu1 %v6186_v24 }
 0x1b3   : > { %v733_v27 = vadd.f32 %v6147_v39, %v732_v22  ;;  %2740 = vmatpush.bf16.msrb.mxu3 %v4917_v59 }
 0x1b4   : > { %v1704_v30 = vpop.f32.mrf.mxu3 }
 0x1b5   : > { %v775_v29 = vmax.f32 %v733_v27, 0.0  ;;  %v1982_v40 = vrot.slane %v1704_v30, 7  ;;  %v4890_v27 = vld [vmem:[#allocation11 + $0x114] sm:$0xf0] }
 0x1b6   : > { %v1795_v45 = vpop.f32.mrf.mxu1  ;;  %v4893_v30 = vor.u32 %v5220_v21, %v4890_v27  ;;  %v919_v21 = vadd.s32 96, %v6207_v18  ;;  %v5169_v27 = vld [vmem:[#allocation2 + $0x50] sm:$0xff] }
 0x1b7   : > { %v5347_v44 = vpack.c.bf16 %v775_v29, %v774_v28  ;;  %v2030_v39 = vsel %vm7868_vm0, %v1981_v4, %v1982_v40  ;;  %v917_v4 = vadd.s32 80, %v6207_v18  ;;  %2741 = vmatpush.bf16.msrb.mxu3 %v4905_v5  ;;  %v6321_v5 = vld [vmem:[#allocation2 + $0x48] sm:$0xff] }
 0x1b8   : > { %v2111_v48 = vsel %vm6283_vm4, %v2030_v39, 0.0 }
 0x1b9   : > { %5386 = vst [vmem:[#allocation2 + $0x18] sm:$0xff] %v5347_v44   ;;  %v6291_v52 = vadd.f32 %v2111_v48, %v1793_v8  ;;  %v1013_v23 = vand.u32 15, %v917_v4  ;;  %v5214_v48 = vld [vmem:[#allocation11 + $0xdc] sm:$0xf] }
 0x1ba   : > { %v6293_v53 = vpop.f32.mrf.mxu0  ;;  %v4869_v2 = vor.u32 %v5214_v48, %v4866_v49 }
 0x1bb   : > { %v7818_v28 = vrot.slane %v6293_v53, 7  ;;  %2742 = vmatpush.bf16.msrb.mxu3 %v4893_v30  ;;  %vm6311_vm5 = vcmp.ne.s32.totalorder %v1013_v23, 0  ;;  %v4857_v23 = vor.u32 %v5211_v13, %v4854_v16 }
 0x1bc   : > { %v1706_v61 = vpop.f32.mrf.mxu3 }
 0x1bd   : > { %2697 = vmatmul.bf16.gmra.mxu0 %v6295_v58  ;;  %v1983_v3 = vrot.slane %v1706_v61, 7  ;;  %v4700_v61 = vld [vmem:[#allocation11 + $0x8] sm:$0xf] }
 0x1be   : > { %v1798_v7 = vpop.f32.mrf.mxu1 }
 0x1bf   : > { %v2029_v8 = vsel %vm7868_vm0, %v1982_v40, %v1983_v3  ;;  %v5217_v40 = vld [vmem:[#allocation11 + $0xf4] sm:$0xf] }
 0x1c0   : > { %v5168_v11 = vld [vmem:[#allocation2 + $0x18] sm:$0xff]  ;;  %v6301_v12 = vadd.f32 %v2029_v8, %v1795_v45  ;;  %v4881_v44 = vor.u32 %v5217_v40, %v4878_v41  ;;  %v4701_v8 = vor.u32 %v5173_v63, %v4700_v61 }
 0x1c1   : > { %1748 = vmatmul.bf16.gmra.mxu3 %v5168_v11  ;;  %1837 = vmatmul.bf16.gmra.mxu2 %v5168_v11 }
 0x1c2   : > { %v2660_v22 = vpop.f32.mrf.mxu0  ;;  %2845 = vmatmul.bf16.gmra.mxu1 %v6191_v35  ;;  %2743 = vmatpush.bf16.msrb.mxu3 %v4881_v44 }
 0x1c3   : > { %v2949_v29 = vrot.slane %v2660_v22, 7  ;;  %1860 = vmatpush.bf16.msra.mxu2 %v4701_v8  ;;  %v6348_v8 = vld [vmem:[#allocation2 + $0x58] sm:$0xff] }
 0x1c4   : > { %v1709_v34 = vpop.f32.mrf.mxu3 }
 0x1c5   : > { %v6309_v32 = vsel %vm7868_vm0, %v7818_v28, %v2949_v29  ;;  %v1984_v43 = vrot.slane %v1709_v34, 7  ;;  %v1027_v34 = vand.u32 15, %v919_v21 }
 0x1c6   : > { %v1800_v45 = vpop.f32.mrf.mxu1  ;;  %2744 = vmatpush.bf16.msrb.mxu3 %v4869_v2 }
 0x1c7   : > { %v2028_v46 = vsel %vm7868_vm0, %v1983_v3, %v1984_v43  ;;  %vm6338_vm6 = vcmp.ne.s32.totalorder %v1027_v34, 0 }
 0x1c8   : > { %v2113_v39 = vsel %vm6311_vm5, %v2028_v46, 0.0  ;;  %v5096_v46 = vld [vmem:[#allocation11 + $0x228] sm:$0xf] }
 0x1c9   : > { %v6319_v57 = vadd.f32 %v2113_v39, %v1798_v7  ;;  %v5273_v39 = vld [vmem:[#allocation11 + $0x230] sm:$0xf0] }
 0x1ca   : > { %v2663_v59 = vpop.f32.mrf.mxu0  ;;  %2745 = vmatpush.bf16.msrb.mxu3 %v4857_v23  ;;  %v5097_v48 = vor.u32 %v5273_v39, %v5096_v46  ;;  %v7946_v46 = vmov 0 }
 0x1cb   : > { %v2950_v4 = vrot.slane %v2663_v59, 7 }
 0x1cc   : > { %v1711_v3 = vpop.f32.mrf.mxu3  ;;  %3494 = vmatpush.bf16.msrb.mxu2 %v5097_v48 }
 0x1cd   : > { %v6325_v11 = vsel %vm7868_vm0, %v2949_v29, %v2950_v4  ;;  %2702 = vmatmul.bf16.gmra.mxu0 %v6321_v5  ;;  %v1985_v7 = vrot.slane %v1711_v3, 7 }
 0x1ce   : > { %v1803_v22 = vpop.f32.mrf.mxu1 }
 0x1cf   : > { %v2027_v26 = vsel %vm7868_vm0, %v1984_v43, %v1985_v7  ;;  %v7941_v43 = vmov 0 }
 0x1d0   : > { %v6331_v30 = vadd.f32 %v2027_v26, %v1800_v45  ;;  %v7942_v43 = vsel %vm6338_vm6, 4294967295, %v7941_v43 }
 0x1d1   : > { %1753 = vmatmul.bf16.gmra.mxu3 %v5169_v27  ;;  %1842 = vmatmul.bf16.gmra.mxu2 %v5169_v27  ;;  %7943 = vst [vmem:[#allocation31_spill] sm:$0xff] %v7942_v43 }
 0x1d2   : > { %7940 = vst [vmem:[#allocation30_spill] sm:$0xff] %v6331_v30  ;;  %v2665_v29 = vpop.f32.mrf.mxu0  ;;  %2850 = vmatmul.bf16.gmra.mxu1 %v6196_v54 }
 0x1d3   : > { %v2951_v40 = vrot.slane %v2665_v29, 7 }
 0x1d4   : > { %v1714_v44 = vpop.f32.mrf.mxu3 }
 0x1d5   : > { %v6336_v41 = vsel %vm7868_vm0, %v2950_v4, %v2951_v40  ;;  %v1986_v45 = vrot.slane %v1714_v44, 7 }
 0x1d6   : > { %v1805_v49 = vpop.f32.mrf.mxu1 }
 0x1d7   : > { %v2026_v59 = vsel %vm7868_vm0, %v1985_v7, %v1986_v45  ;;  %v921_v7 = vadd.s32 112, %v6207_v18 }
 0x1d8   : > { %v2115_v61 = vsel %vm6338_vm6, %v2026_v59, 0.0 }
 0x1d9   : > { %v6346_v63 = vadd.f32 %v2115_v61, %v1803_v22  ;;  %v5170_v22 = vld [vmem:[#allocation2 + $0x38] sm:$0xff]  ;;  %v1041_v29 = vand.u32 15, %v921_v7 }
 0x1da   : > { %v2668_v2 = vpop.f32.mrf.mxu0 }
 0x1db   : > { %7944 = vst [vmem:[#allocation32_spill] sm:$0xff] %v6346_v63  ;;  %v2952_v4 = vrot.slane %v2668_v2, 7  ;;  %vm6365_vm7 = vcmp.ne.s32.totalorder %v1041_v29, 0 }
 0x1dc   : > { %v1716_v13 = vpop.f32.mrf.mxu3  ;;  %v7947_v46 = vsel %vm6365_vm7, 4294967295, %v7946_v46 }
 0x1dd   : > { %v6352_v3 = vsel %vm7868_vm0, %v2951_v40, %v2952_v4  ;;  %2707 = vmatmul.bf16.gmra.mxu0 %v6348_v8  ;;  %v1987_v16 = vrot.slane %v1716_v13, 7  ;;  %7948 = vst [vmem:[#allocation34_spill] sm:$0xff] %v7947_v46  ;;  %v6375_v13 = vld [vmem:[#allocation2 + $0x30] sm:$0xff] }
 0x1de   : > { %v1808_v21 = vpop.f32.mrf.mxu1 }
 0x1df   : > { %v2025_v23 = vsel %vm7868_vm0, %v1986_v45, %v1987_v16 }
 0x1e0   : > { %v6358_v26 = vadd.f32 %v2025_v23, %v1805_v49 }
 0x1e1   : > { %1758 = vmatmul.bf16.gmra.mxu3 %v5170_v22  ;;  %1847 = vmatmul.bf16.gmra.mxu2 %v5170_v22  ;;  %v923_v22 = vadd.s32 128, %v6207_v18 }
 0x1e2   : > { %7945 = vst [vmem:[#allocation33_spill] sm:$0xff] %v6358_v26  ;;  %v2670_v27 = vpop.f32.mrf.mxu0  ;;  %2855 = vmatmul.bf16.gmra.mxu1 %v6209_v19  ;;  %v5254_v26 = vld [vmem:[#allocation11 + $0x19c] sm:$0xf] }
 0x1e3   : > { %v2953_v34 = vrot.slane %v2670_v27, 7 }
 0x1e4   : > { %v1719_v44 = vpop.f32.mrf.mxu3 }
 0x1e5   : > { %v6363_v40 = vsel %vm7868_vm0, %v2952_v4, %v2953_v34  ;;  %v1988_v39 = vrot.slane %v1719_v44, 7  ;;  %v1055_v44 = vand.u32 15, %v923_v22 }
 0x1e6   : > { %v1810_v45 = vpop.f32.mrf.mxu1 }
 0x1e7   : > { %v2024_v48 = vsel %vm7868_vm0, %v1987_v16, %v1988_v39  ;;  %vm6394_vm8 = vcmp.ne.s32.totalorder %v1055_v44, 0  ;;  %v5098_v44 = vld [vmem:[#allocation11 + $0x234] sm:$0xf0] }
 0x1e8   : > { %v2117_v49 = vsel %vm6365_vm7, %v2024_v48, 0.0  ;;  %v5084_v48 = vld [vmem:[#allocation11 + $0x210] sm:$0xf] }
 0x1e9   : > { %v6373_v59 = vadd.f32 %v2117_v49, %v1808_v21  ;;  %v5270_v49 = vld [vmem:[#allocation11 + $0x218] sm:$0xf0] }
 0x1ea   : > { %v2673_v61 = vpop.f32.mrf.mxu0 }
 0x1eb   : > { %7949 = vst [vmem:[#allocation35_spill] sm:$0xff] %v6373_v59  ;;  %v2954_v2 = vrot.slane %v2673_v61, 7  ;;  %v5085_v61 = vor.u32 %v5270_v49, %v5084_v48  ;;  %v5272_v49 = vld [vmem:[#allocation11 + $0x22c] sm:$0xf] }
 0x1ec   : > { %v1721_v7 = vpop.f32.mrf.mxu3 }
 0x1ed   : > { %v6379_v4 = vsel %vm7868_vm0, %v2953_v34, %v2954_v2  ;;  %2712 = vmatmul.bf16.gmra.mxu0 %v6375_v13  ;;  %v1989_v23 = vrot.slane %v1721_v7, 7  ;;  %3495 = vmatpush.bf16.msrb.mxu2 %v5085_v61  ;;  %v5101_v61 = vor.u32 %v5272_v49, %v5098_v44  ;;  %v5266_v44 = vld [vmem:[#allocation11 + $0x1fc] sm:$0xf] }
 0x1ee   : > { %v1813_v16 = vpop.f32.mrf.mxu1 }
 0x1ef   : > { %v2023_v27 = vsel %vm7868_vm0, %v1988_v39, %v1989_v23  ;;  %v7951_v39 = vmov 0  ;;  %3583 = vmatpush.bf16.msra.mxu0 %v5101_v61 }
 0x1f0   : > { %v6385_v21 = vadd.f32 %v2023_v27, %v1810_v45  ;;  %v7952_v39 = vsel %vm6394_vm8, 4294967295, %v7951_v39 }
 0x1f1   : > { %1861 = vmatmul.bf16.vlgmr.msra.gmra.mxu2 %v6132_v31  ;;  %2746 = vmatmul.bf16.vlgmr.msrb.gmra.mxu3 %v6180_v6  ;;  %7953 = vst [vmem:[#allocation37_spill] sm:$0xff] %v7952_v39  ;;  %v925_v39 = vadd.s32 144, %v6207_v18 }
 0x1f2   : > { %7950 = vst [vmem:[#allocation36_spill] sm:$0xff] %v6385_v21  ;;  %v2675_v29 = vpop.f32.mrf.mxu0  ;;  %2860 = vmatmul.bf16.gmra.mxu1 %v6231_v50 }
 0x1f3   : > { %v2955_v34 = vrot.slane %v2675_v29, 7 }
 0x1f4   : > { %v1724_v28 = vpop.f32.mrf.mxu3 }
 0x1f5   : > { %v6392_v7 = vsel %vm7868_vm0, %v2954_v2, %v2955_v34  ;;  %v1990_v45 = vrot.slane %v1724_v28, 7  ;;  %v6404_v2 = vld [vmem:[#allocation2 + $0x18] sm:$0xff] }
 0x1f6   : > { %v1815_v31 = vpop.f32.mrf.mxu1 }
 0x1f7   : > { %v2022_v6 = vsel %vm7868_vm0, %v1989_v23, %v1990_v45 }
 0x1f8   : > { %v2119_v22 = vsel %vm6394_vm8, %v2022_v6, 0.0 }
 0x1f9   : > { %v6402_v27 = vadd.f32 %v2119_v22, %v1813_v16  ;;  %v5269_v22 = vld [vmem:[#allocation11 + $0x214] sm:$0xf] }
 0x1fa   : > { %v2678_v29 = vpop.f32.mrf.mxu0 }
 0x1fb   : > { %7954 = vst [vmem:[#allocation38_spill] sm:$0xff] %v6402_v27  ;;  %v2956_v48 = vrot.slane %v2678_v29, 7  ;;  %v5086_v29 = vld [vmem:[#allocation11 + $0x21c] sm:$0xf0] }
 0x1fc   : > { %v1726_v28 = vpop.f32.mrf.mxu3  ;;  %v5089_v21 = vor.u32 %v5269_v22, %v5086_v29 }
 0x1fd   : > { %v6408_v33 = vsel %vm7868_vm0, %v2955_v34, %v2956_v48  ;;  %2717 = vmatmul.bf16.gmra.mxu0 %v6404_v2  ;;  %v1991_v23 = vrot.slane %v1726_v28, 7  ;;  %v1069_v34 = vand.u32 15, %v925_v39  ;;  %v5074_v28 = vld [vmem:[#allocation11 + $0x204] sm:$0xf0] }
 0x1fe   : > { %v1818_v6 = vpop.f32.mrf.mxu1  ;;  %3584 = vmatpush.bf16.msra.mxu0 %v5089_v21  ;;  %v5077_v59 = vor.u32 %v5266_v44, %v5074_v28  ;;  %v5062_v21 = vld [vmem:[#allocation11 + $0x1ec] sm:$0xf0]  ;;  %v5260_v28 = vld [vmem:[#allocation11 + $0x1cc] sm:$0xf] }
 0x1ff   : > { %v2021_v16 = vsel %vm7868_vm0, %v1990_v45, %v1991_v23  ;;  %vm6423_vm9 = vcmp.ne.s32.totalorder %v1069_v34, 0  ;;  %v6433_v34 = vld [vmem:[#allocation2 + $0x50] sm:$0xff] }
 0x200   : > { %v6414_v27 = vadd.f32 %v2021_v16, %v1815_v31  ;;  %v7956_v31 = vmov 0 }
 0x201   : > { %1866 = vmatmul.bf16.gmra.mxu2 %v6153_v55  ;;  %2751 = vmatmul.bf16.gmra.mxu3 %v6186_v24  ;;  %v7957_v31 = vsel %vm6423_vm9, 4294967295, %v7956_v31 }
 0x202   : > { %7955 = vst [vmem:[#allocation39_spill] sm:$0xff] %v6414_v27  ;;  %v2680_v46 = vpop.f32.mrf.mxu0  ;;  %2865 = vmatmul.bf16.gmra.mxu1 %v6251_v25  ;;  %3585 = vmatpush.bf16.msra.mxu0 %v5077_v59 }
 0x203   : > { %v2957_v49 = vrot.slane %v2680_v46, 7  ;;  %7958 = vst [vmem:[#allocation40_spill] sm:$0xff] %v7957_v31  ;;  %v5263_v46 = vld [vmem:[#allocation11 + $0x1e4] sm:$0xf] }
 0x204   : > { %v1729_v61 = vpop.f32.mrf.mxu3  ;;  %v5065_v22 = vor.u32 %v5263_v46, %v5062_v21  ;;  %v5257_v21 = vld [vmem:[#allocation11 + $0x1b4] sm:$0xf] }
 0x205   : > { %v6421_v45 = vsel %vm7868_vm0, %v2956_v48, %v2957_v49  ;;  %v1992_v55 = vrot.slane %v1729_v61, 7  ;;  %v5050_v61 = vld [vmem:[#allocation11 + $0x1d4] sm:$0xf0] }
 0x206   : > { %v1820_v16 = vpop.f32.mrf.mxu1  ;;  %3586 = vmatpush.bf16.msra.mxu0 %v5065_v22  ;;  %v5053_v27 = vor.u32 %v5260_v28, %v5050_v61  ;;  %v5072_v61 = vld [vmem:[#allocation11 + $0x1f8] sm:$0xf] }
 0x207   : > { %v2020_v24 = vsel %vm7868_vm0, %v1991_v23, %v1992_v55 }
 0x208   : > { %v2121_v39 = vsel %vm6423_vm9, %v2020_v24, 0.0  ;;  %v927_v24 = vadd.s32 160, %v6207_v18 }
 0x209   : > { %v6431_v29 = vadd.f32 %v2121_v39, %v1818_v6  ;;  %v5038_v39 = vld [vmem:[#allocation11 + $0x1bc] sm:$0xf0] }
 0x20a   : > { %v2683_v48 = vpop.f32.mrf.mxu0  ;;  %3587 = vmatpush.bf16.msra.mxu0 %v5053_v27  ;;  %v5267_v27 = vld [vmem:[#allocation11 + $0x200] sm:$0xf0] }
 0x20b   : > { %7959 = vst [vmem:[#allocation41_spill] sm:$0xff] %v6431_v29  ;;  %v2958_v44 = vrot.slane %v2683_v48, 7  ;;  %v5041_v48 = vor.u32 %v5257_v21, %v5038_v39  ;;  %v5014_v21 = vld [vmem:[#allocation11 + $0x18c] sm:$0xf0] }
 0x20c   : > { %v1731_v23 = vpop.f32.mrf.mxu3 }
 0x20d   : > { %v6437_v59 = vsel %vm7868_vm0, %v2957_v49, %v2958_v44  ;;  %2722 = vmatmul.bf16.gmra.mxu0 %v6433_v34  ;;  %v1993_v31 = vrot.slane %v1731_v23, 7  ;;  %v1083_v49 = vand.u32 15, %v927_v24  ;;  %v5073_v23 = vor.u32 %v5267_v27, %v5072_v61  ;;  %v6462_v61 = vld [vmem:[#allocation2 + $0x38] sm:$0xff] }
 0x20e   : > { %v1823_v6 = vpop.f32.mrf.mxu1  ;;  %3588 = vmatpush.bf16.msra.mxu0 %v5041_v48  ;;  %v929_v27 = vadd.s32 176, %v6207_v18 }
 0x20f   : > { %v2019_v46 = vsel %vm7868_vm0, %v1992_v55, %v1993_v31  ;;  %v5026_v55 = vld [vmem:[#allocation11 + $0x1a4] sm:$0xf0]  ;;  %vm6452_vm10 = vcmp.ne.s32.totalorder %v1083_v49, 0  ;;  %3496 = vmatpush.bf16.msrb.mxu2 %v5073_v23 }
 0x210   : > { %v6443_v22 = vadd.f32 %v2019_v46, %v1820_v16  ;;  %v5029_v63 = vor.u32 %v5254_v26, %v5026_v55  ;;  %v5251_v46 = vld [vmem:[#allocation11 + $0x184] sm:$0xf] }
 0x211   : > { %1871 = vmatmul.bf16.gmra.mxu2 %v6161_v14  ;;  %2756 = vmatmul.bf16.gmra.mxu3 %v6191_v35  ;;  %v7962_v14 = vmov 0  ;;  %v5017_v39 = vor.u32 %v5251_v46, %v5014_v21  ;;  %v5529_v46 = vld [vmem:[#allocation2 + $0x80] sm:$0xff] }
 0x212   : > { %7960 = vst [vmem:[#allocation42_spill] sm:$0xff] %v6443_v22  ;;  %v2685_v29 = vpop.f32.mrf.mxu0  ;;  %2870 = vmatmul.bf16.gmra.mxu1 %v6272_v62  ;;  %v7963_v14 = vsel %vm6452_vm10, 4294967295, %v7962_v14  ;;  %3589 = vmatpush.bf16.msra.mxu0 %v5029_v63 }
 0x213   : > { %v2959_v28 = vrot.slane %v2685_v29, 7  ;;  %7964 = vst [vmem:[#allocation44_spill] sm:$0xff] %v7963_v14  ;;  %v931_v14 = vadd.s32 192, %v6207_v18 }
 0x214   : > { %v1734_v43 = vpop.f32.mrf.mxu3 }
 0x215   : > { %v6450_v16 = vsel %vm7868_vm0, %v2958_v44, %v2959_v28  ;;  %v1994_v35 = vrot.slane %v1734_v43, 7 }
 0x216   : > { %7961 = vst [vmem:[#allocation43_spill] sm:$0xff] %v6450_v16  ;;  %v1825_v29 = vpop.f32.mrf.mxu1  ;;  %3590 = vmatpush.bf16.msra.mxu0 %v5017_v39  ;;  %v6566_v16 = vld [vmem:[#allocation2 + $0x80] sm:$0xff] }
 0x217   : > { %v2018_v24 = vsel %vm7868_vm0, %v1993_v31, %v1994_v35  ;;  %7989 = vst [vmem:[#allocation63_spill] sm:$0xff] %v6566_v16 }
 0x218   : > { %v2123_v26 = vsel %vm6452_vm10, %v2018_v24, 0.0 }
 0x219   : > { %v6460_v48 = vadd.f32 %v2123_v26, %v1823_v6 }
 0x21a   : > { %v2688_v44 = vpop.f32.mrf.mxu0 }
 0x21b   : > { %7965 = vst [vmem:[#allocation45_spill] sm:$0xff] %v6460_v48  ;;  %v2960_v49 = vrot.slane %v2688_v44, 7  ;;  %v1111_v48 = vand.u32 15, %v931_v14  ;;  %v7977_v14 = vmov 0 }
 0x21c   : > { %v1736_v63 = vpop.f32.mrf.mxu3 }
 0x21d   : > { %v6466_v43 = vsel %vm7868_vm0, %v2959_v28, %v2960_v49  ;;  %2727 = vmatmul.bf16.gmra.mxu0 %v6462_v61  ;;  %v1995_v31 = vrot.slane %v1736_v63, 7  ;;  %v1097_v28 = vand.u32 15, %v929_v27  ;;  %v7970_v63 = vmov 0 }
 0x21e   : > { %7966 = vst [vmem:[#allocation46_spill] sm:$0xff] %v6466_v43  ;;  %vm6520_vm13 = vcmp.ne.s32.totalorder %v1111_v48, 0 }
 0x21f   : > { %v2017_v23 = vsel %vm7868_vm0, %v1994_v35, %v1995_v31  ;;  %v6472_v6 = vpop.f32.mrf.mxu1  ;;  %vm6482_vm11 = vcmp.ne.s32.totalorder %v1097_v28, 0  ;;  %v7978_v14 = vsel %vm6520_vm13, 4294967295, %v7977_v14 }
 0x220   : > { %7967 = vst [vmem:[#allocation47_spill] sm:$0xff] %v6472_v6  ;;  %v6474_v55 = vadd.f32 %v2017_v23, %v1825_v29  ;;  %v7971_v63 = vsel %vm6482_vm11, 4294967295, %v7970_v63 }
 0x221   : > { %1876 = vmatmul.bf16.gmra.mxu2 %v5529_v46  ;;  %2761 = vmatmul.bf16.gmra.mxu3 %v6196_v54  ;;  %7972 = vst [vmem:[#allocation50_spill] sm:$0xff] %v7971_v63 }
 0x222   : > { %7968 = vst [vmem:[#allocation48_spill] sm:$0xff] %v6474_v55  ;;  %v2690_v24 = vpop.f32.mrf.mxu0  ;;  %2875 = vmatmul.bf16.gmra.mxu1 %v6295_v58  ;;  %v6494_v55 = vld [vmem:[#allocation2 + $0x20] sm:$0xff] }
 0x223   : > { %v2961_v21 = vrot.slane %v2690_v24, 7  ;;  %7979 = vst [vmem:[#allocation55_spill] sm:$0xff] %v7978_v14 }
 0x224   : > { %v1739_v26 = vpop.f32.mrf.mxu3  ;;  %v1828_v39 = vpop.f32.mrf.mxu2 }
 0x225   : > { %v6480_v44 = vsel %vm7868_vm0, %v2960_v49, %v2961_v21  ;;  %v1996_v35 = vrot.slane %v1739_v26, 7 }
 0x226   : > { %7969 = vst [vmem:[#allocation49_spill] sm:$0xff] %v6480_v44 }
 0x227   : > { %v2016_v29 = vsel %vm7868_vm0, %v1995_v31, %v1996_v35  ;;  %v6488_v23 = vpop.f32.mrf.mxu1 }
 0x228   : > { %v2125_v54 = vsel %vm6482_vm11, %v2016_v29, 0.0 }
 0x229   : > { %v6492_v27 = vadd.f32 %v2125_v54, %v1828_v39  ;;  %v7832_v54 = vrot.slane %v6488_v23, 1 }
 0x22a   : > { %v2693_v24 = vpop.f32.mrf.mxu0 }
 0x22b   : > { %7973 = vst [vmem:[#allocation51_spill] sm:$0xff] %v6492_v27  ;;  %v2962_v46 = vrot.slane %v2693_v24, 7  ;;  %v5530_v27 = vld [vmem:[#allocation2 + $0x60] sm:$0xff] }
 0x22c   : > { %v1741_v28 = vpop.f32.mrf.mxu3  ;;  %v1830_v26 = vpop.f32.mrf.mxu2 }
 0x22d   : > { %v6498_v49 = vsel %vm7868_vm0, %v2961_v21, %v2962_v46  ;;  %2732 = vmatmul.bf16.gmra.mxu0 %v6494_v55  ;;  %v1997_v31 = vrot.slane %v1741_v28, 7 }
 0x22e   : > { %7974 = vst [vmem:[#allocation52_spill] sm:$0xff] %v6498_v49 }
 0x22f   : > { %v2015_v29 = vsel %vm7868_vm0, %v1996_v35, %v1997_v31  ;;  %v2841_v39 = vpop.f32.mrf.mxu1 }
 0x230   : > { %v6505_v24 = vadd.f32 %v2015_v29, %v1830_v26  ;;  %v3078_v63 = vrot.slane %v2841_v39, 1  ;;  %v5060_v26 = vld [vmem:[#allocation11 + $0x1e0] sm:$0xf]  ;;  %v5264_v29 = vld [vmem:[#allocation11 + $0x1e8] sm:$0xf0] }
 0x231   : > { %1881 = vmatmul.bf16.gmra.mxu2 %v5530_v27  ;;  %2766 = vmatmul.bf16.gmra.mxu3 %v6209_v19  ;;  %v5061_v39 = vor.u32 %v5264_v29, %v5060_v26 }
 0x232   : > { %7975 = vst [vmem:[#allocation53_spill] sm:$0xff] %v6505_v24  ;;  %v2695_v21 = vpop.f32.mrf.mxu0  ;;  %v6513_v28 = vsel %vm7852_vm12, %v7832_v54, %v3078_v63  ;;  %2880 = vmatmul.bf16.gmra.mxu1 %v6321_v5 }
 0x233   : > { %v2963_v35 = vrot.slane %v2695_v21, 7  ;;  %3497 = vmatpush.bf16.msrb.mxu2 %v5061_v39 }
 0x234   : > { %v1744_v24 = vpop.f32.mrf.mxu3  ;;  %v1833_v22 = vpop.f32.mrf.mxu2 }
 0x235   : > { %v6518_v27 = vsel %vm7868_vm0, %v2962_v46, %v2963_v35  ;;  %v1998_v19 = vrot.slane %v1744_v24, 7  ;;  %v6530_v46 = vld [vmem:[#allocation2 + $0x40] sm:$0xff] }
 0x236   : > { %7976 = vst [vmem:[#allocation54_spill] sm:$0xff] %v6518_v27 }
 0x237   : > { %v2014_v21 = vsel %vm7868_vm0, %v1997_v31, %v1998_v19  ;;  %v2843_v54 = vpop.f32.mrf.mxu1  ;;  %7981 = vst [vmem:[#allocation57_spill] sm:$0xff] %v6530_v46 }
 0x238   : > { %v2127_v49 = vsel %vm6520_vm13, %v2014_v21, 0.0  ;;  %v3079_v26 = vrot.slane %v2843_v54, 1 }
 0x239   : > { %v6528_v29 = vadd.f32 %v2127_v49, %v1833_v22  ;;  %v933_v22 = vadd.s32 208, %v6207_v18 }
 0x23a   : > { %v2698_v44 = vpop.f32.mrf.mxu0  ;;  %v6534_v48 = vsel %vm7852_vm12, %v3078_v63, %v3079_v26 }
 0x23b   : > { %7980 = vst [vmem:[#allocation56_spill] sm:$0xff] %v6528_v29  ;;  %v2964_v43 = vrot.slane %v2698_v44, 7  ;;  %v5531_v29 = vld [vmem:[#allocation2 + $0x28] sm:$0xff] }
 0x23c   : > { %v1746_v31 = vpop.f32.mrf.mxu3  ;;  %v1835_v39 = vpop.f32.mrf.mxu2 }
 0x23d   : > { %v6538_v24 = vsel %vm7868_vm0, %v2963_v35, %v2964_v43  ;;  %3591 = vmatmul.bf16.vlgmr.msra.gmra.mxu0 %v6530_v46  ;;  %v1999_v21 = vrot.slane %v1746_v31, 7  ;;  %v1125_v35 = vand.u32 15, %v933_v22 }
 0x23e   : > { %7982 = vst [vmem:[#allocation58_spill] sm:$0xff] %v6538_v24 }
 0x23f   : > { %v2013_v44 = vsel %vm7868_vm0, %v1998_v19, %v1999_v21  ;;  %v2846_v49 = vpop.f32.mrf.mxu1  ;;  %vm6556_vm14 = vcmp.ne.s32.totalorder %v1125_v35, 0 }
 0x240   : > { %v6544_v54 = vadd.f32 %v2013_v44, %v1835_v39  ;;  %v3080_v14 = vrot.slane %v2846_v49, 1  ;;  %v7985_v44 = vmov 0 }
 0x241   : > { %1886 = vmatmul.bf16.gmra.mxu2 %v5531_v29  ;;  %2771 = vmatmul.bf16.gmra.mxu3 %v6231_v50  ;;  %v7986_v44 = vsel %vm6556_vm14, 4294967295, %v7985_v44 }
 0x242   : > { %7983 = vst [vmem:[#allocation59_spill] sm:$0xff] %v6544_v54  ;;  %v2700_v63 = vpop.f32.mrf.mxu0  ;;  %v6549_v24 = vsel %vm7852_vm12, %v3079_v26, %v3080_v14  ;;  %2885 = vmatmul.bf16.gmra.mxu1 %v6348_v8 }
 0x243   : > { %v2965_v31 = vrot.slane %v2700_v63, 7  ;;  %7987 = vst [vmem:[#allocation61_spill] sm:$0xff] %v7986_v44 }
 0x244   : > { %v1749_v27 = vpop.f32.mrf.mxu3  ;;  %v1838_v46 = vpop.f32.mrf.mxu2 }
 0x245   : > { %v6554_v19 = vsel %vm7868_vm0, %v2964_v43, %v2965_v31  ;;  %v2000_v39 = vrot.slane %v1749_v27, 7 }
 0x246   : > { %7984 = vst [vmem:[#allocation60_spill] sm:$0xff] %v6554_v19  ;;  %v5048_v19 = vld [vmem:[#allocation11 + $0x1c8] sm:$0xf] }
 0x247   : > { %v2012_v50 = vsel %vm7868_vm0, %v1999_v21, %v2000_v39  ;;  %v2848_v29 = vpop.f32.mrf.mxu1 }
 0x248   : > { %v2129_v26 = vsel %vm6556_vm14, %v2012_v50, 0.0  ;;  %v3081_v22 = vrot.slane %v2848_v29, 1  ;;  %vm8020_vm14 = vcmp.lt.s32.totalorder %v6207_v18, 7 }
 0x249   : > { %v6564_v49 = vadd.f32 %v2129_v26, %v1838_v46  ;;  %v935_v46 = vadd.s32 224, %v6207_v18 }
 0x24a   : > { %v2703_v63 = vpop.f32.mrf.mxu0  ;;  %v6570_v43 = vsel %vm7852_vm12, %v3080_v14, %v3081_v22 }
 0x24b   : > { %7988 = vst [vmem:[#allocation62_spill] sm:$0xff] %v6564_v49  ;;  %v2966_v54 = vrot.slane %v2703_v63, 7  ;;  %v5532_v49 = vld [vmem:[#allocation2 + $0x10] sm:$0xff] }
 0x24c   : > { %v1751_v21 = vpop.f32.mrf.mxu3  ;;  %v1840_v35 = vpop.f32.mrf.mxu2 }
 0x24d   : > { %v6574_v27 = vsel %vm7868_vm0, %v2965_v31, %v2966_v54  ;;  %3596 = vmatmul.bf16.gmra.mxu0 %v6566_v16  ;;  %v2001_v50 = vrot.slane %v1751_v21, 7  ;;  %v1139_v31 = vand.u32 15, %v935_v46  ;;  %v5261_v16 = vld [vmem:[#allocation11 + $0x1d0] sm:$0xf0] }
 0x24e   : > { %7990 = vst [vmem:[#allocation64_spill] sm:$0xff] %v6574_v27 }
 0x24f   : > { %v2011_v29 = vsel %vm7868_vm0, %v2000_v39, %v2001_v50  ;;  %v2851_v26 = vpop.f32.mrf.mxu1  ;;  %v5049_v39 = vor.u32 %v5261_v16, %v5048_v19  ;;  %vm6592_vm15 = vcmp.ne.s32.totalorder %v1139_v31, 0 }
 0x250   : > { %v6580_v63 = vadd.f32 %v2011_v29, %v1840_v35  ;;  %v3082_v44 = vrot.slane %v2851_v26, 1 }
 0x251   : > { %1891 = vmatmul.bf16.gmra.mxu2 %v5532_v49  ;;  %2776 = vmatmul.bf16.gmra.mxu3 %v6251_v25  ;;  %v7993_v25 = vmov 0 }
 0x252   : > { %7991 = vst [vmem:[#allocation65_spill] sm:$0xff] %v6580_v63  ;;  %v2705_v14 = vpop.f32.mrf.mxu0  ;;  %v6585_v27 = vsel %vm7852_vm12, %v3081_v22, %v3082_v44  ;;  %2890 = vmatmul.bf16.gmra.mxu1 %v6375_v13  ;;  %v7994_v25 = vsel %vm6592_vm15, 4294967295, %v7993_v25  ;;  %3498 = vmatpush.bf16.msrb.mxu2 %v5049_v39 }
 0x253   : > { %v2967_v21 = vrot.slane %v2705_v14, 7  ;;  %7995 = vst [vmem:[#allocation67_spill] sm:$0xff] %v7994_v25 }
 0x254   : > { %v1754_v30 = vpop.f32.mrf.mxu3  ;;  %v1843_v35 = vpop.f32.mrf.mxu2 }
 0x255   : > { %v6590_v29 = vsel %vm7868_vm0, %v2966_v54, %v2967_v21  ;;  %v2002_v49 = vrot.slane %v1754_v30, 7  ;;  %v6602_v54 = vld [vmem:[#allocation2 + $0x60] sm:$0xff] }
 0x256   : > { %7992 = vst [vmem:[#allocation66_spill] sm:$0xff] %v6590_v29  ;;  %v6643_v29 = vld [vmem:[#allocation2 + $0x28] sm:$0xff] }
 0x257   : > { %v2010_v22 = vsel %vm7868_vm0, %v2001_v50, %v2002_v49  ;;  %v2853_v46 = vpop.f32.mrf.mxu1  ;;  %7997 = vst [vmem:[#allocation69_spill] sm:$0xff] %v6602_v54 }
 0x258   : > { %v2131_v26 = vsel %vm6592_vm15, %v2010_v22, 0.0  ;;  %v3083_v16 = vrot.slane %v2853_v46, 1  ;;  %8005 = vst [vmem:[#allocation75_spill] sm:$0xff] %v6643_v29 }
 0x259   : > { %v6600_v19 = vadd.f32 %v2131_v26, %v1843_v35  ;;  %v937_v35 = vadd.s32 240, %v6207_v18 }
 0x25a   : > { %v2708_v14 = vpop.f32.mrf.mxu0  ;;  %v6606_v30 = vsel %vm7852_vm12, %v3082_v44, %v3083_v16 }
 0x25b   : > { %7996 = vst [vmem:[#allocation68_spill] sm:$0xff] %v6600_v19  ;;  %v2968_v63 = vrot.slane %v2708_v14, 7  ;;  %v5533_v19 = vld [vmem:[#allocation2 + $0x78] sm:$0xff] }
 0x25c   : > { %v1756_v50 = vpop.f32.mrf.mxu3  ;;  %v1845_v39 = vpop.f32.mrf.mxu2 }
 0x25d   : > { %v6610_v31 = vsel %vm7868_vm0, %v2967_v21, %v2968_v63  ;;  %3601 = vmatmul.bf16.gmra.mxu0 %v6602_v54  ;;  %v2003_v22 = vrot.slane %v1756_v50, 7  ;;  %v1153_v21 = vand.u32 15, %v937_v35 }
 0x25e   : > { %7998 = vst [vmem:[#allocation70_spill] sm:$0xff] %v6610_v31 }
 0x25f   : > { %v2009_v46 = vsel %vm7868_vm0, %v2002_v49, %v2003_v22  ;;  %v6616_v26 = vpop.f32.mrf.mxu1  ;;  %vm6633_vm15 = vcmp.ne.s32.totalorder %v1153_v21, 0 }
 0x260   : > { %v6618_v14 = vadd.f32 %v2009_v46, %v1845_v39  ;;  %v7845_v44 = vrot.slane %v6616_v26, 1 }
 0x261   : > { %1896 = vmatmul.bf16.gmra.mxu2 %v5533_v19  ;;  %2781 = vmatmul.bf16.gmra.mxu3 %v6272_v62  ;;  %v8001_v19 = vmov 0 }
 0x262   : > { %7999 = vst [vmem:[#allocation71_spill] sm:$0xff] %v6618_v14  ;;  %v2710_v25 = vpop.f32.mrf.mxu0  ;;  %v6626_v50 = vsel %vm7852_vm12, %v3083_v16, %v7845_v44  ;;  %2895 = vmatmul.bf16.gmra.mxu1 %v6404_v2  ;;  %v8002_v19 = vsel %vm6633_vm15, 4294967295, %v8001_v19 }
 0x263   : > { %v2969_v31 = vrot.slane %v2710_v25, 7  ;;  %8003 = vst [vmem:[#allocation73_spill] sm:$0xff] %v8002_v19  ;;  %v5534_v19 = vld [vmem:[#allocation2] sm:$0xff] }
 0x264   : > { %v1759_v49 = vpop.f32.mrf.mxu3  ;;  %v1848_v39 = vpop.f32.mrf.mxu2 }
 0x265   : > { %v6631_v46 = vsel %vm7868_vm0, %v2968_v63, %v2969_v31  ;;  %v2004_v14 = vrot.slane %v1759_v49, 7 }
 0x266   : > { %8000 = vst [vmem:[#allocation72_spill] sm:$0xff] %v6631_v46  ;;  %v1974_v46 = vrot.slane %v6202_v0, 7 }
 0x267   : > { %v2008_v62 = vsel %vm7868_vm0, %v2003_v22, %v2004_v14 }
 0x268   : > { %v2133_v16 = vsel %vm6633_vm15, %v2008_v62, 0.0  ;;  %vm8015_vm15 = vcmp.lt.s32.totalorder %v6207_v18, 7 }
 0x269   : > { %v6641_v25 = vadd.f32 %v2133_v16, %v1848_v39 }
 0x26a   : > { %v2713_v35 = vpop.f32.mrf.mxu0 }
 0x26b   : > { %8004 = vst [vmem:[#allocation74_spill] sm:$0xff] %v6641_v25  ;;  %v2970_v44 = vrot.slane %v2713_v35, 7  ;;  %v5036_v25 = vld [vmem:[#allocation11 + $0x1b0] sm:$0xf] }
 0x26c   : > { %v1761_v21 = vpop.f32.mrf.mxu3  ;;  %v1850_v49 = vpop.f32.mrf.mxu2 }
 0x26d   : > { %v6647_v63 = vsel %vm7868_vm0, %v2969_v31, %v2970_v44  ;;  %3606 = vmatmul.bf16.gmra.mxu0 %v6643_v29  ;;  %v2005_v22 = vrot.slane %v1761_v21, 7  ;;  %v943_v21 = vand.u32 15, %v6207_v18 }
 0x26e   : > { %8006 = vst [vmem:[#allocation76_spill] sm:$0xff] %v6647_v63  ;;  %v5258_v63 = vld [vmem:[#allocation11 + $0x1b8] sm:$0xf0] }
 0x26f   : > { %v2038_v62 = vsel %vm7868_vm0, %v2005_v22, %v1974_v46  ;;  %v2007_v39 = vsel %vm7868_vm0, %v2004_v14, %v2005_v22  ;;  %v5037_v0 = vor.u32 %v5258_v63, %v5036_v25  ;;  %vm6666_vm12 = vcmp.ne.s32.totalorder %v943_v21, 0  ;;  %v6670_v22 = vld [vmem:[#allocation2 + $0x10] sm:$0xff] }
 0x270   : > { %v6655_v16 = vadd.f32 %v2007_v39, %v1850_v49  ;;  %8013 = vst [vmem:[#allocation81_spill] sm:$0xff] %v6670_v22  ;;  %v2103_v25 = vsel %vm6666_vm12, %v2038_v62, 0.0  ;;  %v908_v62 = vadd.s32 8, %v6207_v18 }
 0x271   : > { %1901 = vmatmul.bf16.gmra.mxu2 %v5534_v19  ;;  %2786 = vmatmul.bf16.gmra.mxu3 %v6295_v58  ;;  %v8010_v19 = vmov 0  ;;  %v2135_v21 = vadd.f32 %v2103_v25, %v6198_v56  ;;  %v8016_v56 = vrot.slane %v6211_v20, 7 }
 0x272   : > { %8007 = vst [vmem:[#allocation77_spill] sm:$0xff] %v6655_v16  ;;  %v2715_v35 = vpop.f32.mrf.mxu0  ;;  %2900 = vmatmul.bf16.gmra.mxu1 %v6433_v34  ;;  %3499 = vmatpush.bf16.msrb.mxu2 %v5037_v0  ;;  %v8011_v19 = vsel %vm6666_vm12, 4294967295, %v8010_v19 }
 0x273   : > { %v2971_v31 = vrot.slane %v2715_v35, 7  ;;  %8012 = vst [vmem:[#allocation80_spill] sm:$0xff] %v8011_v19  ;;  %v2037_v25 = vsel %vm7868_vm0, %v1974_v46, %v8016_v56 }
 0x274   : > { %v6660_v29 = vpop.f32.mrf.mxu2  ;;  %v2747_v54 = vpop.f32.mrf.mxu3 }
 0x275   : > { %8008 = vst [vmem:[#allocation78_spill] sm:$0xff] %v6660_v29  ;;  %v6664_v14 = vsel %vm7868_vm0, %v2970_v44, %v2971_v31  ;;  %v7857_v35 = vrot.slane %v6660_v29, 1 }
 0x276   : > { %8009 = vst [vmem:[#allocation79_spill] sm:$0xff] %v6664_v14 }
 0x27a   : > { %v2718_v58 = vpop.f32.mrf.mxu0 }
 0x27b   : > { %v2972_v49 = vrot.slane %v2718_v58, 7 }
 0x27c   : > { %v1864_v44 = vpop.f32.mrf.mxu2  ;;  %v2749_v39 = vpop.f32.mrf.mxu3 }
 0x27d   : > { %v6676_v63 = vsel %vm7868_vm0, %v2971_v31, %v2972_v49  ;;  %3611 = vmatmul.bf16.gmra.mxu0 %v6670_v22  ;;  %v2168_v0 = vrot.slane %v1864_v44, 1  ;;  %v5535_v31 = vld [vmem:[#allocation2 + $0x88] sm:$0xff]  ;;  %v950_v44 = vand.u32 15, %v908_v62 }
 0x27e   : > { %8014 = vst [vmem:[#allocation82_spill] sm:$0xff] %v6676_v63 }
 0x27f   : > { %v2230_v58 = vsel %vm8015_vm15, %v7857_v35, %v2168_v0  ;;  %vm6699_vm15 = vcmp.ne.s32.totalorder %v950_v44, 15 }
 0x280   : > { %v2328_v16 = vadd.f32 %v2230_v58, %v2135_v21 }
 0x281   : > { %1906 = vmatmul.bf16.gmra.mxu2 %v5535_v31  ;;  %2791 = vmatmul.bf16.gmra.mxu3 %v6321_v5  ;;  %v2136_v5 = vadd.f32 %v2037_v25, %v6205_v9  ;;  %v6707_v31 = vld [vmem:[#allocation2 + $0x78] sm:$0xff]  ;;  %v3141_v25 = vsel %vm6699_vm15, %v6513_v28, 0.0 }
 0x282   : > { %v2720_v14 = vpop.f32.mrf.mxu0  ;;  %2905 = vmatmul.bf16.gmra.mxu1 %v6462_v61  ;;  %v6688_v22 = vadd.f32 %v2747_v54, %v2328_v16 }
 0x283   : > { %v2973_v63 = vrot.slane %v2720_v14, 7  ;;  %v8017_v14 = vmov 0 }
 0x284   : > { %v1867_v35 = vpop.f32.mrf.mxu2  ;;  %v2752_v29 = vpop.f32.mrf.mxu3  ;;  %v8018_v14 = vsel %vm6699_vm15, 4294967295, %v8017_v14 }
 0x285   : > { %v6696_v21 = vsel %vm7868_vm0, %v2972_v49, %v2973_v63  ;;  %v2169_v58 = vrot.slane %v1867_v35, 1  ;;  %8019 = vst [vmem:[#allocation83_spill] sm:$0xff] %v8018_v14 }
 0x287   : > { %v2229_v54 = vsel %vm8020_vm14, %v2168_v0, %v2169_v58 }
 0x288   : > { %v2297_v20 = vsel %vm6699_vm15, %v2229_v54, 0.0  ;;  %vm8024_vm15 = vcmp.lt.s32.totalorder %v6207_v18, 7 }
 0x289   : > { %v2329_v46 = vadd.f32 %v2297_v20, %v2136_v5  ;;  %v6724_v20 = vpop.f32.mrf.mxu1 }
 0x28a   : > { %v2723_v16 = vpop.f32.mrf.mxu0 }
 0x28b   : > { %v2974_v62 = vrot.slane %v2723_v16, 7  ;;  %v2917_v49 = vadd.f32 %v2749_v39, %v2329_v46  ;;  %v910_v39 = vadd.s32 24, %v6207_v18  ;;  %v5536_v16 = vld [vmem:[#allocation2 + $0x48] sm:$0xff] }
 0x28c   : > { %v1869_v9 = vpop.f32.mrf.mxu2  ;;  %v2754_v44 = vpop.f32.mrf.mxu3 }
 0x28d   : > { %v6711_v35 = vsel %vm7868_vm0, %v2973_v63, %v2974_v62  ;;  %3616 = vmatmul.bf16.gmra.mxu0 %v6707_v31  ;;  %v2170_v56 = vrot.slane %v1869_v9, 1  ;;  %v3045_v0 = vadd.f32 %v6309_v32, %v2917_v49  ;;  %v964_v49 = vand.u32 15, %v910_v39 }
 0x28f   : > { %v2228_v5 = vsel %vm8020_vm14, %v2169_v58, %v2170_v56  ;;  %v6721_v54 = vadd.f32 %v3141_v25, %v3045_v0  ;;  %v3014_v58 = vsel %vm6219_vm1, %v6325_v11, 0.0  ;;  %v5024_v25 = vld [vmem:[#allocation11 + $0x198] sm:$0xf]  ;;  %vm6738_vm14 = vcmp.ne.s32.totalorder %v964_v49, 15 }
 0x290   : > { %v2330_v63 = vadd.f32 %v2228_v5, %v6229_v47  ;;  %v5255_v47 = vld [vmem:[#allocation11 + $0x1a0] sm:$0xf0] }
 0x291   : > { %1911 = vmatmul.bf16.gmra.mxu2 %v5536_v16  ;;  %2796 = vmatmul.bf16.gmra.mxu3 %v6348_v8  ;;  %v5025_v8 = vor.u32 %v5255_v47, %v5024_v25 }
 0x292   : > { %v2725_v46 = vpop.f32.mrf.mxu0  ;;  %2910 = vmatmul.bf16.gmra.mxu1 %v6494_v55  ;;  %v2918_v28 = vadd.f32 %v2752_v29, %v2330_v63  ;;  %v8021_v29 = vmov 0 }
 0x293   : > { %v2975_v32 = vrot.slane %v2725_v46, 7  ;;  %v8022_v29 = vsel %vm6738_vm14, 4294967295, %v8021_v29  ;;  %3500 = vmatpush.bf16.msrb.mxu2 %v5025_v8 }
 0x294   : > { %v1872_v9 = vpop.f32.mrf.mxu2  ;;  %v2757_v0 = vpop.f32.mrf.mxu3  ;;  %v3046_v5 = vadd.f32 %v3014_v58, %v2918_v28  ;;  %8023 = vst [vmem:[#allocation84_spill] sm:$0xff] %v8022_v29  ;;  %v6747_v58 = vld [vmem:[#allocation2] sm:$0xff] }
 0x295   : > { %v6733_v14 = vsel %vm7868_vm0, %v2974_v62, %v2975_v32  ;;  %v2171_v16 = vrot.slane %v1872_v9, 1  ;;  %v6749_v9 = vpop.f32.mrf.mxu1 }
 0x296   : > { %v6736_v46 = vadd.f32 %v6534_v48, %v3046_v5 }
 0x297   : > { %v2227_v11 = vsel %vm8024_vm15, %v2170_v56, %v2171_v16 }
 0x298   : > { %v2299_v39 = vsel %vm6738_vm14, %v2227_v11, 0.0 }
 0x299   : > { %v2331_v63 = vadd.f32 %v2299_v39, %v6238_v1  ;;  %v3143_v1 = vsel %vm6738_vm14, %v6549_v24, 0.0  ;;  %v3016_v24 = vsel %vm6241_vm2, %v6352_v3, 0.0  ;;  %vm8028_vm14 = vcmp.lt.s32.totalorder %v6207_v18, 7 }
 0x29a   : > { %v2728_v62 = vpop.f32.mrf.mxu0 }
 0x29b   : > { %v2976_v28 = vrot.slane %v2728_v62, 7  ;;  %v2919_v48 = vadd.f32 %v2754_v44, %v2331_v63  ;;  %v912_v44 = vadd.s32 40, %v6207_v18  ;;  %v5537_v63 = vld [vmem:[#allocation2 + $0x58] sm:$0xff] }
 0x29c   : > { %v1874_v56 = vpop.f32.mrf.mxu2  ;;  %v2759_v25 = vpop.f32.mrf.mxu3 }
 0x29d   : > { %v6753_v49 = vsel %vm7868_vm0, %v2975_v32, %v2976_v28  ;;  %3621 = vmatmul.bf16.gmra.mxu0 %v6747_v58  ;;  %v2172_v47 = vrot.slane %v1874_v56, 1  ;;  %v3047_v5 = vadd.f32 %v6336_v41, %v2919_v48  ;;  %v978_v48 = vand.u32 15, %v912_v44 }
 0x29f   : > { %v2226_v8 = vsel %vm8024_vm15, %v2171_v16, %v2172_v47  ;;  %v6763_v11 = vadd.f32 %v3143_v1, %v3047_v5  ;;  %vm6779_vm15 = vcmp.ne.s32.totalorder %v978_v48, 15 }
 0x2a0   : > { %v2332_v32 = vadd.f32 %v2226_v8, %v6249_v17  ;;  %v6774_v17 = vpop.f32.mrf.mxu1 }
 0x2a1   : > { %1916 = vmatmul.bf16.gmra.mxu2 %v5537_v63  ;;  %2801 = vmatmul.bf16.gmra.mxu3 %v6375_v13  ;;  %v8025_v13 = vmov 0 }
 0x2a2   : > { %v2730_v39 = vpop.f32.mrf.mxu0  ;;  %v2920_v41 = vadd.f32 %v2757_v0, %v2332_v32  ;;  %v8026_v13 = vsel %vm6779_vm15, 4294967295, %v8025_v13 }
 0x2a3   : > { %v2977_v62 = vrot.slane %v2730_v39, 7  ;;  %8027 = vst [vmem:[#allocation85_spill] sm:$0xff] %v8026_v13  ;;  %v6788_v39 = vld [vmem:[#allocation2 + $0x88] sm:$0xff]  ;;  %v5252_v13 = vld [vmem:[#allocation11 + $0x188] sm:$0xf0] }
 0x2a4   : > { %v1877_v56 = vpop.f32.mrf.mxu2  ;;  %v2762_v16 = vpop.f32.mrf.mxu3  ;;  %v3048_v29 = vadd.f32 %v3016_v24, %v2920_v41 }
 0x2a5   : > { %v6772_v5 = vsel %vm7868_vm0, %v2976_v28, %v2977_v62  ;;  %v2173_v1 = vrot.slane %v1877_v56, 1  ;;  %v914_v56 = vadd.s32 56, %v6207_v18 }
 0x2a6   : > { %v6777_v8 = vadd.f32 %v6570_v43, %v3048_v29 }
 0x2a7   : > { %v2225_v3 = vsel %vm8028_vm14, %v2172_v47, %v2173_v1  ;;  %v992_v38 = vand.u32 15, %v914_v56 }
 0x2a8   : > { %v2301_v0 = vsel %vm6779_vm15, %v2225_v3, 0.0  ;;  %v6799_v24 = vpop.f32.mrf.mxu1 }
 0x2a9   : > { %v2333_v44 = vadd.f32 %v2301_v0, %v6258_v37  ;;  %v3145_v37 = vsel %vm6779_vm15, %v6585_v27, 0.0  ;;  %v5104_v0 = vld [vmem:[#allocation11 + $0x230] sm:$0xf] }
 0x2aa   : > { %v2733_v28 = vpop.f32.mrf.mxu0 }
 0x2ab   : > { %v2978_v32 = vrot.slane %v2733_v28, 7  ;;  %v2921_v63 = vadd.f32 %v2759_v25, %v2333_v44  ;;  %v5274_v44 = vld [vmem:[#allocation11 + $0x238] sm:$0xf0] }
 0x2ac   : > { %v1879_v29 = vpop.f32.mrf.mxu2  ;;  %v2764_v41 = vpop.f32.mrf.mxu3 }
 0x2ad   : > { %v6792_v43 = vsel %vm7868_vm0, %v2977_v62, %v2978_v32  ;;  %3626 = vmatmul.bf16.gmra.mxu0 %v6788_v39  ;;  %v2174_v48 = vrot.slane %v1879_v29, 1  ;;  %v3049_v47 = vadd.f32 %v6363_v40, %v2921_v63  ;;  %v5538_v29 = vld [vmem:[#allocation2 + $0x30] sm:$0xff]  ;;  %v5105_v40 = vor.u32 %v5274_v44, %v5104_v0 }
 0x2ae   : > { %v5012_v63 = vld [vmem:[#allocation11 + $0x180] sm:$0xf]  ;;  %v5271_v0 = vld [vmem:[#allocation11 + $0x220] sm:$0xf0] }
 0x2af   : > { %v2224_v25 = vsel %vm8028_vm14, %v2173_v1, %v2174_v48  ;;  %v6804_v62 = vadd.f32 %v3145_v37, %v3049_v47  ;;  %v5013_v1 = vor.u32 %v5252_v13, %v5012_v63  ;;  %3672 = vmatpush.bf16.msra.mxu3 %v5105_v40  ;;  %v3018_v47 = vsel %vm6262_vm3, %v6379_v4, 0.0  ;;  %v5080_v63 = vld [vmem:[#allocation11 + $0x200] sm:$0xf] }
 0x2b0   : > { %v2334_v3 = vadd.f32 %v2224_v25, %v6270_v60  ;;  %v8029_v60 = vrot.slane %v6293_v53, 7  ;;  %v7873_v13 = vrot.slane %v6472_v6, 1  ;;  %vm6826_vm14 = vcmp.ne.s32.totalorder %v992_v38, 15  ;;  %v5268_v38 = vld [vmem:[#allocation11 + $0x208] sm:$0xf0] }
 0x2b1   : > { %1921 = vmatmul.bf16.gmra.mxu2 %v5538_v29  ;;  %2806 = vmatmul.bf16.gmra.mxu3 %v6404_v2  ;;  %v5092_v2 = vld [vmem:[#allocation11 + $0x218] sm:$0xf]  ;;  %v8030_v40 = vmov 0 }
 0x2b2   : > { %v2735_v28 = vpop.f32.mrf.mxu0  ;;  %v2922_v10 = vadd.f32 %v2762_v16, %v2334_v3  ;;  %3501 = vmatpush.bf16.msrb.mxu2 %v5013_v1  ;;  %v5093_v53 = vor.u32 %v5271_v0, %v5092_v2  ;;  %v8031_v40 = vsel %vm6826_vm14, 4294967295, %v8030_v40  ;;  %v6840_v1 = vpop.f32.mrf.mxu1 }
 0x2b3   : > { %v2979_v27 = vrot.slane %v2735_v28, 7 }
 0x2b4   : > { %v1882_v25 = vpop.f32.mrf.mxu2  ;;  %v2767_v29 = vpop.f32.mrf.mxu3  ;;  %v3050_v44 = vadd.f32 %v3018_v47, %v2922_v10  ;;  %3673 = vmatpush.bf16.msra.mxu3 %v5093_v53 }
 0x2b5   : > { %v3011_v37 = vsel %vm7868_vm0, %v2979_v27, %v8029_v60  ;;  %v6817_v16 = vsel %vm7868_vm0, %v2978_v32, %v2979_v27  ;;  %v2175_v56 = vrot.slane %v1882_v25, 1  ;;  %vm8032_vm0 = vcmp.lt.s32.totalorder %v6207_v18, 7 }
 0x2b6   : > { %v3012_v4 = vsel %vm6666_vm12, %v3011_v37, 0.0  ;;  %v6824_v28 = vadd.f32 %v6606_v30, %v3050_v44  ;;  %v8033_v32 = vrot.slane %v6488_v23, 1  ;;  %vm8034_vm12 = vmmov %vm8032_vm0  ;;  %v6845_v23 = vld [vmem:[#allocation2 + $0x48] sm:$0xff]  ;;  %v5068_v44 = vld [vmem:[#allocation11 + $0x1e8] sm:$0xf] }
 0x2b7   : > { %v3044_v3 = vadd.f32 %v3012_v4, %v6688_v22  ;;  %v2223_v10 = vsel %vm8032_vm0, %v2174_v48, %v2175_v56  ;;  %v5081_v48 = vor.u32 %v5268_v38, %v5080_v63  ;;  %v5265_v4 = vld [vmem:[#allocation11 + $0x1f0] sm:$0xf0]  ;;  %v5262_v63 = vld [vmem:[#allocation11 + $0x1d8] sm:$0xf0]  ;;  %v3085_v38 = vrot.slane %v6724_v20, 1 }
 0x2b8   : > { %v3138_v27 = vsel %vm8034_vm12, %v7873_v13, %v8033_v32  ;;  %v2303_v22 = vsel %vm6826_vm14, %v2223_v10, 0.0  ;;  %vm8037_vm12 = vmmov %vm8032_vm0 }
 0x2b9   : > { %v3172_v30 = vadd.f32 %v3138_v27, %v3044_v3  ;;  %v2335_v47 = vadd.f32 %v2303_v22, %v6279_v15  ;;  %3674 = vmatpush.bf16.msra.mxu3 %v5081_v48  ;;  %v5069_v3 = vor.u32 %v5265_v4, %v5068_v44  ;;  %v3147_v15 = vsel %vm6826_vm14, %v6626_v50, 0.0  ;;  %v5044_v44 = vld [vmem:[#allocation11 + $0x1b8] sm:$0xf]  ;;  %v5259_v4 = vld [vmem:[#allocation11 + $0x1c0] sm:$0xf0] }
 0x2ba   : > { %v3592_v60 = vpop.f32.mrf.mxu0  ;;  %v6863_v48 = vpop.f32.mrf.mxu1 }
 0x2bb   : > { %v6843_v37 = vadd.f32 %v3592_v60, %v3172_v30  ;;  %v2923_v25 = vadd.f32 %v2764_v41, %v2335_v47  ;;  %v916_v41 = vadd.s32 72, %v6207_v18  ;;  %v5056_v30 = vld [vmem:[#allocation11 + $0x1d0] sm:$0xf] }
 0x2bc   : > { %v1884_v2 = vpop.f32.mrf.mxu2  ;;  %v2769_v0 = vpop.f32.mrf.mxu3  ;;  %v5057_v50 = vor.u32 %v5262_v63, %v5056_v30  ;;  %v5256_v30 = vld [vmem:[#allocation11 + $0x1a8] sm:$0xf0] }
 0x2bd   : > { %8035 = vst [vmem:[#allocation86_spill] sm:$0xff] %v6843_v37  ;;  %3631 = vmatmul.bf16.gmra.mxu0 %v6845_v23  ;;  %v2176_v53 = vrot.slane %v1884_v2, 1  ;;  %v3051_v10 = vadd.f32 %v6392_v7, %v2923_v25  ;;  %3675 = vmatpush.bf16.msra.mxu3 %v5069_v3  ;;  %v5539_v7 = vld [vmem:[#allocation2 + $0x18] sm:$0xff]  ;;  %v1006_v25 = vand.u32 15, %v916_v41  ;;  %v8038_v41 = vmov 0  ;;  %v8070_v37 = vld [vmem:[#allocation63_spill] sm:$0xff] }
 0x2bf   : > { %v2222_v32 = vsel %vm8032_vm0, %v2175_v56, %v2176_v53  ;;  %v6854_v27 = vadd.f32 %v3147_v15, %v3051_v10  ;;  %v8036_v15 = vrot.slane %v6616_v26, 1  ;;  %vm6877_vm14 = vcmp.ne.s32.totalorder %v1006_v25, 15 }
 0x2c0   : > { %v2336_v22 = vadd.f32 %v2222_v32, %v6291_v52  ;;  %v3020_v52 = vsel %vm6283_vm4, %v6408_v33, 0.0  ;;  %v3086_v32 = vrot.slane %v6749_v9, 1  ;;  %v8039_v41 = vsel %vm6877_vm14, 4294967295, %v8038_v41  ;;  %v6887_v9 = vld [vmem:[#allocation2 + $0x58] sm:$0xff] }
 0x2c1   : > { %1926 = vmatmul.bf16.gmra.mxu2 %v5539_v7  ;;  %2811 = vmatmul.bf16.gmra.mxu3 %v6433_v34  ;;  %v5045_v34 = vor.u32 %v5259_v4, %v5044_v44  ;;  %v5253_v44 = vld [vmem:[#allocation11 + $0x190] sm:$0xf0] }
 0x2c2   : > { %v3594_v47 = vpop.f32.mrf.mxu0  ;;  %v2924_v56 = vadd.f32 %v2767_v29, %v2336_v22  ;;  %3676 = vmatpush.bf16.msra.mxu3 %v5057_v50  ;;  %v5032_v22 = vld [vmem:[#allocation11 + $0x1a0] sm:$0xf]  ;;  %v6892_v4 = vpop.f32.mrf.mxu1 }
 0x2c3   : > { %v6861_v60 = vadd.f32 %v3594_v47, %v6721_v54  ;;  %v3130_v54 = vsel %vm8037_vm12, %v8036_v15, %v3085_v38  ;;  %v5033_v47 = vor.u32 %v5256_v30, %v5032_v22  ;;  %vm8040_vm12 = vmmov %vm8032_vm0  ;;  %v918_v15 = vadd.s32 88, %v6207_v18  ;;  %v5540_v30 = vld [vmem:[#allocation2 + $0x50] sm:$0xff] }
 0x2c4   : > { %v1887_v2 = vpop.f32.mrf.mxu2  ;;  %v2772_v20 = vpop.f32.mrf.mxu3  ;;  %v3052_v3 = vadd.f32 %v3020_v52, %v2924_v56  ;;  %v3129_v56 = vsel %vm8040_vm12, %v3085_v38, %v3086_v32  ;;  %vm8041_vm12 = vmmov %vm8032_vm0 }
 0x2c5   : > { %v2177_v10 = vrot.slane %v1887_v2, 1  ;;  %v5020_v2 = vld [vmem:[#allocation11 + $0x188] sm:$0xf] }
 0x2c6   : > { %v6872_v29 = vadd.f32 %v3130_v54, %v3052_v3  ;;  %3677 = vmatpush.bf16.msra.mxu3 %v5045_v34  ;;  %v3149_v34 = vsel %vm6877_vm14, %v3129_v56, 0.0 }
 0x2c7   : > { %v2221_v33 = vsel %vm8032_vm0, %v2176_v53, %v2177_v10 }
 0x2c8   : > { %v2305_v26 = vsel %vm6877_vm14, %v2221_v33, 0.0  ;;  %v3087_v33 = vrot.slane %v6774_v17, 1 }
 0x2c9   : > { %v2337_v7 = vadd.f32 %v2305_v26, %v6301_v12  ;;  %v5021_v12 = vor.u32 %v5253_v44, %v5020_v2  ;;  %v8044_v44 = vld [vmem:[#allocation30_spill] sm:$0xff] }
 0x2ca   : > { %v3597_v63 = vpop.f32.mrf.mxu0  ;;  %3678 = vmatpush.bf16.msra.mxu3 %v5033_v47  ;;  %v3128_v17 = vsel %vm8041_vm12, %v3086_v32, %v3087_v33  ;;  %vm8045_vm12 = vmmov %vm8032_vm0 }
 0x2cb   : > { %v6885_v50 = vadd.f32 %v3597_v63, %v6736_v46  ;;  %v2925_v53 = vadd.f32 %v2769_v0, %v2337_v7  ;;  %v1020_v63 = vand.u32 15, %v918_v15 }
 0x2cc   : > { %v1889_v52 = vpop.f32.mrf.mxu2  ;;  %v2774_v25 = vpop.f32.mrf.mxu3 }
 0x2cd   : > { %3636 = vmatmul.bf16.gmra.mxu0 %v6887_v9  ;;  %v2178_v3 = vrot.slane %v1889_v52, 1  ;;  %v3053_v46 = vadd.f32 %v6421_v45, %v2925_v53  ;;  %v6916_v52 = vpop.f32.mrf.mxu1  ;;  %vm6920_vm14 = vcmp.ne.s32.totalorder %v1020_v63, 15 }
 0x2ce   : > { %3679 = vmatpush.bf16.msra.mxu3 %v5021_v12 }
 0x2cf   : > { %v2220_v0 = vsel %vm8032_vm0, %v2177_v10, %v2178_v3  ;;  %v6899_v38 = vadd.f32 %v3149_v34, %v3053_v46  ;;  %v3022_v10 = vsel %vm6311_vm5, %v6437_v59, 0.0  ;;  %v6930_v46 = vld [vmem:[#allocation2 + $0x30] sm:$0xff] }
 0x2d0   : > { %v2338_v54 = vadd.f32 %v2220_v0, %v6319_v57 }
 0x2d1   : > { %1931 = vmatmul.bf16.gmra.mxu2 %v5540_v30  ;;  %2816 = vmatmul.bf16.gmra.mxu3 %v6462_v61  ;;  %v3088_v61 = vrot.slane %v6799_v24, 1 }
 0x2d2   : > { %v3599_v22 = vpop.f32.mrf.mxu0  ;;  %v2926_v26 = vadd.f32 %v2772_v20, %v2338_v54  ;;  %v8042_v20 = vmov 0  ;;  %v8046_v54 = vld [vmem:[#allocation43_spill] sm:$0xff] }
 0x2d3   : > { %v6906_v45 = vadd.f32 %v3599_v22, %v6763_v11  ;;  %v8043_v20 = vsel %vm6920_vm14, 4294967295, %v8042_v20  ;;  %v3127_v34 = vsel %vm8045_vm12, %v3087_v33, %v3088_v61  ;;  %v3089_v33 = vrot.slane %v6840_v1, 1  ;;  %vm8050_vm12 = vmmov %vm8032_vm0 }
 0x2d4   : > { %v1892_v47 = vpop.f32.mrf.mxu2  ;;  %v2777_v7 = vpop.f32.mrf.mxu3  ;;  %v3054_v53 = vadd.f32 %v3022_v10, %v2926_v26  ;;  %v3151_v30 = vsel %vm6920_vm14, %v3127_v34, 0.0  ;;  %v8047_v10 = vld [vmem:[#allocation32_spill] sm:$0xff] }
 0x2d5   : > { %v2179_v57 = vrot.slane %v1892_v47, 1  ;;  %v6945_v47 = vpop.f32.mrf.mxu1 }
 0x2d6   : > { %v6913_v56 = vadd.f32 %v3128_v17, %v3054_v53  ;;  %v5541_v17 = vld [vmem:[#allocation2 + $0x38] sm:$0xff] }
 0x2d7   : > { %v2219_v11 = vsel %vm8032_vm0, %v2178_v3, %v2179_v57 }
 0x2d8   : > { %v2307_v59 = vsel %vm6920_vm14, %v2219_v11, 0.0 }
 0x2d9   : > { %v2339_v12 = vadd.f32 %v2307_v59, %v8044_v44 }
 0x2da   : > { %v3602_v2 = vpop.f32.mrf.mxu0 }
 0x2db   : > { %v6928_v32 = vadd.f32 %v3602_v2, %v6777_v8  ;;  %v2927_v24 = vadd.f32 %v2774_v25, %v2339_v12  ;;  %v920_v25 = vadd.s32 104, %v6207_v18 }
 0x2dc   : > { %v1894_v3 = vpop.f32.mrf.mxu2  ;;  %v2779_v0 = vpop.f32.mrf.mxu3 }
 0x2dd   : > { %3641 = vmatmul.bf16.gmra.mxu0 %v6930_v46  ;;  %v2180_v15 = vrot.slane %v1894_v3, 1  ;;  %v3055_v22 = vadd.f32 %v8046_v54, %v2927_v24  ;;  %v1034_v12 = vand.u32 15, %v920_v25  ;;  %v3126_v54 = vsel %vm8050_vm12, %v3088_v61, %v3089_v33  ;;  %v8054_v25 = vld [vmem:[#allocation33_spill] sm:$0xff]  ;;  %vm8055_vm12 = vmmov %vm8032_vm0 }
 0x2de   : > { %v6971_v61 = vld [vmem:[#allocation2 + $0x18] sm:$0xff] }
 0x2df   : > { %v2218_v8 = vsel %vm8032_vm0, %v2179_v57, %v2180_v15  ;;  %v6940_v26 = vadd.f32 %v3151_v30, %v3055_v22  ;;  %v8048_v57 = vld [vmem:[#allocation46_spill] sm:$0xff]  ;;  %vm6961_vm14 = vcmp.ne.s32.totalorder %v1034_v12, 15 }
 0x2e0   : > { %v2340_v63 = vadd.f32 %v2218_v8, %v8047_v10  ;;  %v3024_v44 = vsel %vm6338_vm6, %v8048_v57, 0.0 }
 0x2e1   : > { %1936 = vmatmul.bf16.gmra.mxu2 %v5541_v17  ;;  %2821 = vmatmul.bf16.gmra.mxu3 %v6494_v55  ;;  %v3090_v55 = vrot.slane %v6863_v48, 1 }
 0x2e2   : > { %v3604_v53 = vpop.f32.mrf.mxu0  ;;  %v2928_v59 = vadd.f32 %v2777_v7, %v2340_v63  ;;  %v8051_v7 = vmov 0 }
 0x2e3   : > { %v6949_v11 = vadd.f32 %v3604_v53, %v6804_v62  ;;  %v8052_v7 = vsel %vm6961_vm14, 4294967295, %v8051_v7  ;;  %v6973_v53 = vpop.f32.mrf.mxu1 }
 0x2e4   : > { %v1897_v24 = vpop.f32.mrf.mxu2  ;;  %v2782_v34 = vpop.f32.mrf.mxu3  ;;  %v3056_v3 = vadd.f32 %v3024_v44, %v2928_v59  ;;  %8053 = vst [vmem:[#allocation30_spill] sm:$0xff] %v8052_v7  ;;  %v8056_v44 = vld [vmem:[#allocation49_spill] sm:$0xff] }
 0x2e5   : > { %v2181_v1 = vrot.slane %v1897_v24, 1 }
 0x2e6   : > { %v6956_v22 = vadd.f32 %v3126_v54, %v3056_v3  ;;  %v8057_v54 = vld [vmem:[#allocation35_spill] sm:$0xff] }
 0x2e7   : > { %v2217_v62 = vsel %vm8032_vm0, %v2180_v15, %v2181_v1  ;;  %v3125_v15 = vsel %vm8055_vm12, %v3089_v33, %v3090_v55  ;;  %v3091_v33 = vrot.slane %v6892_v4, 1  ;;  %vm8061_vm12 = vmmov %vm8032_vm0 }
 0x2e8   : > { %v2309_v30 = vsel %vm6961_vm14, %v2217_v62, 0.0  ;;  %v3153_v24 = vsel %vm6961_vm14, %v3125_v15, 0.0 }
 0x2e9   : > { %v2341_v10 = vadd.f32 %v2309_v30, %v8054_v25 }
 0x2ea   : > { %v3607_v8 = vpop.f32.mrf.mxu0 }
 0x2eb   : > { %v6969_v63 = vadd.f32 %v3607_v8, %v6824_v28  ;;  %v2929_v48 = vadd.f32 %v2779_v0, %v2341_v10  ;;  %v922_v0 = vadd.s32 120, %v6207_v18  ;;  %v8058_v8 = vld [vmem:[#allocation57_spill] sm:$0xff] }
 0x2ec   : > { %v1899_v17 = vpop.f32.mrf.mxu2  ;;  %v2784_v59 = vpop.f32.mrf.mxu3 }
 0x2ed   : > { %3646 = vmatmul.bf16.gmra.mxu0 %v6971_v61  ;;  %v2182_v57 = vrot.slane %v1899_v17, 1  ;;  %v3057_v12 = vadd.f32 %v8056_v44, %v2929_v48  ;;  %v8059_v48 = vld [vmem:[#allocation52_spill] sm:$0xff]  ;;  %v1048_v17 = vand.u32 15, %v922_v0 }
 0x2ef   : > { %v2216_v28 = vsel %vm8032_vm0, %v2181_v1, %v2182_v57  ;;  %v6983_v3 = vadd.f32 %v3153_v24, %v3057_v12  ;;  %v3026_v1 = vsel %vm6365_vm7, %v8059_v48, 0.0  ;;  %vm7005_vm14 = vcmp.ne.s32.totalorder %v1048_v17, 15  ;;  %v8067_v17 = vld [vmem:[#allocation54_spill] sm:$0xff] }
 0x2f0   : > { %v2342_v62 = vadd.f32 %v2216_v28, %v8057_v54  ;;  %v6996_v28 = vpop.f32.mrf.mxu1  ;;  %v3124_v54 = vsel %vm8061_vm12, %v3090_v55, %v3091_v33  ;;  %vm8066_vm12 = vmmov %vm8032_vm0 }
 0x2f1   : > { %3502 = vmatmul.bf16.vlgmr.msrb.gmra.mxu2 %v8058_v8  ;;  %3680 = vmatmul.bf16.vlgmr.msra.gmra.mxu3 %v8058_v8 }
 0x2f2   : > { %v3609_v30 = vpop.f32.mrf.mxu0  ;;  %v2930_v10 = vadd.f32 %v2782_v34, %v2342_v62  ;;  %v8062_v62 = vmov 0 }
 0x2f3   : > { %v6991_v25 = vadd.f32 %v3609_v30, %v6854_v27  ;;  %v3092_v27 = vrot.slane %v6916_v52, 1  ;;  %v8063_v62 = vsel %vm7005_vm14, 4294967295, %v8062_v62  ;;  %v8065_v30 = vld [vmem:[#allocation36_spill] sm:$0xff] }
 0x2f4   : > { %v1902_v44 = vpop.f32.mrf.mxu2  ;;  %v2787_v12 = vpop.f32.mrf.mxu3  ;;  %v3058_v24 = vadd.f32 %v3026_v1, %v2930_v10  ;;  %8064 = vst [vmem:[#allocation43_spill] sm:$0xff] %v8063_v62  ;;  %v7012_v10 = vld [vmem:[#allocation2 + $0x50] sm:$0xff] }
 0x2f5   : > { %v2183_v4 = vrot.slane %v1902_v44, 1  ;;  %v3123_v55 = vsel %vm8066_vm12, %v3091_v33, %v3092_v27  ;;  %v8069_v33 = vld [vmem:[#allocation38_spill] sm:$0xff]  ;;  %vm8073_vm12 = vmmov %vm8032_vm0 }
 0x2f6   : > { %v7000_v13 = vadd.f32 %v3124_v54, %v3058_v24  ;;  %v3155_v24 = vsel %vm7005_vm14, %v3123_v55, 0.0  ;;  %v8083_v55 = vld [vmem:[#allocation69_spill] sm:$0xff] }
 0x2f7   : > { %v2215_v34 = vsel %vm8032_vm0, %v2182_v57, %v2183_v4 }
 0x2f8   : > { %v2311_v0 = vsel %vm7005_vm14, %v2215_v34, 0.0  ;;  %v7020_v54 = vpop.f32.mrf.mxu1 }
 0x2f9   : > { %v2343_v8 = vadd.f32 %v2311_v0, %v8065_v30 }
 0x2fb   : > { %v2931_v48 = vadd.f32 %v2784_v59, %v2343_v8  ;;  %v924_v59 = vadd.s32 136, %v6207_v18  ;;  %v3093_v8 = vrot.slane %v6945_v47, 1  ;;  %v3094_v47 = vrot.slane %v6973_v53, 1 }
 0x2fc   : > { %v1904_v52 = vpop.f32.mrf.mxu2  ;;  %v2789_v1 = vpop.f32.mrf.mxu3 }
 0x2fd   : > { %3651 = vmatmul.bf16.gmra.mxu0 %v7012_v10  ;;  %v2184_v57 = vrot.slane %v1904_v52, 1  ;;  %v3059_v44 = vadd.f32 %v8067_v17, %v2931_v48  ;;  %v8071_v52 = vld [vmem:[#allocation58_spill] sm:$0xff]  ;;  %v1062_v19 = vand.u32 15, %v924_v59  ;;  %v3122_v62 = vsel %vm8073_vm12, %v3092_v27, %v3093_v8  ;;  %vm8079_vm12 = vmmov %vm8032_vm0 }
 0x2fe   : > { %v3028_v17 = vsel %vm6394_vm8, %v8071_v52, 0.0  ;;  %v3121_v53 = vsel %vm8079_vm12, %v3093_v8, %v3094_v47  ;;  %v8080_v52 = vld [vmem:[#allocation60_spill] sm:$0xff]  ;;  %v3095_v8 = vrot.slane %v6996_v28, 1  ;;  %vm8086_vm12 = vmmov %vm8032_vm0 }
 0x2ff   : > { %v2214_v34 = vsel %vm8032_vm0, %v2183_v4, %v2184_v57  ;;  %v7024_v0 = vadd.f32 %v3155_v24, %v3059_v44  ;;  %vm7041_vm14 = vcmp.ne.s32.totalorder %v1062_v19, 15 }
 0x300   : > { %v2344_v30 = vadd.f32 %v2214_v34, %v8069_v33  ;;  %v7047_v33 = vpop.f32.mrf.mxu1 }
 0x301   : > { %8068 = vst [vmem:[#allocation32_spill] sm:$0xff] %v7024_v0  ;;  %3507 = vmatmul.bf16.gmra.mxu2 %v8070_v37  ;;  %3685 = vmatmul.bf16.gmra.mxu3 %v8070_v37 }
 0x302   : > { %v2932_v48 = vadd.f32 %v2787_v12, %v2344_v30  ;;  %v8075_v12 = vmov 0 }
 0x303   : > { %v8076_v12 = vsel %vm7041_vm14, 4294967295, %v8075_v12 }
 0x304   : > { %v1907_v6 = vpop.f32.mrf.mxu2  ;;  %v2792_v4 = vpop.f32.mrf.mxu3  ;;  %v3060_v44 = vadd.f32 %v3028_v17, %v2932_v48  ;;  %8077 = vst [vmem:[#allocation31_spill] sm:$0xff] %v8076_v12  ;;  %v7050_v48 = vld [vmem:[#allocation2 + $0x38] sm:$0xff] }
 0x305   : > { %v2185_v24 = vrot.slane %v1907_v6, 1  ;;  %v8078_v6 = vld [vmem:[#allocation39_spill] sm:$0xff] }
 0x306   : > { %v7036_v34 = vadd.f32 %v3122_v62, %v3060_v44  ;;  %v3157_v44 = vsel %vm7041_vm14, %v3121_v53, 0.0 }
 0x307   : > { %v2213_v37 = vsel %vm8032_vm0, %v2184_v57, %v2185_v24 }
 0x308   : > { %8074 = vst [vmem:[#allocation46_spill] sm:$0xff] %v7036_v34  ;;  %v2313_v59 = vsel %vm7041_vm14, %v2213_v37, 0.0 }
 0x309   : > { %v2345_v30 = vadd.f32 %v2313_v59, %v8078_v6  ;;  %v8082_v6 = vld [vmem:[#allocation41_spill] sm:$0xff] }
 0x30b   : > { %v2933_v27 = vadd.f32 %v2789_v1, %v2345_v30  ;;  %v926_v1 = vadd.s32 152, %v6207_v18 }
 0x30c   : > { %v1909_v62 = vpop.f32.mrf.mxu2  ;;  %v2794_v19 = vpop.f32.mrf.mxu3 }
 0x30d   : > { %3656 = vmatmul.bf16.gmra.mxu0 %v7050_v48  ;;  %v2186_v57 = vrot.slane %v1909_v62, 1  ;;  %v3061_v17 = vadd.f32 %v8080_v52, %v2933_v27  ;;  %v7067_v27 = vpop.f32.mrf.mxu1  ;;  %v8084_v52 = vld [vmem:[#allocation64_spill] sm:$0xff] }
 0x30e   : > { %v3030_v12 = vsel %vm6423_vm9, %v8084_v52, 0.0 }
 0x30f   : > { %v2212_v37 = vsel %vm8032_vm0, %v2185_v24, %v2186_v57  ;;  %v7060_v59 = vadd.f32 %v3157_v44, %v3061_v17  ;;  %v1076_v24 = vand.u32 15, %v926_v1 }
 0x310   : > { %v2346_v30 = vadd.f32 %v2212_v37, %v8082_v6  ;;  %v3120_v37 = vsel %vm8086_vm12, %v3094_v47, %v3095_v8  ;;  %v3096_v6 = vrot.slane %v7020_v54, 1  ;;  %vm8092_vm12 = vmmov %vm8032_vm0 }
 0x311   : > { %8081 = vst [vmem:[#allocation33_spill] sm:$0xff] %v7060_v59  ;;  %3512 = vmatmul.bf16.gmra.mxu2 %v8083_v55  ;;  %3690 = vmatmul.bf16.gmra.mxu3 %v8083_v55  ;;  %vm7079_vm14 = vcmp.ne.s32.totalorder %v1076_v24, 15 }
 0x312   : > { %v2934_v62 = vadd.f32 %v2792_v4, %v2346_v30  ;;  %v8088_v4 = vmov 0  ;;  %v8091_v30 = vld [vmem:[#allocation42_spill] sm:$0xff]  ;;  %v3119_v47 = vsel %vm8092_vm12, %v3095_v8, %v3096_v6  ;;  %vm8099_vm12 = vmmov %vm8032_vm0 }
 0x313   : > { %v8089_v4 = vsel %vm7079_vm14, 4294967295, %v8088_v4  ;;  %v3159_v53 = vsel %vm7079_vm14, %v3119_v47, 0.0 }
 0x314   : > { %v1912_v17 = vpop.f32.mrf.mxu2  ;;  %v2797_v44 = vpop.f32.mrf.mxu3  ;;  %v3062_v59 = vadd.f32 %v3030_v12, %v2934_v62  ;;  %8090 = vst [vmem:[#allocation35_spill] sm:$0xff] %v8089_v4  ;;  %v7086_v62 = vld [vmem:[#allocation2 + $0x20] sm:$0xff] }
 0x315   : > { %v2187_v34 = vrot.slane %v1912_v17, 1  ;;  %v8093_v17 = vld [vmem:[#allocation66_spill] sm:$0xff] }
 0x316   : > { %v7074_v28 = vadd.f32 %v3120_v37, %v3062_v59 }
 0x317   : > { %v2211_v55 = vsel %vm8032_vm0, %v2186_v57, %v2187_v34  ;;  %v2893_v57 = vpop.f32.mrf.mxu1 }
 0x318   : > { %8087 = vst [vmem:[#allocation49_spill] sm:$0xff] %v7074_v28  ;;  %v2315_v1 = vsel %vm7079_vm14, %v2211_v55, 0.0  ;;  %v8096_v28 = vld [vmem:[#allocation75_spill] sm:$0xff] }
 0x319   : > { %v2347_v12 = vadd.f32 %v2315_v1, %v8091_v30  ;;  %v8095_v30 = vld [vmem:[#allocation45_spill] sm:$0xff] }
 0x31b   : > { %v2935_v52 = vadd.f32 %v2794_v19, %v2347_v12  ;;  %v928_v19 = vadd.s32 168, %v6207_v18  ;;  %v3097_v12 = vrot.slane %v7047_v33, 1  ;;  %v3098_v33 = vrot.slane %v7067_v27, 1 }
 0x31c   : > { %v1914_v54 = vpop.f32.mrf.mxu2  ;;  %v2799_v59 = vpop.f32.mrf.mxu3 }
 0x31d   : > { %3661 = vmatmul.bf16.gmra.mxu0 %v7086_v62  ;;  %v2188_v24 = vrot.slane %v1914_v54, 1  ;;  %v3063_v37 = vadd.f32 %v8093_v17, %v2935_v52  ;;  %v8097_v52 = vld [vmem:[#allocation70_spill] sm:$0xff]  ;;  %v1090_v4 = vand.u32 15, %v928_v19  ;;  %v7117_v19 = vld [vmem:[#allocation2 + $0x68] sm:$0xff] }
 0x31e   : > { %v3032_v47 = vsel %vm6452_vm10, %v8097_v52, 0.0 }
 0x31f   : > { %v2210_v55 = vsel %vm8032_vm0, %v2187_v34, %v2188_v24  ;;  %v7096_v1 = vadd.f32 %v3159_v53, %v3063_v37  ;;  %vm7113_vm14 = vcmp.ne.s32.totalorder %v1090_v4, 15  ;;  %v8106_v4 = vld [vmem:[#allocation72_spill] sm:$0xff] }
 0x320   : > { %v2348_v8 = vadd.f32 %v2210_v55, %v8095_v30  ;;  %v2896_v30 = vpop.f32.mrf.mxu1 }
 0x321   : > { %8094 = vst [vmem:[#allocation57_spill] sm:$0xff] %v7096_v1  ;;  %3517 = vmatmul.bf16.gmra.mxu2 %v8096_v28  ;;  %3695 = vmatmul.bf16.gmra.mxu3 %v8096_v28  ;;  %v3118_v1 = vsel %vm8099_vm12, %v3096_v6, %v3097_v12  ;;  %v8101_v28 = vmov 0  ;;  %vm8105_vm12 = vmmov %vm8032_vm0 }
 0x322   : > { %v2936_v54 = vadd.f32 %v2797_v44, %v2348_v8  ;;  %v8102_v28 = vsel %vm7113_vm14, 4294967295, %v8101_v28  ;;  %v8104_v8 = vld [vmem:[#allocation48_spill] sm:$0xff] }
 0x323   : > { %8103 = vst [vmem:[#allocation34_spill] sm:$0xff] %v8102_v28 }
 0x324   : > { %v1917_v0 = vpop.f32.mrf.mxu2  ;;  %v2802_v34 = vpop.f32.mrf.mxu3  ;;  %v3064_v53 = vadd.f32 %v3032_v47, %v2936_v54 }
 0x325   : > { %v2189_v37 = vrot.slane %v1917_v0, 1 }
 0x326   : > { %v7108_v55 = vadd.f32 %v3118_v1, %v3064_v53  ;;  %v3117_v1 = vsel %vm8105_vm12, %v3097_v12, %v3098_v33  ;;  %v3099_v12 = vrot.slane %v2893_v57, 1  ;;  %vm8112_vm12 = vmmov %vm8032_vm0  ;;  %v3100_v57 = vrot.slane %v2896_v30, 1 }
 0x327   : > { %v2209_v44 = vsel %vm8032_vm0, %v2188_v24, %v2189_v37  ;;  %v3161_v53 = vsel %vm7113_vm14, %v3117_v1, 0.0 }
 0x328   : > { %8100 = vst [vmem:[#allocation52_spill] sm:$0xff] %v7108_v55  ;;  %v2317_v0 = vsel %vm7113_vm14, %v2209_v44, 0.0  ;;  %v8109_v55 = vld [vmem:[#allocation81_spill] sm:$0xff] }
 0x329   : > { %v2349_v54 = vadd.f32 %v2317_v0, %v8104_v8  ;;  %v8108_v0 = vld [vmem:[#allocation51_spill] sm:$0xff] }
 0x32b   : > { %v2937_v6 = vadd.f32 %v2799_v59, %v2349_v54  ;;  %v930_v59 = vadd.s32 184, %v6207_v18  ;;  %v2898_v54 = vpop.f32.mrf.mxu1 }
 0x32c   : > { %v1919_v27 = vpop.f32.mrf.mxu2  ;;  %v2804_v52 = vpop.f32.mrf.mxu3 }
 0x32d   : > { %3666 = vmatmul.bf16.gmra.mxu0 %v7117_v19  ;;  %v2190_v24 = vrot.slane %v1919_v27, 1  ;;  %v3065_v47 = vadd.f32 %v8106_v4, %v2937_v6  ;;  %v8110_v6 = vld [vmem:[#allocation76_spill] sm:$0xff]  ;;  %v1104_v28 = vand.u32 15, %v930_v59  ;;  %v8116_v59 = vld [vmem:[#allocation53_spill] sm:$0xff] }
 0x32e   : > { %v3034_v1 = vsel %vm6482_vm11, %v8110_v6, 0.0  ;;  %vm8117_vm11 = vmmov %vm8032_vm0 }
 0x32f   : > { %v2208_v17 = vsel %vm8032_vm0, %v2189_v37, %v2190_v24  ;;  %v7130_v44 = vadd.f32 %v3161_v53, %v3065_v47  ;;  %vm7145_vm14 = vcmp.ne.s32.totalorder %v1104_v28, 15 }
 0x330   : > { %v2350_v8 = vadd.f32 %v2208_v17, %v8108_v0 }
 0x331   : > { %8107 = vst [vmem:[#allocation36_spill] sm:$0xff] %v7130_v44  ;;  %3522 = vmatmul.bf16.gmra.mxu2 %v8109_v55  ;;  %3700 = vmatmul.bf16.gmra.mxu3 %v8109_v55  ;;  %v3116_v44 = vsel %vm8112_vm12, %v3098_v33, %v3099_v12  ;;  %v3115_v33 = vsel %vm8117_vm11, %v3099_v12, %v3100_v57  ;;  %vm8119_vm12 = vmmov %vm8032_vm0 }
 0x332   : > { %v2938_v27 = vadd.f32 %v2802_v34, %v2350_v8  ;;  %v8113_v34 = vmov 0  ;;  %v3163_v28 = vsel %vm7145_vm14, %v3115_v33, 0.0  ;;  %vm8124_vm11 = vmmov %vm8032_vm0 }
 0x333   : > { %v8114_v34 = vsel %vm7145_vm14, 4294967295, %v8113_v34 }
 0x334   : > { %v1922_v7 = vpop.f32.mrf.mxu2  ;;  %v2807_v37 = vpop.f32.mrf.mxu3  ;;  %v3066_v47 = vadd.f32 %v3034_v1, %v2938_v27  ;;  %8115 = vst [vmem:[#allocation54_spill] sm:$0xff] %v8114_v34  ;;  %v8118_v1 = vld [vmem:[#allocation79_spill] sm:$0xff] }
 0x335   : > { %v2191_v53 = vrot.slane %v1922_v7, 1  ;;  %v2901_v27 = vpop.f32.mrf.mxu1 }
 0x336   : > { %v7141_v17 = vadd.f32 %v3116_v44, %v3066_v47 }
 0x337   : > { %v2207_v0 = vsel %vm8032_vm0, %v2190_v24, %v2191_v53 }
 0x338   : > { %v2319_v55 = vsel %vm7145_vm14, %v2207_v0, 0.0  ;;  %v932_v0 = vadd.s32 200, %v6207_v18  ;;  %vm8129_vm14 = vmmov %vm8032_vm0 }
 0x339   : > { %v2351_v8 = vadd.f32 %v2319_v55, %v8116_v59  ;;  %v8121_v55 = vld [vmem:[#allocation56_spill] sm:$0xff]  ;;  %v3101_v59 = vrot.slane %v2898_v54, 1  ;;  %v3102_v54 = vrot.slane %v2901_v27, 1 }
 0x33a   : > { %v1118_v33 = vand.u32 15, %v932_v0 }
 0x33b   : > { %v2939_v7 = vadd.f32 %v2804_v52, %v2351_v8  ;;  %v8122_v8 = vld [vmem:[#allocation82_spill] sm:$0xff] }
 0x33c   : > { %v1924_v44 = vpop.f32.mrf.mxu2  ;;  %v2809_v6 = vpop.f32.mrf.mxu3 }
 0x33d   : > { %v2192_v30 = vrot.slane %v1924_v44, 1  ;;  %v3067_v47 = vadd.f32 %v8118_v1, %v2939_v7  ;;  %v3036_v44 = vsel %vm6520_vm13, %v8122_v8, 0.0  ;;  %v3113_v8 = vsel %vm8129_vm14, %v3101_v59, %v3102_v54 }
 0x33f   : > { %v2206_v24 = vsel %vm8119_vm12, %v2191_v53, %v2192_v30  ;;  %v7159_v4 = vadd.f32 %v3163_v28, %v3067_v47  ;;  %v2903_v47 = vpop.f32.mrf.mxu1  ;;  %vm7174_vm12 = vcmp.ne.s32.totalorder %v1118_v33, 15 }
 0x340   : > { %v2352_v52 = vadd.f32 %v2206_v24, %v8121_v55  ;;  %v8128_v55 = vld [vmem:[#allocation59_spill] sm:$0xff] }
 0x341   : > { %8120 = vst [vmem:[#allocation38_spill] sm:$0xff] %v7159_v4  ;;  %3527 = vmatmul.bf16.gmra.mxu2 %v6707_v31  ;;  %3705 = vmatmul.bf16.gmra.mxu3 %v6707_v31  ;;  %v3114_v4 = vsel %vm8124_vm11, %v3100_v57, %v3101_v59  ;;  %vm8130_vm11 = vmmov %vm8032_vm0 }
 0x342   : > { %v2940_v12 = vadd.f32 %v2807_v37, %v2352_v52  ;;  %v8125_v37 = vmov 0 }
 0x343   : > { %v8126_v37 = vsel %vm7174_vm12, 4294967295, %v8125_v37 }
 0x344   : > { %v1927_v1 = vpop.f32.mrf.mxu2  ;;  %v2812_v34 = vpop.f32.mrf.mxu3  ;;  %v3068_v53 = vadd.f32 %v3036_v44, %v2940_v12  ;;  %8127 = vst [vmem:[#allocation63_spill] sm:$0xff] %v8126_v37 }
 0x345   : > { %v2193_v28 = vrot.slane %v1927_v1, 1 }
 0x346   : > { %v7170_v24 = vadd.f32 %v3114_v4, %v3068_v53 }
 0x347   : > { %v2205_v31 = vsel %vm8032_vm0, %v2192_v30, %v2193_v28  ;;  %v3165_v30 = vsel %vm7174_vm12, %v3113_v8, 0.0  ;;  %v2906_v33 = vpop.f32.mrf.mxu1 }
 0x348   : > { %v2321_v0 = vsel %vm7174_vm12, %v2205_v31, 0.0  ;;  %v934_v31 = vadd.s32 216, %v6207_v18 }
 0x349   : > { %v2353_v52 = vadd.f32 %v2321_v0, %v8128_v55  ;;  %v3103_v55 = vrot.slane %v2903_v47, 1  ;;  %v3104_v47 = vrot.slane %v2906_v33, 1 }
 0x34b   : > { %v2941_v12 = vadd.f32 %v2809_v6, %v2353_v52  ;;  %v8131_v6 = vld [vmem:[#allocation62_spill] sm:$0xff] }
 0x34c   : > { %v1929_v57 = vpop.f32.mrf.mxu2  ;;  %v2814_v4 = vpop.f32.mrf.mxu3 }
 0x34d   : > { %v2194_v44 = vrot.slane %v1929_v57, 1  ;;  %v3069_v27 = vadd.f32 %v6696_v21, %v2941_v12  ;;  %v8132_v21 = vld [vmem:[#allocation61_spill] sm:$0xff]  ;;  %v1132_v12 = vand.u32 15, %v934_v31 }
 0x34e   : > { %vm8133_vm14 = vnez %v8132_v21  ;;  %v8137_v31 = vld [vmem:[#allocation65_spill] sm:$0xff] }
 0x34f   : > { %v2204_v1 = vsel %vm8130_vm11, %v2193_v28, %v2194_v44  ;;  %v7188_v53 = vadd.f32 %v3165_v30, %v3069_v27  ;;  %v3038_v52 = vsel %vm8133_vm14, %v6711_v35, 0.0  ;;  %v3112_v30 = vsel %vm8032_vm0, %v3102_v54, %v3103_v55  ;;  %vm8134_vm11 = vmmov %vm8032_vm0 }
 0x350   : > { %v2354_v0 = vadd.f32 %v2204_v1, %v8131_v6  ;;  %vm7203_vm12 = vcmp.ne.s32.totalorder %v1132_v12, 15  ;;  %v3111_v54 = vsel %vm8032_vm0, %v3103_v55, %v3104_v47 }
 0x351   : > { %3532 = vmatmul.bf16.gmra.mxu2 %v6747_v58  ;;  %3710 = vmatmul.bf16.gmra.mxu3 %v6747_v58  ;;  %v8135_v58 = vmov 0  ;;  %v3167_v12 = vsel %vm7203_vm12, %v3111_v54, 0.0 }
 0x352   : > { %v2942_v59 = vadd.f32 %v2812_v34, %v2354_v0  ;;  %v8136_v58 = vsel %vm7203_vm12, 4294967295, %v8135_v58  ;;  %v2908_v34 = vpop.f32.mrf.mxu1  ;;  %v5282_v0 = vld [vmem:[#allocation12 + $0x38] sm:$0xff] }
 0x353   : > { %4201 = vmatpush.bf16.msrb.mxu1 %v5282_v0 }
 0x354   : > { %v1932_v8 = vpop.f32.mrf.mxu2  ;;  %v2817_v57 = vpop.f32.mrf.mxu3  ;;  %v3070_v28 = vadd.f32 %v3038_v52, %v2942_v59 }
 0x355   : > { %v2195_v27 = vrot.slane %v1932_v8, 1 }
 0x356   : > { %v7199_v37 = vadd.f32 %v3112_v30, %v3070_v28 }
 0x357   : > { %v2203_v1 = vsel %vm8134_vm11, %v2194_v44, %v2195_v27  ;;  %vm8138_vm11 = vmmov %vm8032_vm0 }
 0x358   : > { %v2323_v35 = vsel %vm7203_vm12, %v2203_v1, 0.0  ;;  %v936_v1 = vadd.s32 232, %v6207_v18  ;;  %vm8142_vm12 = vmmov %vm8138_vm11 }
 0x359   : > { %v2355_v6 = vadd.f32 %v2323_v35, %v8137_v31  ;;  %v3105_v31 = vrot.slane %v2908_v34, 1 }
 0x35b   : > { %v2943_v59 = vadd.f32 %v2814_v4, %v2355_v6  ;;  %v8139_v4 = vld [vmem:[#allocation68_spill] sm:$0xff]  ;;  %v2911_v6 = vpop.f32.mrf.mxu1 }
 0x35c   : > { %v1934_v52 = vpop.f32.mrf.mxu2  ;;  %v2819_v33 = vpop.f32.mrf.mxu3  ;;  %v3106_v34 = vrot.slane %v2911_v6, 1 }
 0x35d   : > { %v2196_v8 = vrot.slane %v1934_v52, 1  ;;  %v3071_v44 = vadd.f32 %v6733_v14, %v2943_v59  ;;  %v8140_v14 = vld [vmem:[#allocation67_spill] sm:$0xff]  ;;  %v1146_v59 = vand.u32 15, %v936_v1 }
 0x35e   : > { %vm8141_vm0 = vnez %v8140_v14  ;;  %v8146_v1 = vld [vmem:[#allocation71_spill] sm:$0xff] }
 0x35f   : > { %v2202_v28 = vsel %vm8138_vm11, %v2195_v27, %v2196_v8  ;;  %v7217_v30 = vadd.f32 %v3167_v12, %v3071_v44  ;;  %v3040_v0 = vsel %vm8141_vm0, %v6753_v49, 0.0  ;;  %v3110_v12 = vsel %vm8138_vm11, %v3104_v47, %v3105_v31 }
 0x360   : > { %v2356_v35 = vadd.f32 %v2202_v28, %v8139_v4  ;;  %vm7233_vm14 = vcmp.ne.s32.totalorder %v1146_v59, 15  ;;  %v8143_v4 = vmov 0  ;;  %v3109_v47 = vsel %vm8138_vm11, %v3105_v31, %v3106_v34 }
 0x361   : > { %3537 = vmatmul.bf16.gmra.mxu2 %v6788_v39  ;;  %3715 = vmatmul.bf16.gmra.mxu3 %v6788_v39  ;;  %v8144_v4 = vsel %vm7233_vm14, 4294967295, %v8143_v4  ;;  %v3169_v59 = vsel %vm7233_vm14, %v3109_v47, 0.0 }
 0x362   : > { %v2944_v55 = vadd.f32 %v2817_v57, %v2356_v35  ;;  %v938_v57 = vadd.s32 248, %v6207_v18  ;;  %8145 = vst [vmem:[#allocation58_spill] sm:$0xff] %v8144_v4  ;;  %v8154_v4 = vld [vmem:[#allocation73_spill] sm:$0xff] }
 0x364   : > { %v1937_v54 = vpop.f32.mrf.mxu2  ;;  %v2822_v27 = vpop.f32.mrf.mxu3  ;;  %v3072_v52 = vadd.f32 %v3040_v0, %v2944_v55  ;;  %v1160_v55 = vand.u32 15, %v938_v57 }
 0x365   : > { %v2197_v44 = vrot.slane %v1937_v54, 1 }
 0x366   : > { %v7228_v28 = vadd.f32 %v3110_v12, %v3072_v52  ;;  %v7243_v12 = vpop.f32.mrf.mxu1  ;;  %vm7249_vm0 = vcmp.ne.s32.totalorder %v1160_v55, 15 }
 0x367   : > { %v2201_v39 = vsel %vm8142_vm12, %v2196_v8, %v2197_v44  ;;  %vm8147_vm12 = vmmov %vm8138_vm11  ;;  %v7897_v47 = vrot.slane %v7243_v12, 1 }
 0x368   : > { %v2325_v49 = vsel %vm7233_vm14, %v2201_v39, 0.0 }
 0x369   : > { %v2357_v35 = vadd.f32 %v2325_v49, %v8146_v1  ;;  %v8148_v49 = vmov 0 }
 0x36a   : > { %v8149_v49 = vsel %vm7249_vm0, 4294967295, %v8148_v49 }
 0x36b   : > { %v2945_v0 = vadd.f32 %v2819_v33, %v2357_v35  ;;  %v8150_v33 = vld [vmem:[#allocation78_spill] sm:$0xff] }
 0x36c   : > { %v1939_v6 = vpop.f32.mrf.mxu2  ;;  %v2824_v54 = vpop.f32.mrf.mxu3  ;;  %v8151_v57 = vrot.slane %v8150_v33, 1 }
 0x36d   : > { %v2198_v52 = vrot.slane %v1939_v6, 1  ;;  %v3073_v8 = vadd.f32 %v6772_v5, %v2945_v0  ;;  %v8152_v5 = vld [vmem:[#allocation74_spill] sm:$0xff]  ;;  %v8153_v6 = vld [vmem:[#allocation77_spill] sm:$0xff] }
 0x36f   : > { %v2200_v39 = vsel %vm8147_vm12, %v2197_v44, %v2198_v52  ;;  %v2231_v31 = vsel %vm8138_vm11, %v2198_v52, %v8151_v57  ;;  %v7257_v1 = vadd.f32 %v3169_v59, %v3073_v8  ;;  %vm8155_vm12 = vnez %v8154_v4 }
 0x370   : > { %v2358_v35 = vadd.f32 %v2200_v39, %v8152_v5  ;;  %v2327_v0 = vsel %vm7249_vm0, %v2231_v31, 0.0  ;;  %v3042_v52 = vsel %vm8155_vm12, %v6792_v43, 0.0  ;;  %v3108_v31 = vsel %vm8138_vm11, %v3106_v34, %v7897_v47 }
 0x371   : > { %v2359_v44 = vadd.f32 %v2327_v0, %v8153_v6  ;;  %3542 = vmatmul.bf16.gmra.mxu2 %v6845_v23  ;;  %3720 = vmatmul.bf16.gmra.mxu3 %v6845_v23  ;;  %vm8159_vm0 = vcmp.lt.s32.totalorder %v6207_v18, 1 }
 0x372   : > { %v2946_v55 = vadd.f32 %v2822_v27, %v2358_v35  ;;  %v5281_v27 = vld [vmem:[#allocation12 + $0x30] sm:$0xff]  ;;  %vm8160_vm11 = vmmov %vm8159_vm0 }
 0x373   : > { %v2947_v33 = vadd.f32 %v2824_v54, %v2359_v44  ;;  %4202 = vmatpush.bf16.msrb.mxu1 %v5281_v27  ;;  %v7292_v44 = vpop.f32.mrf.mxu0 }
 0x374   : > { %v7269_v8 = vpop.f32.mrf.mxu2  ;;  %v7271_v59 = vpop.f32.mrf.mxu3  ;;  %v3074_v39 = vadd.f32 %v3042_v52, %v2946_v55 }
 0x375   : > { %8156 = vst [vmem:[#allocation39_spill] sm:$0xff] %v7269_v8  ;;  %v7274_v57 = vadd.f32 %v6817_v16, %v2947_v33  ;;  %v7896_v43 = vrot.slane %v7269_v8, 7 }
 0x376   : > { %8157 = vst [vmem:[#allocation60_spill] sm:$0xff] %v7271_v59  ;;  %v7280_v23 = vadd.f32 %v3108_v31, %v3074_v39 }
 0x37c   : > { %v3505_v54 = vpop.f32.mrf.mxu2  ;;  %v7282_v5 = vpop.f32.mrf.mxu3 }
 0x37d   : > { %8158 = vst [vmem:[#allocation41_spill] sm:$0xff] %v7282_v5  ;;  %v3794_v35 = vrot.slane %v3505_v54, 7  ;;  %v7900_v55 = vrot.slane %v7282_v5, 1 }
 0x37f   : > { %v3855_v16 = vsel %vm8159_vm0, %v7896_v43, %v3794_v35  ;;  %vm8161_vm0 = vcmp.lt.s32.totalorder %v6207_v18, 7 }
 0x380   : > { %v3890_v0 = vadd.f32 %v3855_v16, %v6861_v60 }
 0x381   : > { %3547 = vmatmul.bf16.gmra.mxu2 %v6887_v9  ;;  %3725 = vmatmul.bf16.gmra.mxu3 %v6887_v9  ;;  %v8163_v9 = vld [vmem:[#allocation83_spill] sm:$0xff] }
 0x382   : > { %vm8164_vm14 = vnez %v8163_v9 }
 0x384   : > { %v3508_v34 = vpop.f32.mrf.mxu2  ;;  %v3686_v6 = vpop.f32.mrf.mxu3 }
 0x385   : > { %v3795_v33 = vrot.slane %v3508_v34, 7  ;;  %v3923_v52 = vrot.slane %v3686_v6, 1 }
 0x387   : > { %v3854_v39 = vsel %vm8160_vm11, %v3794_v35, %v3795_v33  ;;  %v3982_v60 = vsel %vm8161_vm0, %v7900_v55, %v3923_v52  ;;  %v7308_v35 = vpop.f32.mrf.mxu0 }
 0x388   : > { %v3859_v27 = vsel %vm6219_vm1, %v3854_v39, 0.0  ;;  %v3986_v54 = vsel %vm8164_vm14, %v3982_v60, 0.0  ;;  %vm8166_vm1 = vmmov %vm8160_vm11  ;;  %v3770_v36 = vadd.f32 %v7308_v35, %v6899_v38 }
 0x389   : > { %v3891_v16 = vadd.f32 %v3859_v27, %v6885_v50  ;;  %v7306_v43 = vadd.f32 %v3986_v54, %v3890_v0  ;;  %v7320_v54 = vld [vmem:[%s7800_s6] ss:$0 sm:$0xff]  ;;  %vm8167_vm14 = vmmov %vm8161_vm0 }
 0x38b   : > { %8165 = vst [vmem:[#allocation69_spill] sm:$0xff] %v7306_v43 }
 0x38c   : > { %v3510_v34 = vpop.f32.mrf.mxu2  ;;  %v3688_v6 = vpop.f32.mrf.mxu3 }
 0x38d   : > { %v3796_v47 = vrot.slane %v3510_v34, 7  ;;  %v3924_v8 = vrot.slane %v3688_v6, 1 }
 0x38f   : > { %v3853_v5 = vsel %vm8160_vm11, %v3795_v33, %v3796_v47  ;;  %v3981_v31 = vsel %vm8161_vm0, %v3923_v52, %v3924_v8  ;;  %v7330_v34 = vpop.f32.mrf.mxu0 }
 0x390   : > { %v3892_v39 = vadd.f32 %v3853_v5, %v6906_v45  ;;  %v4019_v9 = vadd.f32 %v3981_v31, %v3891_v16  ;;  %v8169_v16 = vld [vmem:[#allocation84_spill] sm:$0xff] }
 0x391   : > { %3552 = vmatmul.bf16.gmra.mxu2 %v6930_v46  ;;  %3730 = vmatmul.bf16.gmra.mxu3 %v6930_v46  ;;  %vm8170_vm11 = vnez %v8169_v16 }
 0x394   : > { %v3513_v50 = vpop.f32.mrf.mxu2  ;;  %v3691_v0 = vpop.f32.mrf.mxu3 }
 0x395   : > { %v3797_v60 = vrot.slane %v3513_v50, 7  ;;  %v3925_v27 = vrot.slane %v3691_v0, 1  ;;  %v5280_v50 = vld [vmem:[#allocation12 + $0x28] sm:$0xff]  ;;  %v4055_v0 = vadd.f32 %v7320_v54, %v4019_v9 }
 0x396   : > { %4203 = vmatpush.bf16.msrb.mxu1 %v5280_v50 }
 0x397   : > { %v3852_v33 = vsel %vm8166_vm1, %v3796_v47, %v3797_v60  ;;  %v3980_v45 = vsel %vm8167_vm14, %v3924_v8, %v3925_v27  ;;  %v4087_v5 = vmax.f32 %v4055_v0, 0.0  ;;  %vm8172_vm14 = vmmov %vm8161_vm0 }
 0x398   : > { %v3861_v52 = vsel %vm6241_vm2, %v3852_v33, 0.0  ;;  %v3988_v46 = vsel %vm8170_vm11, %v3980_v45, 0.0  ;;  %vm8171_vm2 = vmmov %vm8166_vm1 }
 0x399   : > { %v3893_v6 = vadd.f32 %v3861_v52, %v6928_v32  ;;  %v4020_v31 = vadd.f32 %v3988_v46, %v3892_v39  ;;  %v7344_v52 = vpop.f32.mrf.mxu0  ;;  %vm8176_vm11 = vmmov %vm8166_vm1 }
 0x39a   : > { %v3772_v42 = vadd.f32 %v7344_v52, %v6940_v26 }
 0x39b   : > { %v4056_v47 = vadd.f32 %v7320_v54, %v4020_v31 }
 0x39c   : > { %v3515_v55 = vpop.f32.mrf.mxu2  ;;  %v3693_v43 = vpop.f32.mrf.mxu3 }
 0x39d   : > { %v3798_v8 = vrot.slane %v3515_v55, 7  ;;  %v3926_v59 = vrot.slane %v3693_v43, 1  ;;  %v4088_v33 = vmax.f32 %v4056_v47, 0.0 }
 0x39f   : > { %v3851_v45 = vsel %vm8171_vm2, %v3797_v60, %v3798_v8  ;;  %v3979_v16 = vsel %vm8161_vm0, %v3925_v27, %v3926_v59  ;;  %v7339_v32 = vpack.c.bf16 %v4088_v33, %v4087_v5  ;;  %vm8177_vm2 = vmmov %vm8161_vm0 }
 0x3a0   : > { %v3894_v39 = vadd.f32 %v3851_v45, %v6949_v11  ;;  %v4021_v9 = vadd.f32 %v3979_v16, %v3893_v6 }
 0x3a1   : > { %3557 = vmatmul.bf16.gmra.mxu2 %v6971_v61  ;;  %3735 = vmatmul.bf16.gmra.mxu3 %v6971_v61  ;;  %v7357_v16 = vpop.f32.mrf.mxu0 }
 0x3a2   : > { %v4057_v47 = vadd.f32 %v7320_v54, %v4021_v9  ;;  %v3773_v52 = vadd.f32 %v7357_v16, %v6956_v22 }
 0x3a4   : > { %v3518_v43 = vpop.f32.mrf.mxu2  ;;  %v3696_v55 = vpop.f32.mrf.mxu3 }
 0x3a5   : > { %v3799_v46 = vrot.slane %v3518_v43, 7  ;;  %v3927_v31 = vrot.slane %v3696_v55, 1 }
 0x3a7   : > { %v3850_v60 = vsel %vm8166_vm1, %v3798_v8, %v3799_v46  ;;  %v3978_v27 = vsel %vm8172_vm14, %v3926_v59, %v3927_v31  ;;  %v4089_v59 = vmax.f32 %v4057_v47, 0.0 }
 0x3a8   : > { %v3863_v11 = vsel %vm6262_vm3, %v3850_v60, 0.0  ;;  %v3990_v50 = vsel %vm6779_vm15, %v3978_v27, 0.0  ;;  %vm8174_vm3 = vmmov %vm8166_vm1 }
 0x3a9   : > { %v3895_v61 = vadd.f32 %v3863_v11, %v6969_v63  ;;  %v4022_v0 = vadd.f32 %v3990_v50, %v3894_v39  ;;  %vm8175_vm15 = vmmov %vm8161_vm0  ;;  %vm8178_vm0 = vnez %v8031_v40 }
 0x3aa   : > { %vm8181_vm14 = vmmov %vm8174_vm3 }
 0x3ab   : > { %v4058_v5 = vadd.f32 %v7320_v54, %v4022_v0  ;;  %v3769_v0 = vadd.f32 %v7292_v44, %v6872_v29 }
 0x3ac   : > { %v3520_v33 = vpop.f32.mrf.mxu2  ;;  %v3698_v45 = vpop.f32.mrf.mxu3 }
 0x3ad   : > { %v3800_v8 = vrot.slane %v3520_v33, 7  ;;  %v3928_v43 = vrot.slane %v3698_v45, 1  ;;  %v4090_v55 = vmax.f32 %v4058_v5, 0.0  ;;  %v5279_v33 = vld [vmem:[#allocation12 + $0x20] sm:$0xff] }
 0x3ae   : > { %4204 = vmatpush.bf16.msrb.mxu1 %v5279_v33 }
 0x3af   : > { %v3849_v51 = vsel %vm8174_vm3, %v3799_v46, %v3800_v8  ;;  %v3977_v60 = vsel %vm8175_vm15, %v3927_v31, %v3928_v43  ;;  %v7363_v63 = vpack.c.bf16 %v4090_v55, %v4089_v59  ;;  %v7370_v46 = vpop.f32.mrf.mxu0  ;;  %vm8183_vm15 = vnez %v8039_v41 }
 0x3b0   : > { %v3896_v39 = vadd.f32 %v3849_v51, %v6991_v25  ;;  %v4023_v9 = vadd.f32 %v3977_v60, %v3895_v61  ;;  %v3774_v2 = vadd.f32 %v7370_v46, %v6983_v3 }
 0x3b1   : > { %3562 = vmatmul.bf16.gmra.mxu2 %v7012_v10  ;;  %3740 = vmatmul.bf16.gmra.mxu3 %v7012_v10 }
 0x3b2   : > { %v4059_v45 = vadd.f32 %v7320_v54, %v4023_v9 }
 0x3b4   : > { %v3523_v27 = vpop.f32.mrf.mxu2  ;;  %v3701_v11 = vpop.f32.mrf.mxu3  ;;  %v4091_v55 = vmax.f32 %v4059_v45, 0.0 }
 0x3b5   : > { %v3801_v6 = vrot.slane %v3523_v27, 7  ;;  %v3929_v50 = vrot.slane %v3701_v11, 1 }
 0x3b7   : > { %v3848_v31 = vsel %vm8176_vm11, %v3800_v8, %v3801_v6  ;;  %v3976_v25 = vsel %vm8177_vm2, %v3928_v43, %v3929_v50  ;;  %v7388_v27 = vpop.f32.mrf.mxu0 }
 0x3b8   : > { %v3865_v61 = vsel %vm6283_vm4, %v3848_v31, 0.0  ;;  %v3992_v10 = vsel %vm8178_vm0, %v3976_v25, 0.0  ;;  %vm8179_vm4 = vmmov %vm8166_vm1  ;;  %v3775_v46 = vadd.f32 %v7388_v27, %v7000_v13 }
 0x3b9   : > { %v3897_v47 = vadd.f32 %v3865_v61, %v3769_v0  ;;  %v4024_v5 = vadd.f32 %v3992_v10, %v3896_v39  ;;  %vm8180_vm1 = vmmov %vm8177_vm2 }
 0x3ba   : > { %vm8182_vm3 = vmmov %vm8180_vm1 }
 0x3bb   : > { %v4060_v29 = vadd.f32 %v7320_v54, %v4024_v5  ;;  %vm8185_vm11 = vmmov %vm8180_vm1 }
 0x3bc   : > { %v3525_v44 = vpop.f32.mrf.mxu2  ;;  %v3703_v59 = vpop.f32.mrf.mxu3  ;;  %vm8186_vm2 = vmmov %vm8179_vm4 }
 0x3bd   : > { %v3802_v8 = vrot.slane %v3525_v44, 7  ;;  %v4092_v51 = vmax.f32 %v4060_v29, 0.0  ;;  %v3930_v43 = vrot.slane %v3703_v59, 1  ;;  %vm8187_vm0 = vmmov %vm8180_vm1 }
 0x3bf   : > { %v3847_v40 = vsel %vm8179_vm4, %v3801_v6, %v3802_v8  ;;  %v7386_v60 = vpack.c.bf16 %v4092_v51, %v4091_v55  ;;  %v3975_v9 = vsel %vm8180_vm1, %v3929_v50, %v3930_v43  ;;  %v3771_v6 = vadd.f32 %v7330_v34, %v6913_v56  ;;  %v7405_v33 = vpop.f32.mrf.mxu0  ;;  %vm8190_vm1 = vmmov %vm8187_vm0 }
 0x3c0   : > { %v3898_v39 = vadd.f32 %v3847_v40, %v3770_v36  ;;  %v4025_v31 = vadd.f32 %v3975_v9, %v3897_v47 }
 0x3c1   : > { %3567 = vmatmul.bf16.gmra.mxu2 %v7050_v48  ;;  %3745 = vmatmul.bf16.gmra.mxu3 %v7050_v48 }
 0x3c2   : > { %v4061_v47 = vadd.f32 %v7320_v54, %v4025_v31 }
 0x3c4   : > { %v3528_v11 = vpop.f32.mrf.mxu2  ;;  %v3706_v0 = vpop.f32.mrf.mxu3  ;;  %v4093_v44 = vmax.f32 %v4061_v47, 0.0 }
 0x3c5   : > { %v3803_v38 = vrot.slane %v3528_v11, 7  ;;  %v3931_v35 = vrot.slane %v3706_v0, 1 }
 0x3c7   : > { %v3846_v25 = vsel %vm8181_vm14, %v3802_v8, %v3803_v38  ;;  %v3974_v61 = vsel %vm8182_vm3, %v3930_v43, %v3931_v35  ;;  %vm8191_vm14 = vmmov %vm8186_vm2 }
 0x3c8   : > { %v3867_v48 = vsel %vm6311_vm5, %v3846_v25, 0.0  ;;  %v3994_v50 = vsel %vm8183_vm15, %v3974_v61, 0.0  ;;  %vm8184_vm5 = vmmov %vm8179_vm4  ;;  %vm8188_vm4 = vnez %v8043_v20  ;;  %v5278_v25 = vld [vmem:[#allocation12 + $0x18] sm:$0xff] }
 0x3c9   : > { %v3899_v10 = vadd.f32 %v3867_v48, %v3771_v6  ;;  %v4026_v5 = vadd.f32 %v3994_v50, %v3898_v39  ;;  %v3632_v39 = vpop.f32.mrf.mxu0  ;;  %4205 = vmatpush.bf16.msrb.mxu1 %v5278_v25  ;;  %vm8192_vm3 = vmmov %vm8187_vm0 }
 0x3cb   : > { %v4062_v56 = vadd.f32 %v7320_v54, %v4026_v5 }
 0x3cc   : > { %v3530_v34 = vpop.f32.mrf.mxu2  ;;  %v3708_v45 = vpop.f32.mrf.mxu3 }
 0x3cd   : > { %v3804_v29 = vrot.slane %v3530_v34, 7  ;;  %v4094_v59 = vmax.f32 %v4062_v56, 0.0  ;;  %v3932_v8 = vrot.slane %v3708_v45, 1 }
 0x3cf   : > { %v3845_v41 = vsel %vm8184_vm5, %v3803_v38, %v3804_v29  ;;  %v7412_v55 = vpack.c.bf16 %v4094_v59, %v4093_v44  ;;  %v3973_v36 = vsel %vm8185_vm11, %v3931_v35, %v3932_v8  ;;  %vm8197_vm5 = vmmov %vm8187_vm0 }
 0x3d0   : > { %v3900_v51 = vadd.f32 %v3845_v41, %v3772_v42  ;;  %v4027_v9 = vadd.f32 %v3973_v36, %v3899_v10  ;;  %v8193_v36 = vld [vmem:[#allocation30_spill] sm:$0xff]  ;;  %vm8199_vm11 = vmmov %vm8186_vm2 }
 0x3d1   : > { %3572 = vmatmul.bf16.gmra.mxu2 %v7086_v62  ;;  %3750 = vmatmul.bf16.gmra.mxu3 %v7086_v62  ;;  %v3634_v56 = vpop.f32.mrf.mxu0  ;;  %vm8194_vm15 = vnez %v8193_v36 }
 0x3d2   : > { %v4063_v61 = vadd.f32 %v7320_v54, %v4027_v9 }
 0x3d4   : > { %v3533_v43 = vpop.f32.mrf.mxu2  ;;  %v3711_v40 = vpop.f32.mrf.mxu3  ;;  %v4095_v10 = vmax.f32 %v4063_v61, 0.0 }
 0x3d5   : > { %v3805_v11 = vrot.slane %v3533_v43, 7  ;;  %v3933_v26 = vrot.slane %v3711_v40, 1 }
 0x3d7   : > { %v3844_v0 = vsel %vm8186_vm2, %v3804_v29, %v3805_v11  ;;  %v3972_v31 = vsel %vm8187_vm0, %v3932_v8, %v3933_v26 }
 0x3d8   : > { %v3869_v62 = vsel %vm6338_vm6, %v3844_v0, 0.0  ;;  %v3996_v38 = vsel %vm8188_vm4, %v3972_v31, 0.0  ;;  %vm8189_vm6 = vmmov %vm8186_vm2 }
 0x3d9   : > { %v3901_v35 = vadd.f32 %v3869_v62, %v3773_v52  ;;  %v4028_v6 = vadd.f32 %v3996_v38, %v3900_v51  ;;  %v3637_v40 = vpop.f32.mrf.mxu0  ;;  %v8195_v38 = vld [vmem:[#allocation32_spill] sm:$0xff]  ;;  %vm8206_vm4 = vmmov %vm8190_vm1 }
 0x3db   : > { %v4064_v22 = vadd.f32 %v7320_v54, %v4028_v6 }
 0x3dc   : > { %v3535_v16 = vpop.f32.mrf.mxu2  ;;  %v3713_v48 = vpop.f32.mrf.mxu3 }
 0x3dd   : > { %v3806_v50 = vrot.slane %v3535_v16, 7  ;;  %v4096_v5 = vmax.f32 %v4064_v22, 0.0  ;;  %v3934_v47 = vrot.slane %v3713_v48, 1 }
 0x3df   : > { %v3843_v20 = vsel %vm8189_vm6, %v3805_v11, %v3806_v50  ;;  %v7434_v34 = vpack.c.bf16 %v4096_v5, %v4095_v10  ;;  %v3971_v29 = vsel %vm8190_vm1, %v3933_v26, %v3934_v47 }
 0x3e0   : > { %v3902_v45 = vadd.f32 %v3843_v20, %v3774_v2  ;;  %v4029_v42 = vadd.f32 %v3971_v29, %v3901_v35  ;;  %v3776_v35 = vadd.f32 %v7405_v33, %v8195_v38 }
 0x3e1   : > { %3577 = vmatmul.bf16.gmra.mxu2 %v7117_v19  ;;  %3755 = vmatmul.bf16.gmra.mxu3 %v7117_v19  ;;  %v3639_v16 = vpop.f32.mrf.mxu0 }
 0x3e2   : > { %v4065_v26 = vadd.f32 %v7320_v54, %v4029_v42 }
 0x3e4   : > { %v3538_v44 = vpop.f32.mrf.mxu2  ;;  %v3716_v59 = vpop.f32.mrf.mxu3  ;;  %v4097_v31 = vmax.f32 %v4065_v26, 0.0  ;;  %v8204_v26 = vld [vmem:[#allocation33_spill] sm:$0xff] }
 0x3e5   : > { %v3807_v8 = vrot.slane %v3538_v44, 7  ;;  %v3935_v3 = vrot.slane %v3716_v59, 1  ;;  %v8202_v59 = vld [vmem:[#allocation43_spill] sm:$0xff] }
 0x3e7   : > { %v3842_v41 = vsel %vm8191_vm14, %v3806_v50, %v3807_v8  ;;  %v3970_v51 = vsel %vm8192_vm3, %v3934_v47, %v3935_v3  ;;  %v8198_v47 = vld [vmem:[#allocation46_spill] sm:$0xff]  ;;  %vm8212_vm3 = vmmov %vm8189_vm6 }
 0x3e8   : > { %v3871_v19 = vsel %vm6365_vm7, %v3842_v41, 0.0  ;;  %v3998_v43 = vsel %vm8194_vm15, %v3970_v51, 0.0  ;;  %vm8196_vm7 = vmmov %vm8186_vm2  ;;  %v3777_v20 = vadd.f32 %v3632_v39, %v8198_v47 }
 0x3e9   : > { %v3903_v9 = vadd.f32 %v3871_v19, %v3775_v46  ;;  %v4030_v11 = vadd.f32 %v3998_v43, %v3902_v45  ;;  %vm8200_vm2 = vmmov %vm8187_vm0  ;;  %vm8203_vm0 = vnez %v8202_v59  ;;  %v5277_v46 = vld [vmem:[#allocation12 + $0x10] sm:$0xff]  ;;  %v3642_v36 = vpop.f32.mrf.mxu0 }
 0x3ea   : > { %4206 = vmatpush.bf16.msrb.mxu1 %v5277_v46  ;;  %v8211_v46 = vld [vmem:[#allocation57_spill] sm:$0xff]  ;;  %vm8215_vm15 = vmmov %vm8212_vm3 }
 0x3eb   : > { %v4066_v52 = vadd.f32 %v7320_v54, %v4030_v11 }
 0x3ec   : > { %v3540_v13 = vpop.f32.mrf.mxu2  ;;  %v3718_v27 = vpop.f32.mrf.mxu3 }
 0x3ed   : > { %v3808_v0 = vrot.slane %v3540_v13, 7  ;;  %v4098_v62 = vmax.f32 %v4066_v52, 0.0  ;;  %v3936_v15 = vrot.slane %v3718_v27, 1  ;;  %v3778_v52 = vadd.f32 %v3634_v56, %v8204_v26 }
 0x3ef   : > { %v3841_v6 = vsel %vm8196_vm7, %v3807_v8, %v3808_v0  ;;  %v7456_v25 = vpack.c.bf16 %v4098_v62, %v4097_v31  ;;  %v3969_v22 = vsel %vm8197_vm5, %v3935_v3, %v3936_v15  ;;  %vm8216_vm7 = vmmov %vm8190_vm1 }
 0x3f0   : > { %v3904_v61 = vadd.f32 %v3841_v6, %v3776_v35  ;;  %v4031_v10 = vadd.f32 %v3969_v22, %v3903_v9  ;;  %v8207_v22 = vld [vmem:[#allocation49_spill] sm:$0xff] }
 0x3f2   : > { %v4067_v41 = vadd.f32 %v7320_v54, %v4031_v10 }
 0x3f4   : > { %v3543_v48 = vpop.f32.mrf.mxu2  ;;  %v3721_v50 = vpop.f32.mrf.mxu3  ;;  %v4099_v9 = vmax.f32 %v4067_v41, 0.0  ;;  %v3780_v41 = vadd.f32 %v3639_v16, %v8211_v46 }
 0x3f5   : > { %v3809_v5 = vrot.slane %v3543_v48, 7  ;;  %v3937_v2 = vrot.slane %v3721_v50, 1  ;;  %v3779_v48 = vadd.f32 %v3637_v40, %v8207_v22  ;;  %v3644_v50 = vpop.f32.mrf.mxu0  ;;  %v8218_v22 = vld [vmem:[#allocation35_spill] sm:$0xff] }
 0x3f6   : > { %vm8219_vm5 = vnez %v8218_v22 }
 0x3f7   : > { %v3840_v33 = vsel %vm8199_vm11, %v3808_v0, %v3809_v5  ;;  %v3968_v45 = vsel %vm8200_vm2, %v3936_v15, %v3937_v2  ;;  %vm8222_vm11 = vmmov %vm8190_vm1 }
 0x3f8   : > { %v3873_v44 = vsel %vm6394_vm8, %v3840_v33, 0.0  ;;  %v4000_v42 = vsel %vm8203_vm0, %v3968_v45, 0.0  ;;  %vm8205_vm8 = vmmov %vm8189_vm6 }
 0x3f9   : > { %v3905_v8 = vadd.f32 %v3873_v44, %v3777_v20  ;;  %v4032_v3 = vadd.f32 %v4000_v42, %v3904_v61  ;;  %v8209_v20 = vld [vmem:[#allocation31_spill] sm:$0xff]  ;;  %vm8223_vm2 = vmmov %vm8212_vm3 }
 0x3fa   : > { %vm8210_vm14 = vnez %v8209_v20  ;;  %vm8224_vm0 = vmmov %vm8190_vm1 }
 0x3fb   : > { %v4068_v39 = vadd.f32 %v7320_v54, %v4032_v3 }
 0x3fc   : > { %v3545_v51 = vpop.f32.mrf.mxu2  ;;  %v3723_v19 = vpop.f32.mrf.mxu3 }
 0x3fd   : > { %v3810_v43 = vrot.slane %v3545_v51, 7  ;;  %v4100_v11 = vmax.f32 %v4068_v39, 0.0  ;;  %v3938_v13 = vrot.slane %v3723_v19, 1 }
 0x3ff   : > { %v3839_v27 = vsel %vm8205_vm8, %v3809_v5, %v3810_v43  ;;  %v7474_v0 = vpack.c.bf16 %v4100_v11, %v4099_v9  ;;  %v3967_v62 = vsel %vm8206_vm4, %v3937_v2, %v3938_v13  ;;  %v3647_v9 = vpop.f32.mrf.mxu0 }
 0x400   : > { %v3906_v31 = vadd.f32 %v3839_v27, %v3778_v52  ;;  %v4033_v15 = vadd.f32 %v3967_v62, %v3905_v8  ;;  %v8214_v62 = vld [vmem:[#allocation52_spill] sm:$0xff] }
 0x402   : > { %v4069_v29 = vadd.f32 %v7320_v54, %v4033_v15 }
 0x404   : > { %v3548_v38 = vpop.f32.mrf.mxu2  ;;  %v3726_v35 = vpop.f32.mrf.mxu3  ;;  %v4101_v8 = vmax.f32 %v4069_v29, 0.0 }
 0x405   : > { %v3811_v6 = vrot.slane %v3548_v38, 7  ;;  %v3939_v61 = vrot.slane %v3726_v35, 1  ;;  %v3781_v38 = vadd.f32 %v3642_v36, %v8214_v62 }
 0x407   : > { %v3838_v56 = vsel %vm8189_vm6, %v3810_v43, %v3811_v6  ;;  %v3966_v10 = vsel %vm8190_vm1, %v3938_v13, %v3939_v61  ;;  %vm8230_vm6 = vmmov %vm8223_vm2 }
 0x408   : > { %v3875_v47 = vsel %vm6423_vm9, %v3838_v56, 0.0  ;;  %v4002_v2 = vsel %vm8210_vm14, %v3966_v10, 0.0  ;;  %vm8213_vm9 = vmmov %vm8190_vm1  ;;  %v5276_v10 = vld [vmem:[#allocation12 + $0x8] sm:$0xff] }
 0x409   : > { %v3907_v33 = vadd.f32 %v3875_v47, %v3779_v48  ;;  %v4034_v45 = vadd.f32 %v4002_v2, %v3906_v31  ;;  %v3649_v47 = vpop.f32.mrf.mxu0  ;;  %4207 = vmatpush.bf16.msrb.mxu1 %v5276_v10  ;;  %vm8231_vm1 = vmmov %vm8224_vm0 }
 0x40a   : > { %vm8232_vm14 = vmmov %vm8223_vm2 }
 0x40b   : > { %v4070_v44 = vadd.f32 %v7320_v54, %v4034_v45 }
 0x40c   : > { %v3550_v40 = vpop.f32.mrf.mxu2  ;;  %v3728_v59 = vpop.f32.mrf.mxu3 }
 0x40d   : > { %v3812_v42 = vrot.slane %v3550_v40, 7  ;;  %v4102_v3 = vmax.f32 %v4070_v44, 0.0  ;;  %v3940_v39 = vrot.slane %v3728_v59, 1  ;;  %v8220_v44 = vld [vmem:[#allocation36_spill] sm:$0xff] }
 0x40e   : > { %v3782_v40 = vadd.f32 %v3644_v50, %v8220_v44 }
 0x40f   : > { %v3837_v51 = vsel %vm8212_vm3, %v3811_v6, %v3812_v42  ;;  %v7492_v19 = vpack.c.bf16 %v4102_v3, %v4101_v8  ;;  %v3965_v11 = vsel %vm8213_vm9, %v3939_v61, %v3940_v39 }
 0x410   : > { %v3908_v43 = vadd.f32 %v3837_v51, %v3780_v41  ;;  %v4035_v13 = vadd.f32 %v3965_v11, %v3907_v33 }
 0x411   : > { %v3652_v51 = vpop.f32.mrf.mxu0 }
 0x412   : > { %v4071_v5 = vadd.f32 %v7320_v54, %v4035_v13 }
 0x414   : > { %v3553_v26 = vpop.f32.mrf.mxu2  ;;  %v3731_v52 = vpop.f32.mrf.mxu3  ;;  %v4103_v45 = vmax.f32 %v4071_v5, 0.0 }
 0x415   : > { %v3813_v27 = vrot.slane %v3553_v26, 7  ;;  %v3941_v31 = vrot.slane %v3731_v52, 1  ;;  %v3783_v52 = vadd.f32 %v3647_v9, %v7141_v17 }
 0x417   : > { %v3836_v16 = vsel %vm8215_vm15, %v3812_v42, %v3813_v27  ;;  %v3964_v35 = vsel %vm8216_vm7, %v3940_v39, %v3941_v31  ;;  %vm8237_vm15 = vmmov %vm8224_vm0 }
 0x418   : > { %v3877_v6 = vsel %vm6452_vm10, %v3836_v16, 0.0  ;;  %v4004_v48 = vsel %vm8219_vm5, %v3964_v35, 0.0  ;;  %vm8221_vm10 = vmmov %vm8212_vm3 }
 0x419   : > { %v3909_v61 = vadd.f32 %v3877_v6, %v3781_v38  ;;  %v4036_v56 = vadd.f32 %v4004_v48, %v3908_v43  ;;  %v8227_v38 = vld [vmem:[#allocation34_spill] sm:$0xff]  ;;  %vm8233_vm3 = vmmov %vm8224_vm0 }
 0x41a   : > { %vm8228_vm4 = vnez %v8227_v38  ;;  %vm8238_vm7 = vmmov %vm8223_vm2 }
 0x41b   : > { %v4072_v36 = vadd.f32 %v7320_v54, %v4036_v56  ;;  %v8229_v56 = vld [vmem:[#allocation38_spill] sm:$0xff]  ;;  %vm8239_vm5 = vmmov %vm8224_vm0 }
 0x41c   : > { %v3555_v20 = vpop.f32.mrf.mxu2  ;;  %v3733_v2 = vpop.f32.mrf.mxu3  ;;  %v3784_v10 = vadd.f32 %v3649_v47, %v8229_v56 }
 0x41d   : > { %v3814_v33 = vrot.slane %v3555_v20, 7  ;;  %v4104_v29 = vmax.f32 %v4072_v36, 0.0  ;;  %v3942_v59 = vrot.slane %v3733_v2, 1  ;;  %v3654_v36 = vpop.f32.mrf.mxu0 }
 0x41e   : > { %v3786_v7 = vadd.f32 %v3654_v36, %v7188_v53 }
 0x41f   : > { %v3835_v42 = vsel %vm8221_vm10, %v3813_v27, %v3814_v33  ;;  %v7510_v8 = vpack.c.bf16 %v4104_v29, %v4103_v45  ;;  %v3963_v46 = vsel %vm8222_vm11, %v3941_v31, %v3942_v59  ;;  %v8225_v27 = vld [vmem:[#allocation50_spill] sm:$0xff]  ;;  %vm8240_vm10 = vnez %v8132_v21 }
 0x420   : > { %v3910_v3 = vadd.f32 %v3835_v42, %v3782_v40  ;;  %v4037_v43 = vadd.f32 %v3963_v46, %v3909_v61  ;;  %vm8226_vm8 = vnez %v8225_v27 }
 0x422   : > { %v4073_v15 = vadd.f32 %v7320_v54, %v4037_v43 }
 0x424   : > { %v3558_v41 = vpop.f32.mrf.mxu2  ;;  %v3736_v39 = vpop.f32.mrf.mxu3  ;;  %v4105_v48 = vmax.f32 %v4073_v15, 0.0 }
 0x425   : > { %v3815_v11 = vrot.slane %v3558_v41, 7  ;;  %v3943_v26 = vrot.slane %v3736_v39, 1  ;;  %v8234_v39 = vld [vmem:[#allocation54_spill] sm:$0xff] }
 0x426   : > { %vm8235_vm9 = vnez %v8234_v39 }
 0x427   : > { %v3834_v50 = vsel %vm8223_vm2, %v3814_v33, %v3815_v11  ;;  %v3962_v13 = vsel %vm8224_vm0, %v3942_v59, %v3943_v26 }
 0x428   : > { %v3879_v62 = vsel %vm8226_vm8, %v3834_v50, 0.0  ;;  %v4006_v31 = vsel %vm8228_vm4, %v3962_v13, 0.0  ;;  %v5275_v50 = vld [vmem:[#allocation12] sm:$0xff]  ;;  %vm8243_vm8 = vmmov %vm8223_vm2 }
 0x429   : > { %v3911_v16 = vadd.f32 %v3879_v62, %v3783_v52  ;;  %v4038_v35 = vadd.f32 %v4006_v31, %v3910_v3  ;;  %v3785_v3 = vadd.f32 %v3652_v51, %v7170_v24  ;;  %4208 = vmatpush.bf16.msrb.mxu1 %v5275_v50  ;;  %vm8244_vm4 = vmmov %vm8224_vm0 }
 0x42b   : > { %v4074_v6 = vadd.f32 %v7320_v54, %v4038_v35 }
 0x42c   : > { %v3560_v22 = vpop.f32.mrf.mxu2  ;;  %v3738_v17 = vpop.f32.mrf.mxu3 }
 0x42d   : > { %v3816_v9 = vrot.slane %v3560_v22, 7  ;;  %v4106_v61 = vmax.f32 %v4074_v6, 0.0  ;;  %v3944_v5 = vrot.slane %v3738_v17, 1 }
 0x42f   : > { %v3833_v20 = vsel %vm8230_vm6, %v3815_v11, %v3816_v9  ;;  %v7528_v2 = vpack.c.bf16 %v4106_v61, %v4105_v48  ;;  %v3961_v45 = vsel %vm8231_vm1, %v3943_v26, %v3944_v5  ;;  %v3657_v11 = vpop.f32.mrf.mxu0  ;;  %vm8245_vm6 = vnez %v8140_v14 }
 0x430   : > { %v3912_v33 = vadd.f32 %v3833_v20, %v3784_v10  ;;  %v4039_v40 = vadd.f32 %v3961_v45, %v3911_v16  ;;  %vm8246_vm1 = vnez %v8136_v58 }
 0x432   : > { %v4075_v13 = vadd.f32 %v7320_v54, %v4039_v40 }
 0x434   : > { %v3563_v29 = vpop.f32.mrf.mxu2  ;;  %v3741_v44 = vpop.f32.mrf.mxu3  ;;  %v4107_v38 = vmax.f32 %v4075_v13, 0.0 }
 0x435   : > { %v3817_v59 = vrot.slane %v3563_v29, 7  ;;  %v3945_v42 = vrot.slane %v3741_v44, 1 }
 0x437   : > { %v3832_v47 = vsel %vm8232_vm14, %v3816_v9, %v3817_v59  ;;  %v3960_v46 = vsel %vm8233_vm3, %v3944_v5, %v3945_v42  ;;  %v3659_v17 = vpop.f32.mrf.mxu0  ;;  %v3787_v5 = vadd.f32 %v3657_v11, %v7199_v37  ;;  %vm8247_vm14 = vmmov %vm8223_vm2 }
 0x438   : > { %v3881_v41 = vsel %vm6520_vm13, %v3832_v47, 0.0  ;;  %v4008_v43 = vsel %vm8235_vm9, %v3960_v46, 0.0  ;;  %vm8236_vm13 = vmmov %vm8223_vm2  ;;  %v3788_v39 = vadd.f32 %v3659_v17, %v7217_v30 }
 0x439   : > { %v3913_v26 = vadd.f32 %v3881_v41, %v3785_v3  ;;  %v4040_v52 = vadd.f32 %v4008_v43, %v3912_v33  ;;  %v8241_v33 = vld [vmem:[#allocation63_spill] sm:$0xff]  ;;  %vm8248_vm3 = vmmov %vm8224_vm0 }
 0x43a   : > { %vm8242_vm11 = vnez %v8241_v33  ;;  %vm8249_vm9 = vmmov %vm8223_vm2 }
 0x43b   : > { %v4076_v24 = vadd.f32 %v7320_v54, %v4040_v52 }
 0x43c   : > { %v3565_v51 = vpop.f32.mrf.mxu2  ;;  %v3743_v27 = vpop.f32.mrf.mxu3 }
 0x43d   : > { %v3818_v62 = vrot.slane %v3565_v51, 7  ;;  %v4108_v31 = vmax.f32 %v4076_v24, 0.0  ;;  %v3946_v16 = vrot.slane %v3743_v27, 1 }
 0x43f   : > { %v3831_v35 = vsel %vm8236_vm13, %v3817_v59, %v3818_v62  ;;  %v7546_v15 = vpack.c.bf16 %v4108_v31, %v4107_v38  ;;  %v3959_v22 = vsel %vm8237_vm15, %v3945_v42, %v3946_v16  ;;  %v3662_v3 = vpop.f32.mrf.mxu0  ;;  %vm8250_vm13 = vmmov %vm8224_vm0 }
 0x440   : > { %v3914_v6 = vadd.f32 %v3831_v35, %v3786_v7  ;;  %v4041_v61 = vadd.f32 %v3959_v22, %v3913_v26  ;;  %vm8254_vm15 = vmmov %vm8224_vm0 }
 0x442   : > { %v4077_v40 = vadd.f32 %v7320_v54, %v4041_v61 }
 0x444   : > { %v3568_v9 = vpop.f32.mrf.mxu2  ;;  %v3746_v48 = vpop.f32.mrf.mxu3  ;;  %v4109_v46 = vmax.f32 %v4077_v40, 0.0 }
 0x445   : > { %v3819_v56 = vrot.slane %v3568_v9, 7  ;;  %v3947_v10 = vrot.slane %v3746_v48, 1 }
 0x447   : > { %v3830_v53 = vsel %vm8238_vm7, %v3818_v62, %v3819_v56  ;;  %v3958_v36 = vsel %vm8239_vm5, %v3946_v16, %v3947_v10  ;;  %v3789_v62 = vadd.f32 %v3662_v3, %v7228_v28  ;;  %v3664_v38 = vpop.f32.mrf.mxu0  ;;  %vm8257_vm5 = vnez %v8149_v49 }
 0x448   : > { %v3883_v20 = vsel %vm8240_vm10, %v3830_v53, 0.0  ;;  %v4010_v45 = vsel %vm8242_vm11, %v3958_v36, 0.0  ;;  %vm8262_vm10 = vmmov %vm8223_vm2 }
 0x449   : > { %v3915_v29 = vadd.f32 %v3883_v20, %v3787_v5  ;;  %v4042_v44 = vadd.f32 %v4010_v45, %v3914_v6  ;;  %vm8263_vm11 = vmmov %vm8224_vm0 }
 0x44b   : > { %v4078_v59 = vadd.f32 %v7320_v54, %v4042_v44 }
 0x44c   : > { %v3570_v42 = vpop.f32.mrf.mxu2  ;;  %v3748_v37 = vpop.f32.mrf.mxu3 }
 0x44d   : > { %v3820_v47 = vrot.slane %v3570_v42, 7  ;;  %v4110_v41 = vmax.f32 %v4078_v59, 0.0  ;;  %v3948_v43 = vrot.slane %v3748_v37, 1  ;;  %v8251_v37 = vld [vmem:[#allocation47_spill] sm:$0xff] }
 0x44e   : > { %v8252_v3 = vrot.slane %v8251_v37, 1 }
 0x44f   : > { %v3829_v21 = vsel %vm8223_vm2, %v3819_v56, %v3820_v47  ;;  %v7564_v11 = vpack.c.bf16 %v4110_v41, %v4109_v46  ;;  %v3957_v52 = vsel %vm8224_vm0, %v3947_v10, %v3948_v43  ;;  %v3790_v10 = vadd.f32 %v3664_v38, %v7257_v1  ;;  %v3667_v36 = vpop.f32.mrf.mxu0 }
 0x450   : > { %v3916_v26 = vadd.f32 %v3829_v21, %v3788_v39  ;;  %v4043_v24 = vadd.f32 %v3957_v52, %v3915_v29  ;;  %v3791_v59 = vadd.f32 %v3667_v36, %v7280_v23  ;;  %v8255_v39 = vld [vmem:[#allocation58_spill] sm:$0xff] }
 0x451   : > { %vm8256_vm7 = vnez %v8255_v39 }
 0x452   : > { %v4079_v22 = vadd.f32 %v7320_v54, %v4043_v24 }
 0x454   : > { %v3573_v50 = vpop.f32.mrf.mxu2  ;;  %v3751_v13 = vpop.f32.mrf.mxu3  ;;  %v4111_v61 = vmax.f32 %v4079_v22, 0.0 }
 0x455   : > { %v3821_v51 = vrot.slane %v3573_v50, 7  ;;  %v3949_v27 = vrot.slane %v3751_v13, 1 }
 0x457   : > { %v3828_v30 = vsel %vm8243_vm8, %v3820_v47, %v3821_v51  ;;  %v3956_v31 = vsel %vm8244_vm4, %v3948_v43, %v3949_v27  ;;  %v8253_v47 = vrot.slane %v7243_v12, 1  ;;  %v3669_v50 = vpop.f32.mrf.mxu0 }
 0x458   : > { %v3885_v7 = vsel %vm8245_vm6, %v3828_v30, 0.0  ;;  %v4012_v16 = vsel %vm8246_vm1, %v3956_v31, 0.0 }
 0x459   : > { %v3917_v35 = vadd.f32 %v3885_v7, %v3789_v62  ;;  %v4044_v6 = vadd.f32 %v4012_v16, %v3916_v26  ;;  %v3139_v46 = vsel %vm8254_vm15, %v8253_v47, %v8252_v3 }
 0x45a   : > { %v3171_v52 = vsel %vm8257_vm5, %v3139_v46, 0.0 }
 0x45b   : > { %v4080_v17 = vadd.f32 %v7320_v54, %v4044_v6  ;;  %v3203_v12 = vadd.f32 %v3171_v52, %v7274_v57 }
 0x45c   : > { %v3575_v28 = vpop.f32.mrf.mxu2  ;;  %v3753_v9 = vpop.f32.mrf.mxu3 }
 0x45d   : > { %v3822_v48 = vrot.slane %v3575_v28, 7  ;;  %v4112_v56 = vmax.f32 %v4080_v17, 0.0  ;;  %v3950_v5 = vrot.slane %v3753_v9, 1  ;;  %v3792_v31 = vadd.f32 %v3669_v50, %v3203_v12  ;;  %v8265_v28 = vld [vmem:[#allocation80_spill] sm:$0xff] }
 0x45f   : > { %v3827_v14 = vsel %vm8247_vm14, %v3821_v51, %v3822_v48  ;;  %v7582_v53 = vpack.c.bf16 %v4112_v56, %v4111_v61  ;;  %v3955_v20 = vsel %vm8248_vm3, %v3949_v27, %v3950_v5  ;;  %v8258_v27 = vld [vmem:[#allocation60_spill] sm:$0xff] }
 0x460   : > { %v3918_v58 = vadd.f32 %v3827_v14, %v3790_v10  ;;  %v4045_v40 = vadd.f32 %v3955_v20, %v3917_v35  ;;  %v3921_v4 = vrot.slane %v8258_v27, 1  ;;  %v8260_v35 = vld [vmem:[#allocation39_spill] sm:$0xff]  ;;  %v8267_v10 = vld [vmem:[#allocation86_spill] sm:$0xff] }
 0x461   : > { %v8261_v6 = vrot.slane %v8260_v35, 7 }
 0x462   : > { %v4081_v26 = vadd.f32 %v7320_v54, %v4045_v40 }
 0x464   : > { %v3578_v33 = vpop.f32.mrf.mxu2  ;;  %v3756_v45 = vpop.f32.mrf.mxu3  ;;  %v4113_v7 = vmax.f32 %v4081_v26, 0.0 }
 0x465   : > { %v3823_v29 = vrot.slane %v3578_v33, 7  ;;  %v3951_v44 = vrot.slane %v3756_v45, 1 }
 0x467   : > { %v3826_v1 = vsel %vm8249_vm9, %v3822_v48, %v3823_v29  ;;  %v3954_v42 = vsel %vm8250_vm13, %v3950_v5, %v3951_v44 }
 0x468   : > { %v3887_v41 = vsel %vm8155_vm12, %v3826_v1, 0.0  ;;  %v4014_v43 = vsel %vm8256_vm7, %v3954_v42, 0.0  ;;  %vm8259_vm12 = vmmov %vm8223_vm2 }
 0x469   : > { %v3919_v23 = vadd.f32 %v3887_v41, %v3791_v59  ;;  %v4046_v21 = vadd.f32 %v4014_v43, %v3918_v58  ;;  %vm8264_vm2 = vmmov %vm8224_vm0  ;;  %vm8266_vm0 = vnez %v8265_v28  ;;  %v8268_v58 = vld [vmem:[#allocation41_spill] sm:$0xff] }
 0x46a   : > { %v8269_v36 = vrot.slane %v8268_v58, 1  ;;  %vm8270_vm8 = vmmov %vm8264_vm2 }
 0x46b   : > { %v4082_v13 = vadd.f32 %v7320_v54, %v4046_v21 }
 0x46c   : > { %v3580_v24 = vpop.f32.mrf.mxu2  ;;  %v3758_v51 = vpop.f32.mrf.mxu3  ;;  %v3983_v20 = vsel %vm8270_vm8, %v3921_v4, %v8269_v36 }
 0x46d   : > { %v3824_v62 = vrot.slane %v3580_v24, 7  ;;  %v3952_v38 = vrot.slane %v3758_v51, 1  ;;  %v4114_v30 = vmax.f32 %v4082_v13, 0.0  ;;  %v5545_v13 = vld [vmem:[%s6072_s20 + $0x18] sm:$0xff] }
 0x46f   : > { %v3825_v16 = vsel %vm8259_vm12, %v3823_v29, %v3824_v62  ;;  %v3856_v22 = vsel %vm8262_vm10, %v3824_v62, %v8261_v6  ;;  %v3953_v57 = vsel %vm8263_vm11, %v3951_v44, %v3952_v38  ;;  %v3984_v17 = vsel %vm8264_vm2, %v3952_v38, %v3921_v4  ;;  %v8271_v29 = vld [vmem:[#allocation69_spill] sm:$0xff]  ;;  %v5546_v4 = vld [vmem:[%s6072_s20 + $0x20] sm:$0xff] }
 0x470   : > { %v3857_v9 = vsel %vm8266_vm0, %v3856_v22, 0.0  ;;  %v3920_v48 = vadd.f32 %v3825_v16, %v3792_v31  ;;  %v4016_v61 = vsel %vm8257_vm5, %v3984_v17, 0.0  ;;  %v4047_v56 = vadd.f32 %v3953_v57, %v3919_v23  ;;  %v5544_v23 = vld [vmem:[%s6072_s20 + $0x10] sm:$0xff]  ;;  %v5547_v31 = vld [vmem:[%s6072_s20 + $0x28] sm:$0xff] }
 0x471   : > { %v3889_v14 = vadd.f32 %v3857_v9, %v8267_v10  ;;  %v7622_v5 = vpack.c.bf16 %v4114_v30, %v4113_v7  ;;  %v4054_v44 = vadd.f32 %v7320_v54, %v8271_v29  ;;  %v5548_v22 = vld [vmem:[%s6072_s20 + $0x30] sm:$0xff]  ;;  %v5549_v9 = vld [vmem:[%s6072_s20 + $0x38] sm:$0xff] }
 0x472   : > { %v4048_v33 = vadd.f32 %v4016_v61, %v3920_v48  ;;  %v4083_v45 = vadd.f32 %v7320_v54, %v4047_v56 }
 0x473   : > { %v4017_v40 = vadd.f32 %v3983_v20, %v3889_v14  ;;  %v4086_v37 = vmax.f32 %v4054_v44, 0.0  ;;  %v5550_v14 = vld [vmem:[%s6072_s20 + $0x40] sm:$0xff] }
 0x474   : > { %v4084_v49 = vadd.f32 %v7320_v54, %v4048_v33  ;;  %v4115_v1 = vmax.f32 %v4083_v45, 0.0  ;;  %v5551_v33 = vld [vmem:[%s6072_s20 + $0x48] sm:$0xff] }
 0x475   : > { %v4053_v59 = vadd.f32 %v7320_v54, %v4017_v40  ;;  %v7645_v54 = vld [vmem:[%s7802_s8] ss:$0 sm:$0xff] }
 0x476   : > { %v4116_v42 = vmax.f32 %v4084_v49, 0.0  ;;  %v5552_v49 = vld [vmem:[%s6072_s20 + $0x50] sm:$0xff] }
 0x477   : > { %v4085_v3 = vmax.f32 %v4053_v59, 0.0 }
 0x478   : > { %v7633_v47 = vpack.c.bf16 %v4116_v42, %v4115_v1 }
 0x479   : > { %v4117_v18 = vpack.c.bf16 %v4086_v37, %v4085_v3  ;;  %v5553_v37 = vld [vmem:[%s6072_s20 + $0x58] sm:$0xff] }
 0x47b   : > { %4209 = vmatmul.bf16.vlgmr.msrb.gmra.mxu1 %v4117_v18 }
 0x48b   : > { %4214 = vmatmul.bf16.gmra.mxu1 %v7339_v32 }
 0x49b   : > { %4219 = vmatmul.bf16.gmra.mxu1 %v7363_v63  ;;  %v5542_v63 = vld [vmem:[%s6072_s20] sm:$0xff] }
 0x4ab   : > { %4224 = vmatmul.bf16.gmra.mxu1 %v7386_v60 }
 0x4bb   : > { %4229 = vmatmul.bf16.gmra.mxu1 %v7412_v55 }
 0x4cb   : > { %4234 = vmatmul.bf16.gmra.mxu1 %v7434_v34 }
 0x4db   : > { %4239 = vmatmul.bf16.gmra.mxu1 %v7456_v25 }
 0x4eb   : > { %4244 = vmatmul.bf16.gmra.mxu1 %v7474_v0  ;;  %v5543_v0 = vld [vmem:[%s6072_s20 + $0x8] sm:$0xff] }
 0x4f8   : > { %v4210_v46 = vpop.f32.mrf.mxu1 }
 0x4f9   : > { %v4211_v32 = vadd.f32 %v7645_v54, %v4210_v46 }
 0x4fb   : > { %v4290_v60 = vadd.f32 %v5542_v63, %v4211_v32  ;;  %4249 = vmatmul.bf16.gmra.mxu1 %v7492_v19  ;;  %v5554_v63 = vld [vmem:[%s6072_s20 + $0x60] sm:$0xff] }
 0x4fd   : > { %v4322_v55 = vmax.f32 %v4290_v60, 0.0 }
 0x4ff   : > { %4354 = vst [vmem:[%s7652_s3] sm:$0xff] %v4322_v55 }
 0x500   : > { %v4212_v34 = vpop.f32.mrf.mxu1 }
 0x501   : > { %v4213_v25 = vadd.f32 %v7645_v54, %v4212_v34 }
 0x503   : > { %v4291_v41 = vadd.f32 %v5543_v0, %v4213_v25  ;;  %v5555_v25 = vld [vmem:[%s6072_s20 + $0x68] sm:$0xff] }
 0x505   : > { %v4323_v39 = vmax.f32 %v4291_v41, 0.0 }
 0x507   : > { %4355 = vst [vmem:[%s7652_s3 + $0x8] sm:$0xff] %v4323_v39 }
 0x508   : > { %v4215_v43 = vpop.f32.mrf.mxu1 }
 0x509   : > { %v4216_v19 = vadd.f32 %v7645_v54, %v4215_v43 }
 0x50b   : > { %v4292_v21 = vadd.f32 %v5544_v23, %v4216_v19  ;;  %4254 = vmatmul.bf16.gmra.mxu1 %v7510_v8  ;;  %v5556_v19 = vld [vmem:[%s6072_s20 + $0x70] sm:$0xff] }
 0x50d   : > { %v4324_v26 = vmax.f32 %v4292_v21, 0.0 }
 0x50f   : > { %4356 = vst [vmem:[%s7652_s3 + $0x10] sm:$0xff] %v4324_v26 }
 0x510   : > { %v4217_v52 = vpop.f32.mrf.mxu1 }
 0x511   : > { %v4218_v50 = vadd.f32 %v7645_v54, %v4217_v52  ;;  %v5557_v52 = vld [vmem:[%s6072_s20 + $0x78] sm:$0xff] }
 0x513   : > { %v4293_v12 = vadd.f32 %v5545_v13, %v4218_v50 }
 0x515   : > { %v4325_v24 = vmax.f32 %v4293_v12, 0.0 }
 0x517   : > { %4357 = vst [vmem:[%s7652_s3 + $0x18] sm:$0xff] %v4325_v24 }
 0x518   : > { %v4220_v51 = vpop.f32.mrf.mxu1 }
 0x519   : > { %v4221_v27 = vadd.f32 %v7645_v54, %v4220_v51  ;;  %v5558_v51 = vld [vmem:[%s6072_s20 + $0x80] sm:$0xff] }
 0x51b   : > { %v4294_v62 = vadd.f32 %v5546_v4, %v4221_v27  ;;  %4259 = vmatmul.bf16.gmra.mxu1 %v7528_v2 }
 0x51d   : > { %v4326_v8 = vmax.f32 %v4294_v62, 0.0 }
 0x51f   : > { %4358 = vst [vmem:[%s7652_s3 + $0x20] sm:$0xff] %v4326_v8  ;;  %v5559_v8 = vld [vmem:[%s6072_s20 + $0x88] sm:$0xff] }
 0x520   : > { %v4222_v38 = vpop.f32.mrf.mxu1 }
 0x521   : > { %v4223_v30 = vadd.f32 %v7645_v54, %v4222_v38 }
 0x523   : > { %v4295_v7 = vadd.f32 %v5547_v31, %v4223_v30 }
 0x525   : > { %v4327_v16 = vmax.f32 %v4295_v7, 0.0 }
 0x527   : > { %4359 = vst [vmem:[%s7652_s3 + $0x28] sm:$0xff] %v4327_v16  ;;  %v5560_v16 = vld [vmem:[%s6072_s20 + $0x90] sm:$0xff] }
 0x528   : > { %v4225_v35 = vpop.f32.mrf.mxu1 }
 0x529   : > { %v4226_v6 = vadd.f32 %v7645_v54, %v4225_v35 }
 0x52b   : > { %v4296_v57 = vadd.f32 %v5548_v22, %v4226_v6  ;;  %4264 = vmatmul.bf16.gmra.mxu1 %v7546_v15 }
 0x52d   : > { %v4328_v2 = vmax.f32 %v4296_v57, 0.0 }
 0x52f   : > { %4360 = vst [vmem:[%s7652_s3 + $0x30] sm:$0xff] %v4328_v2  ;;  %v5561_v2 = vld [vmem:[%s6072_s20 + $0x98] sm:$0xff] }
 0x530   : > { %v4227_v17 = vpop.f32.mrf.mxu1 }
 0x531   : > { %v4228_v28 = vadd.f32 %v7645_v54, %v4227_v17 }
 0x533   : > { %v4297_v48 = vadd.f32 %v5549_v9, %v4228_v28 }
 0x535   : > { %v4329_v61 = vmax.f32 %v4297_v48, 0.0 }
 0x537   : > { %4361 = vst [vmem:[%s7652_s3 + $0x38] sm:$0xff] %v4329_v61  ;;  %v5562_v61 = vld [vmem:[%s6072_s20 + $0xa0] sm:$0xff] }
 0x538   : > { %v4230_v56 = vpop.f32.mrf.mxu1 }
 0x539   : > { %v4231_v10 = vadd.f32 %v7645_v54, %v4230_v56 }
 0x53b   : > { %v4298_v58 = vadd.f32 %v5550_v14, %v4231_v10  ;;  %4269 = vmatmul.bf16.gmra.mxu1 %v7564_v11 }
 0x53d   : > { %v4330_v15 = vmax.f32 %v4298_v58, 0.0 }
 0x53f   : > { %4362 = vst [vmem:[%s7652_s3 + $0x40] sm:$0xff] %v4330_v15  ;;  %v5563_v15 = vld [vmem:[%s6072_s20 + $0xa8] sm:$0xff] }
 0x540   : > { %v4232_v36 = vpop.f32.mrf.mxu1 }
 0x541   : > { %v4233_v20 = vadd.f32 %v7645_v54, %v4232_v36 }
 0x543   : > { %v4299_v45 = vadd.f32 %v5551_v33, %v4233_v20 }
 0x545   : > { %v4331_v29 = vmax.f32 %v4299_v45, 0.0 }
 0x547   : > { %4363 = vst [vmem:[%s7652_s3 + $0x48] sm:$0xff] %v4331_v29  ;;  %v5564_v29 = vld [vmem:[%s6072_s20 + $0xb0] sm:$0xff] }
 0x548   : > { %v4235_v44 = vpop.f32.mrf.mxu1 }
 0x549   : > { %v4236_v40 = vadd.f32 %v7645_v54, %v4235_v44 }
 0x54b   : > { %v4300_v59 = vadd.f32 %v5552_v49, %v4236_v40  ;;  %4274 = vmatmul.bf16.gmra.mxu1 %v7582_v53 }
 0x54d   : > { %v4332_v11 = vmax.f32 %v4300_v59, 0.0 }
 0x54f   : > { %4364 = vst [vmem:[%s7652_s3 + $0x50] sm:$0xff] %v4332_v11  ;;  %v5565_v11 = vld [vmem:[%s6072_s20 + $0xb8] sm:$0xff] }
 0x550   : > { %v4237_v1 = vpop.f32.mrf.mxu1 }
 0x551   : > { %v4238_v42 = vadd.f32 %v7645_v54, %v4237_v1 }
 0x553   : > { %v4301_v3 = vadd.f32 %v5553_v37, %v4238_v42 }
 0x555   : > { %v4333_v18 = vmax.f32 %v4301_v3, 0.0 }
 0x557   : > { %4365 = vst [vmem:[%s7652_s3 + $0x58] sm:$0xff] %v4333_v18  ;;  %v5566_v18 = vld [vmem:[%s6072_s20 + $0xc0] sm:$0xff] }
 0x558   : > { %v4240_v46 = vpop.f32.mrf.mxu1 }
 0x559   : > { %v4241_v32 = vadd.f32 %v7645_v54, %v4240_v46 }
 0x55b   : > { %v4302_v60 = vadd.f32 %v5554_v63, %v4241_v32  ;;  %4279 = vmatmul.bf16.gmra.mxu1 %v7622_v5 }
 0x55d   : > { %v4334_v53 = vmax.f32 %v4302_v60, 0.0 }
 0x55f   : > { %4366 = vst [vmem:[%s7652_s3 + $0x60] sm:$0xff] %v4334_v53  ;;  %v5567_v53 = vld [vmem:[%s6072_s20 + $0xc8] sm:$0xff] }
 0x560   : > { %v4242_v55 = vpop.f32.mrf.mxu1 }
 0x561   : > { %v4243_v34 = vadd.f32 %v7645_v54, %v4242_v55 }
 0x563   : > { %v4303_v0 = vadd.f32 %v5555_v25, %v4243_v34 }
 0x565   : > { %v4335_v41 = vmax.f32 %v4303_v0, 0.0 }
 0x567   : > { %4367 = vst [vmem:[%s7652_s3 + $0x68] sm:$0xff] %v4335_v41  ;;  %v5568_v41 = vld [vmem:[%s6072_s20 + $0xd0] sm:$0xff] }
 0x568   : > { %v4245_v39 = vpop.f32.mrf.mxu1 }
 0x569   : > { %v4246_v43 = vadd.f32 %v7645_v54, %v4245_v39 }
 0x56b   : > { %v4304_v23 = vadd.f32 %v5556_v19, %v4246_v43  ;;  %4284 = vmatmul.bf16.gmra.mxu1 %v7633_v47 }
 0x56d   : > { %v4336_v5 = vmax.f32 %v4304_v23, 0.0 }
 0x56f   : > { %4368 = vst [vmem:[%s7652_s3 + $0x70] sm:$0xff] %v4336_v5  ;;  %v5569_v5 = vld [vmem:[%s6072_s20 + $0xd8] sm:$0xff] }
 0x570   : > { %v4247_v21 = vpop.f32.mrf.mxu1 }
 0x571   : > { %v4248_v26 = vadd.f32 %v7645_v54, %v4247_v21 }
 0x573   : > { %v4305_v50 = vadd.f32 %v5557_v52, %v4248_v26 }
 0x575   : > { %v4337_v13 = vmax.f32 %v4305_v50, 0.0 }
 0x577   : > { %4369 = vst [vmem:[%s7652_s3 + $0x78] sm:$0xff] %v4337_v13  ;;  %v5570_v13 = vld [vmem:[%s6072_s20 + $0xe0] sm:$0xff] }
 0x578   : > { %v4250_v12 = vpop.f32.mrf.mxu1 }
 0x579   : > { %v4251_v24 = vadd.f32 %v7645_v54, %v4250_v12 }
 0x57b   : > { %v4306_v27 = vadd.f32 %v5558_v51, %v4251_v24 }
 0x57d   : > { %v4338_v4 = vmax.f32 %v4306_v27, 0.0 }
 0x57f   : > { %4370 = vst [vmem:[%s7652_s3 + $0x80] sm:$0xff] %v4338_v4  ;;  %v5571_v4 = vld [vmem:[%s6072_s20 + $0xe8] sm:$0xff] }
 0x580   : > { %v4252_v47 = vpop.f32.mrf.mxu1 }
 0x581   : > { %v4253_v62 = vadd.f32 %v7645_v54, %v4252_v47 }
 0x583   : > { %v4307_v38 = vadd.f32 %v5559_v8, %v4253_v62 }
 0x585   : > { %v4339_v30 = vmax.f32 %v4307_v38, 0.0 }
 0x587   : > { %4371 = vst [vmem:[%s7652_s3 + $0x88] sm:$0xff] %v4339_v30  ;;  %v5572_v30 = vld [vmem:[%s6072_s20 + $0xf0] sm:$0xff] }
 0x588   : > { %v4255_v31 = vpop.f32.mrf.mxu1 }
 0x589   : > { %v4256_v7 = vadd.f32 %v7645_v54, %v4255_v31 }
 0x58b   : > { %v4308_v35 = vadd.f32 %v5560_v16, %v4256_v7 }
 0x58d   : > { %v4340_v6 = vmax.f32 %v4308_v35, 0.0 }
 0x58f   : > { %4372 = vst [vmem:[%s7652_s3 + $0x90] sm:$0xff] %v4340_v6  ;;  %v5573_v6 = vld [vmem:[%s6072_s20 + $0xf8] sm:$0xff] }
 0x590   : > { %v4257_v22 = vpop.f32.mrf.mxu1 }
 0x591   : > { %v4258_v57 = vadd.f32 %v7645_v54, %v4257_v22 }
 0x593   : > { %v4309_v17 = vadd.f32 %v5561_v2, %v4258_v57 }
 0x595   : > { %v4341_v28 = vmax.f32 %v4309_v17, 0.0 }
 0x597   : > { %4373 = vst [vmem:[%s7652_s3 + $0x98] sm:$0xff] %v4341_v28 }
 0x598   : > { %v4260_v9 = vpop.f32.mrf.mxu1 }
 0x599   : > { %v4261_v48 = vadd.f32 %v7645_v54, %v4260_v9 }
 0x59b   : > { %v4310_v56 = vadd.f32 %v5562_v61, %v4261_v48 }
 0x59d   : > { %v4342_v10 = vmax.f32 %v4310_v56, 0.0 }
 0x59f   : > { %4374 = vst [vmem:[%s7652_s3 + $0xa0] sm:$0xff] %v4342_v10 }
 0x5a0   : > { %v4262_v14 = vpop.f32.mrf.mxu1 }
 0x5a1   : > { %v4263_v58 = vadd.f32 %v7645_v54, %v4262_v14 }
 0x5a3   : > { %v4311_v36 = vadd.f32 %v5563_v15, %v4263_v58 }
 0x5a5   : > { %v4343_v20 = vmax.f32 %v4311_v36, 0.0 }
 0x5a7   : > { %4375 = vst [vmem:[%s7652_s3 + $0xa8] sm:$0xff] %v4343_v20 }
 0x5a8   : > { %v4265_v33 = vpop.f32.mrf.mxu1 }
 0x5a9   : > { %v4266_v45 = vadd.f32 %v7645_v54, %v4265_v33 }
 0x5ab   : > { %v4312_v44 = vadd.f32 %v5564_v29, %v4266_v45 }
 0x5ad   : > { %v4344_v40 = vmax.f32 %v4312_v44, 0.0 }
 0x5af   : > { %4376 = vst [vmem:[%s7652_s3 + $0xb0] sm:$0xff] %v4344_v40 }
 0x5b0   : > { %v4267_v49 = vpop.f32.mrf.mxu1 }
 0x5b1   : > { %v4268_v59 = vadd.f32 %v7645_v54, %v4267_v49 }
 0x5b3   : > { %v4313_v1 = vadd.f32 %v5565_v11, %v4268_v59 }
 0x5b5   : > { %v4345_v42 = vmax.f32 %v4313_v1, 0.0 }
 0x5b7   : > { %4377 = vst [vmem:[%s7652_s3 + $0xb8] sm:$0xff] %v4345_v42 }
 0x5b8   : > { %v4270_v37 = vpop.f32.mrf.mxu1 }
 0x5b9   : > { %v4271_v3 = vadd.f32 %v7645_v54, %v4270_v37 }
 0x5bb   : > { %v4314_v46 = vadd.f32 %v5566_v18, %v4271_v3 }
 0x5bd   : > { %v4346_v32 = vmax.f32 %v4314_v46, 0.0 }
 0x5bf   : > { %4378 = vst [vmem:[%s7652_s3 + $0xc0] sm:$0xff] %v4346_v32 }
 0x5c0   : > { %v4272_v63 = vpop.f32.mrf.mxu1 }
 0x5c1   : > { %v4273_v60 = vadd.f32 %v7645_v54, %v4272_v63 }
 0x5c3   : > { %v4315_v55 = vadd.f32 %v5567_v53, %v4273_v60 }
 0x5c5   : > { %v4347_v34 = vmax.f32 %v4315_v55, 0.0 }
 0x5c7   : > { %4379 = vst [vmem:[%s7652_s3 + $0xc8] sm:$0xff] %v4347_v34 }
 0x5c8   : > { %v4275_v25 = vpop.f32.mrf.mxu1 }
 0x5c9   : > { %v4276_v0 = vadd.f32 %v7645_v54, %v4275_v25 }
 0x5cb   : > { %v4316_v39 = vadd.f32 %v5568_v41, %v4276_v0 }
 0x5cd   : > { %v4348_v43 = vmax.f32 %v4316_v39, 0.0 }
 0x5cf   : > { %4380 = vst [vmem:[%s7652_s3 + $0xd0] sm:$0xff] %v4348_v43 }
 0x5d0   : > { %v4277_v19 = vpop.f32.mrf.mxu1 }
 0x5d1   : > { %v4278_v23 = vadd.f32 %v7645_v54, %v4277_v19 }
 0x5d3   : > { %v4317_v21 = vadd.f32 %v5569_v5, %v4278_v23 }
 0x5d5   : > { %v4349_v26 = vmax.f32 %v4317_v21, 0.0 }
 0x5d7   : > { %4381 = vst [vmem:[%s7652_s3 + $0xd8] sm:$0xff] %v4349_v26 }
 0x5d8   : > { %v4280_v52 = vpop.f32.mrf.mxu1 }
 0x5d9   : > { %v4281_v50 = vadd.f32 %v7645_v54, %v4280_v52 }
 0x5db   : > { %v4318_v12 = vadd.f32 %v5570_v13, %v4281_v50 }
 0x5dd   : > { %v4350_v24 = vmax.f32 %v4318_v12, 0.0 }
 0x5df   : > { %4382 = vst [vmem:[%s7652_s3 + $0xe0] sm:$0xff] %v4350_v24 }
 0x5e0   : > { %v4282_v51 = vpop.f32.mrf.mxu1 }
 0x5e1   : > { %v4283_v27 = vadd.f32 %v7645_v54, %v4282_v51 }
 0x5e3   : > { %v4319_v47 = vadd.f32 %v5571_v4, %v4283_v27 }
 0x5e5   : > { %v4351_v62 = vmax.f32 %v4319_v47, 0.0 }
 0x5e7   : > { %4383 = vst [vmem:[%s7652_s3 + $0xe8] sm:$0xff] %v4351_v62 }
 0x5e8   : > { %v4285_v8 = vpop.f32.mrf.mxu1 }
 0x5e9   : > { %v4286_v38 = vadd.f32 %v7645_v54, %v4285_v8 }
 0x5eb   : > { %v4320_v31 = vadd.f32 %v5572_v30, %v4286_v38 }
 0x5ed   : > { %v4352_v7 = vmax.f32 %v4320_v31, 0.0 }
 0x5ef   : > { %4384 = vst [vmem:[%s7652_s3 + $0xf0] sm:$0xff] %v4352_v7 }
 0x5f0   : > { %v4287_v16 = vpop.f32.mrf.mxu1 }
 0x5f1   : > { %v4288_v35 = vadd.f32 %v7645_v54, %v4287_v16 }
 0x5f3   : > { %v4321_v22 = vadd.f32 %v5573_v6, %v4288_v35 }
 0x5f5   : > { %v4353_v57 = vmax.f32 %v4321_v22, 0.0 }
 0x5f7   : > { %4385 = vst [vmem:[%s7652_s3 + $0xf8] sm:$0xff] %v4353_v57 }
 0x5f8   : > { %5781 = shalt.err (!%p5778_p12)
}
 0x5f9   : > { %s5860_s5 = smov 128   ;;  %s5861_s20 = smov 8  }
 0x5fa   : > { %5432 = dma.vmem_to_hbm [thread:$0]  (%p5992_p5), %s4403_s29, 4096, %s4405_s12, %s4387_s7, %s5860_s5, %s5860_s5, %s5861_s20  }
 0x5fb PF: > { %s8275_s30 = sld [smem:[#allocation20_spill]]  ;;  %p8277_p13 = scmp.ge.s32.totalorder %s5848_s14, 2 }
 0x5fd   : > { %p5455_p0 = pnand %p8277_p13, %p5957_p6 }
 0x5ff   : > { %p5456_p3 = pneg %p5455_p0 }
 0x601   : > { %s4419_s1 = sand.u32 1, %s8275_s30  }
 0x602   : > { %s4420_s11 = scalar_lea.sflag [#allocation5], %s4419_s1 }
 0x603   : > { %5823 = dma.done.wait (%p5456_p3), %s4420_s11, 4096  }
 0x604   : > { %5825 = vsyncadd (%p5456_p3), %s4420_s11, 4294963200  ;;  %s30_s14 = sadd.s32 1, %s5848_s14   ;;  %s8278_s3 = sld [smem:[#allocation21_spill]] }
 0x605   : > { %p27_p7 = scmp.ge.s32.totalorder %s30_s14, 4   ;;  %s8279_s11 = sld [smem:[#allocation27_spill]] }
 0x606   : > { %s8280_s12 = sld [smem:[#allocation23_spill]]  ;;  %s8282_s30 = smov %s5832_s10 }
 0x607   : > { %s8281_s13 = sld [smem:[#allocation25_spill]]  ;;  %29 = sbr.rel (!%p27_p7) target bundleno = 16 (0x10), region = 142 }
 0x60a   : > { %s8283_s10 = smov %s8278_s3 }
 0x60c   :  { %4426 = vsyncpa [#allocation4], 1 }
 0x60d   :  { %4428 = vsyncpa [#allocation4 + $0x1], 1 }
 0x60e   :  { %4429 = vsyncpa [#allocation7], 1 }
 0x60f   :  { %4431 = vsyncpa [#allocation7 + $0x1], 1 }
 0x610   :  { %4432 = vsyncpa [#allocation10], 1 }
 0x611   :  { %4433 = vsyncpa [#allocation13], 1 }
 0x612   :  { %4434 = vsyncpa [#allocation5], 1 }
 0x613   :  { %4436 = vsyncpa [#allocation5 + $0x1], 1 }

</bundles_post_ra>
